<compile_context>
chip_gen: v7x
topology: tpu7x:2x2x1
jax: 0.10.0
libtpu: 0.0.40
codegen_flags: <defaults>
</compile_context>

<pallas_src>
import jax
import jax.numpy as jnp
from jax.experimental import pallas as pl
from jax.experimental.pallas import tpu as pltpu

HIDDEN = 256
B_TILE = 128          # batch rows per grid step (MXU-friendly, sublane aligned)
NTAPS = 24            # 15 conv taps + 3 constant-1 bias taps, padded to 24


def _convcritic_kernel(taps_ref, crhs_ref, wl1_ref, wl2_ref, wl3_ref, misc_ref,
                       out_ref):
    f32 = jnp.float32
    bt = out_ref.shape[0]                       # batch tile (static)
    m = misc_ref[...]                           # (8, 256) f32 misc slab
    # rows: 0=l1_b 1=l2_b 2=l3_b 3=a1 4=a2 5=a3 6=l4_b(bcast) 7=l4_w row

    # --- fused conv1/conv2/conv3 (+ biases via constant-1 taps): ONE matmul ---
    # taps_ref[0]: (7*bt, 24) bf16; row j*bt+b_local holds the taps of feature
    # slot j for local state b_local.
    conv = jnp.dot(taps_ref[0], crhs_ref[...], preferred_element_type=f32)
    conv = jnp.maximum(conv, 0.0).astype(jnp.bfloat16)   # ReLU, bf16 feed to MXU

    # --- cat(dim=1)+flatten+Linear(1792,256): 7 accumulating (bt,256)@(256,256) ---
    h = jnp.dot(conv[0:bt], wl1_ref[0], preferred_element_type=f32)
    for j in range(1, 7):
        h = h + jnp.dot(conv[j * bt:(j + 1) * bt], wl1_ref[j],
                        preferred_element_type=f32)
    h = h + m[0:1, :]
    h = jnp.where(h >= 0.0, h, m[3:4, :] * h)                         # PReLU 1
    h = jnp.dot(h.astype(jnp.bfloat16), wl2_ref[...],
                preferred_element_type=f32) + m[1:2, :]
    h = jnp.where(h >= 0.0, h, m[4:5, :] * h)                         # PReLU 2
    h = jnp.dot(h.astype(jnp.bfloat16), wl3_ref[...],
                preferred_element_type=f32) + m[2:3, :]
    h = jnp.where(h >= 0.0, h, m[5:6, :] * h)                         # PReLU 3

    # --- final Linear(256,1): VPU multiply + lane reduction (no padded matmul) ---
    out_ref[...] = jnp.sum(h * m[7:8, :], axis=-1, keepdims=True) + m[6:7, 0:1]
    # TODO(synk): training-mode dropout RNG is not reproduced (eval-mode identity).


def prepare_params(p):
    """One-time (hoisted) conversion of PyTorch-layout params to kernel layout."""
    hd = HIDDEN
    f32 = jnp.float32

    # Fused conv RHS (24, 256): rows 0-2 conv1 taps, 3-5 conv2 taps, 6-14 conv3
    # taps (h-major), 15/16/17 the three conv biases (hit by constant-1 taps).
    crhs = jnp.zeros((NTAPS, hd), f32)
    crhs = crhs.at[0:3, :].set(p["conv1_w"][:, 0, 0, :].T)
    crhs = crhs.at[3:6, :].set(p["conv2_w"][:, 0, :, 0].T)
    crhs = crhs.at[6:15, :].set(p["conv3_w"][:, 0].reshape(hd, 9).T)
    crhs = crhs.at[15, :].set(p["conv1_b"])
    crhs = crhs.at[16, :].set(p["conv2_b"])
    crhs = crhs.at[17, :].set(p["conv3_b"])

    # l1_w: (256, 1792) with columns indexed c*7+j  ->  (7, in_channel, out)
    wl1 = jnp.transpose(p["l1_w"].reshape(hd, hd, 7), (2, 1, 0))

    misc = jnp.stack([
        p["l1_b"], p["l2_b"], p["l3_b"],
        jnp.full((hd,), p["a1"], f32),
        jnp.full((hd,), p["a2"], f32),
        jnp.full((hd,), p["a3"], f32),
        jnp.full((hd,), p["l4_b"][0], f32),
        p["l4_w"][0],
    ]).astype(f32)                                                    # (8, 256)

    return dict(
        crhs=crhs.astype(jnp.bfloat16),
        wl1=wl1.astype(jnp.bfloat16),
        wl2=p["l2_w"].T.astype(jnp.bfloat16),
        wl3=p["l3_w"].T.astype(jnp.bfloat16),
        misc=misc,
    )


def conv_critic_forward(states, kp, b_tile=B_TILE):
    """states: (B, 1, 3, 3) f32. Returns (B,) critic values."""
    B = states.shape[0]
    G = pl.cdiv(B, b_tile)
    Bp = G * b_tile

    x = states[:, 0].astype(jnp.float32)                              # (B, 3, 3)
    if Bp != B:
        x = jnp.concatenate([x, jnp.zeros((Bp - B, 3, 3), jnp.float32)], axis=0)

    # Build per-(slot, state) tap rows; slots j=0..2 conv1 rows, 3..5 conv2
    # columns (== swapaxes in the cat), 6 the flattened 3x3 patch; constant-1
    # taps 15/16/17 pick up the respective conv bias.
    taps = jnp.zeros((7, Bp, NTAPS), jnp.float32)
    taps = taps.at[0:3, :, 0:3].set(jnp.transpose(x, (1, 0, 2)))      # x[b, j, :]
    taps = taps.at[3:6, :, 3:6].set(jnp.transpose(x, (2, 0, 1)))      # x[b, :, w]
    taps = taps.at[6, :, 6:15].set(x.reshape(Bp, 9))
    taps = taps.at[0:3, :, 15].set(1.0)
    taps = taps.at[3:6, :, 16].set(1.0)
    taps = taps.at[6, :, 17].set(1.0)
    # Tile-major layout: (G, 7*b_tile, 24), row j*b_tile + b_local within a tile.
    taps = taps.reshape(7, G, b_tile, NTAPS).transpose(1, 0, 2, 3)
    taps = taps.reshape(G, 7 * b_tile, NTAPS).astype(jnp.bfloat16)

    out = pl.pallas_call(
        _convcritic_kernel,
        out_shape=jax.ShapeDtypeStruct((Bp, 1), jnp.float32),
        grid=(G,),
        in_specs=[
            pl.BlockSpec((1, 7 * b_tile, NTAPS), lambda i: (i, 0, 0)),   # taps
            pl.BlockSpec((NTAPS, HIDDEN), lambda i: (0, 0)),             # conv RHS
            pl.BlockSpec((7, HIDDEN, HIDDEN), lambda i: (0, 0, 0)),      # wl1
            pl.BlockSpec((HIDDEN, HIDDEN), lambda i: (0, 0)),            # wl2
            pl.BlockSpec((HIDDEN, HIDDEN), lambda i: (0, 0)),            # wl3
            pl.BlockSpec((8, HIDDEN), lambda i: (0, 0)),                 # misc f32
        ],
        out_specs=pl.BlockSpec((b_tile, 1), lambda i: (i, 0)),
        compiler_params=pltpu.CompilerParams(
            dimension_semantics=("parallel",)),
    )(taps, kp["crhs"], kp["wl1"], kp["wl2"], kp["wl3"], kp["misc"])

    return out[:B, 0]                                                  # (B,)


def init_params(key):
    """Deterministic synthetic parameters matching the PyTorch module's shapes."""
    hd = HIDDEN
    ks = jax.random.split(key, 10)

    def xavier(k, shape):  # (out, in), matches torch.nn.init.xavier_normal_
        fan_out, fan_in = shape
        std = (2.0 / (fan_in + fan_out)) ** 0.5
        return std * jax.random.normal(k, shape, jnp.float32)

    return dict(
        conv1_w=0.1 * jax.random.normal(ks[0], (hd, 1, 1, 3), jnp.float32),
        conv1_b=0.05 * jax.random.normal(ks[1], (hd,), jnp.float32),
        conv2_w=0.1 * jax.random.normal(ks[2], (hd, 1, 3, 1), jnp.float32),
        conv2_b=0.05 * jax.random.normal(ks[3], (hd,), jnp.float32),
        conv3_w=0.1 * jax.random.normal(ks[4], (hd, 1, 3, 3), jnp.float32),
        conv3_b=0.05 * jax.random.normal(ks[5], (hd,), jnp.float32),
        l1_w=xavier(ks[6], (hd, 7 * hd)), l1_b=jnp.zeros((hd,), jnp.float32),
        l2_w=xavier(ks[7], (hd, hd)), l2_b=jnp.zeros((hd,), jnp.float32),
        l3_w=xavier(ks[8], (hd, hd)), l3_b=jnp.zeros((hd,), jnp.float32),
        l4_w=xavier(ks[9], (1, hd)), l4_b=jnp.zeros((1,), jnp.float32),
        a1=jnp.float32(0.25), a2=jnp.float32(0.25), a3=jnp.float32(0.25),
    )


def reference_forward(states, p, weight_dtype=jnp.float32):
    """Pure-JAX reference of the PyTorch forward (eval mode), batched.

    With weight_dtype=bfloat16 it also emulates the kernel's quantization
    (bf16 weights / bf16 matmul inputs, f32 accumulation & elementwise math).
    """
    f32 = jnp.float32
    q = lambda a: a.astype(weight_dtype).astype(f32)
    B = states.shape[0]
    x = q(states[:, 0])                                                # (B,3,3)

    o1 = jnp.maximum(jnp.einsum("bhw,cw->bch", x, q(p["conv1_w"][:, 0, 0, :]))
                     + q(p["conv1_b"])[None, :, None], 0.0)            # (B,256,3)
    o2 = jnp.maximum(jnp.einsum("bhw,ch->bcw", x, q(p["conv2_w"][:, 0, :, 0]))
                     + q(p["conv2_b"])[None, :, None], 0.0)            # (B,256,3)
    o3 = jnp.maximum(jnp.einsum("bhw,chw->bc", x, q(p["conv3_w"][:, 0]))
                     + q(p["conv3_b"])[None, :], 0.0)                  # (B,256)
    f = jnp.concatenate([o1, o2, o3[:, :, None]], axis=2).reshape(B, -1)  # c*7+j

    def prelu(v, a):
        return jnp.where(v >= 0, v, a * v)

    h = prelu(q(f) @ q(p["l1_w"]).T + p["l1_b"], p["a1"])
    h = prelu(q(h) @ q(p["l2_w"]).T + p["l2_b"], p["a2"])
    h = prelu(q(h) @ q(p["l3_w"]).T + p["l3_b"], p["a3"])
    return jnp.sum(h * p["l4_w"][0][None, :], axis=-1) + p["l4_b"][0]  # (B,)


if __name__ == "__main__":
    key = jax.random.PRNGKey(0)
    kparam, kx = jax.random.split(key)
    params = init_params(kparam)

    B = 256                                            # batch of tiny 3x3 states
    states = jax.random.normal(kx, (B, 1, 3, 3), jnp.float32)

    kernel_params = prepare_params(params)             # hoisted: runs once
    fwd = jax.jit(conv_critic_forward)

    out = jax.block_until_ready(fwd(states, kernel_params))
    ref_bf16 = reference_forward(states, params, jnp.bfloat16)   # matches kernel dtypes
    ref_f32 = reference_forward(states, params, jnp.float32)     # exact f32 semantics

    assert out.shape == (B,), out.shape
    assert jnp.allclose(out, ref_bf16, rtol=2e-3, atol=2e-3), (
        float(jnp.max(jnp.abs(out - ref_bf16))))
    assert jnp.allclose(out, ref_f32, rtol=1e-1, atol=1e-1), (
        float(jnp.max(jnp.abs(out - ref_f32))))
    print("KERNEL_OK")
</pallas_src>

<mosaic_0001>
module attributes {stable_mosaic.version = 11 : i64} {
  func.func @_convcritic_kernel(%arg0: i32, %arg1: memref<1x896x24xbf16, #tpu.memory_space<vmem>>, %arg2: memref<24x256xbf16, #tpu.memory_space<vmem>>, %arg3: memref<7x256x256xbf16, #tpu.memory_space<vmem>>, %arg4: memref<256x256xbf16, #tpu.memory_space<vmem>>, %arg5: memref<256x256xbf16, #tpu.memory_space<vmem>>, %arg6: memref<8x256xf32, #tpu.memory_space<vmem>>, %arg7: memref<128x1xf32, #tpu.memory_space<vmem>>) attributes {dimension_semantics = [#tpu.dimension_semantics<parallel>], iteration_bounds = array<i64: 2>, scalar_prefetch = 0 : i64, scratch_operands = 0 : i64, tpu.core_type = #tpu.core_type<tc>, window_params = [{transform_indices = @transform_0, window_bounds = array<i64: 1, 896, 24>}, {pipeline_mode = #tpu.pipeline_mode<synchronous>, transform_indices = @transform_1, window_bounds = array<i64: 24, 256>}, {pipeline_mode = #tpu.pipeline_mode<synchronous>, transform_indices = @transform_2, window_bounds = array<i64: 7, 256, 256>}, {pipeline_mode = #tpu.pipeline_mode<synchronous>, transform_indices = @transform_3, window_bounds = array<i64: 256, 256>}, {pipeline_mode = #tpu.pipeline_mode<synchronous>, transform_indices = @transform_4, window_bounds = array<i64: 256, 256>}, {pipeline_mode = #tpu.pipeline_mode<synchronous>, transform_indices = @transform_5, window_bounds = array<i64: 8, 256>}, {transform_indices = @transform_6, window_bounds = array<i64: 128, 1>}]} {
    %c0 = arith.constant 0 : index
    %c0_0 = arith.constant 0 : index
    %0 = vector.load %arg6[%c0, %c0_0] : memref<8x256xf32, #tpu.memory_space<vmem>>, vector<8x256xf32>
    %c0_1 = arith.constant 0 : index
    %c0_2 = arith.constant 0 : index
    %c0_3 = arith.constant 0 : index
    %1 = vector.load %arg1[%c0_1, %c0_2, %c0_3] : memref<1x896x24xbf16, #tpu.memory_space<vmem>>, vector<1x896x24xbf16>
    %2 = vector.shape_cast %1 : vector<1x896x24xbf16> to vector<896x24xbf16>
    %c0_4 = arith.constant 0 : index
    %c0_5 = arith.constant 0 : index
    %3 = vector.load %arg2[%c0_4, %c0_5] : memref<24x256xbf16, #tpu.memory_space<vmem>>, vector<24x256xbf16>
    %cst = arith.constant dense<0.000000e+00> : vector<896x256xf32>
    %4 = tpu.matmul %2, %3, %cst {dimension_numbers = #tpu.dot_dimension_numbers<[1], [0], [0], [1], [0, 0, 1, 1], [], []>} : vector<896x24xbf16>, vector<24x256xbf16>, vector<896x256xf32> -> vector<896x256xf32>
    %cst_6 = arith.constant 0.000000e+00 : f32
    %5 = vector.broadcast %cst_6 : f32 to vector<896x256xf32>
    %6 = arith.maximumf %4, %5 : vector<896x256xf32>
    %7 = arith.truncf %6 : vector<896x256xf32> to vector<896x256xbf16>
    %8 = vector.extract_strided_slice %7 {offsets = [0, 0], sizes = [128, 256], strides = [1, 1]} : vector<896x256xbf16> to vector<128x256xbf16>
    %c0_7 = arith.constant 0 : index
    %c0_8 = arith.constant 0 : index
    %c0_9 = arith.constant 0 : index
    %9 = vector.load %arg3[%c0_7, %c0_8, %c0_9] : memref<7x256x256xbf16, #tpu.memory_space<vmem>>, vector<1x256x256xbf16>
    %10 = vector.shape_cast %9 : vector<1x256x256xbf16> to vector<256x256xbf16>
    %cst_10 = arith.constant dense<0.000000e+00> : vector<128x256xf32>
    %11 = tpu.matmul %8, %10, %cst_10 {dimension_numbers = #tpu.dot_dimension_numbers<[1], [0], [0], [1], [0, 0, 1, 1], [], []>} : vector<128x256xbf16>, vector<256x256xbf16>, vector<128x256xf32> -> vector<128x256xf32>
    %12 = vector.extract_strided_slice %7 {offsets = [128, 0], sizes = [128, 256], strides = [1, 1]} : vector<896x256xbf16> to vector<128x256xbf16>
    %c1 = arith.constant 1 : index
    %c0_11 = arith.constant 0 : index
    %c0_12 = arith.constant 0 : index
    %13 = vector.load %arg3[%c1, %c0_11, %c0_12] : memref<7x256x256xbf16, #tpu.memory_space<vmem>>, vector<1x256x256xbf16>
    %14 = vector.shape_cast %13 : vector<1x256x256xbf16> to vector<256x256xbf16>
    %cst_13 = arith.constant dense<0.000000e+00> : vector<128x256xf32>
    %15 = tpu.matmul %12, %14, %cst_13 {dimension_numbers = #tpu.dot_dimension_numbers<[1], [0], [0], [1], [0, 0, 1, 1], [], []>} : vector<128x256xbf16>, vector<256x256xbf16>, vector<128x256xf32> -> vector<128x256xf32>
    %16 = arith.addf %11, %15 : vector<128x256xf32>
    %17 = vector.extract_strided_slice %7 {offsets = [256, 0], sizes = [128, 256], strides = [1, 1]} : vector<896x256xbf16> to vector<128x256xbf16>
    %c2 = arith.constant 2 : index
    %c0_14 = arith.constant 0 : index
    %c0_15 = arith.constant 0 : index
    %18 = vector.load %arg3[%c2, %c0_14, %c0_15] : memref<7x256x256xbf16, #tpu.memory_space<vmem>>, vector<1x256x256xbf16>
    %19 = vector.shape_cast %18 : vector<1x256x256xbf16> to vector<256x256xbf16>
    %cst_16 = arith.constant dense<0.000000e+00> : vector<128x256xf32>
    %20 = tpu.matmul %17, %19, %cst_16 {dimension_numbers = #tpu.dot_dimension_numbers<[1], [0], [0], [1], [0, 0, 1, 1], [], []>} : vector<128x256xbf16>, vector<256x256xbf16>, vector<128x256xf32> -> vector<128x256xf32>
    %21 = arith.addf %16, %20 : vector<128x256xf32>
    %22 = vector.extract_strided_slice %7 {offsets = [384, 0], sizes = [128, 256], strides = [1, 1]} : vector<896x256xbf16> to vector<128x256xbf16>
    %c3 = arith.constant 3 : index
    %c0_17 = arith.constant 0 : index
    %c0_18 = arith.constant 0 : index
    %23 = vector.load %arg3[%c3, %c0_17, %c0_18] : memref<7x256x256xbf16, #tpu.memory_space<vmem>>, vector<1x256x256xbf16>
    %24 = vector.shape_cast %23 : vector<1x256x256xbf16> to vector<256x256xbf16>
    %cst_19 = arith.constant dense<0.000000e+00> : vector<128x256xf32>
    %25 = tpu.matmul %22, %24, %cst_19 {dimension_numbers = #tpu.dot_dimension_numbers<[1], [0], [0], [1], [0, 0, 1, 1], [], []>} : vector<128x256xbf16>, vector<256x256xbf16>, vector<128x256xf32> -> vector<128x256xf32>
    %26 = arith.addf %21, %25 : vector<128x256xf32>
    %27 = vector.extract_strided_slice %7 {offsets = [512, 0], sizes = [128, 256], strides = [1, 1]} : vector<896x256xbf16> to vector<128x256xbf16>
    %c4 = arith.constant 4 : index
    %c0_20 = arith.constant 0 : index
    %c0_21 = arith.constant 0 : index
    %28 = vector.load %arg3[%c4, %c0_20, %c0_21] : memref<7x256x256xbf16, #tpu.memory_space<vmem>>, vector<1x256x256xbf16>
    %29 = vector.shape_cast %28 : vector<1x256x256xbf16> to vector<256x256xbf16>
    %cst_22 = arith.constant dense<0.000000e+00> : vector<128x256xf32>
    %30 = tpu.matmul %27, %29, %cst_22 {dimension_numbers = #tpu.dot_dimension_numbers<[1], [0], [0], [1], [0, 0, 1, 1], [], []>} : vector<128x256xbf16>, vector<256x256xbf16>, vector<128x256xf32> -> vector<128x256xf32>
    %31 = arith.addf %26, %30 : vector<128x256xf32>
    %32 = vector.extract_strided_slice %7 {offsets = [640, 0], sizes = [128, 256], strides = [1, 1]} : vector<896x256xbf16> to vector<128x256xbf16>
    %c5 = arith.constant 5 : index
    %c0_23 = arith.constant 0 : index
    %c0_24 = arith.constant 0 : index
    %33 = vector.load %arg3[%c5, %c0_23, %c0_24] : memref<7x256x256xbf16, #tpu.memory_space<vmem>>, vector<1x256x256xbf16>
    %34 = vector.shape_cast %33 : vector<1x256x256xbf16> to vector<256x256xbf16>
    %cst_25 = arith.constant dense<0.000000e+00> : vector<128x256xf32>
    %35 = tpu.matmul %32, %34, %cst_25 {dimension_numbers = #tpu.dot_dimension_numbers<[1], [0], [0], [1], [0, 0, 1, 1], [], []>} : vector<128x256xbf16>, vector<256x256xbf16>, vector<128x256xf32> -> vector<128x256xf32>
    %36 = arith.addf %31, %35 : vector<128x256xf32>
    %37 = vector.extract_strided_slice %7 {offsets = [768, 0], sizes = [128, 256], strides = [1, 1]} : vector<896x256xbf16> to vector<128x256xbf16>
    %c6 = arith.constant 6 : index
    %c0_26 = arith.constant 0 : index
    %c0_27 = arith.constant 0 : index
    %38 = vector.load %arg3[%c6, %c0_26, %c0_27] : memref<7x256x256xbf16, #tpu.memory_space<vmem>>, vector<1x256x256xbf16>
    %39 = vector.shape_cast %38 : vector<1x256x256xbf16> to vector<256x256xbf16>
    %cst_28 = arith.constant dense<0.000000e+00> : vector<128x256xf32>
    %40 = tpu.matmul %37, %39, %cst_28 {dimension_numbers = #tpu.dot_dimension_numbers<[1], [0], [0], [1], [0, 0, 1, 1], [], []>} : vector<128x256xbf16>, vector<256x256xbf16>, vector<128x256xf32> -> vector<128x256xf32>
    %41 = arith.addf %36, %40 : vector<128x256xf32>
    %42 = vector.extract_strided_slice %0 {offsets = [0, 0], sizes = [1, 256], strides = [1, 1]} : vector<8x256xf32> to vector<1x256xf32>
    %43 = vector.broadcast %42 : vector<1x256xf32> to vector<128x256xf32>
    %44 = arith.addf %41, %43 : vector<128x256xf32>
    %cst_29 = arith.constant 0.000000e+00 : f32
    %45 = vector.broadcast %cst_29 : f32 to vector<128x256xf32>
    %46 = arith.cmpf oge, %44, %45 : vector<128x256xf32>
    %47 = vector.extract_strided_slice %0 {offsets = [3, 0], sizes = [1, 256], strides = [1, 1]} : vector<8x256xf32> to vector<1x256xf32>
    %48 = vector.broadcast %47 : vector<1x256xf32> to vector<128x256xf32>
    %49 = arith.mulf %48, %44 : vector<128x256xf32>
    %50 = arith.select %46, %44, %49 : vector<128x256xi1>, vector<128x256xf32>
    %51 = arith.truncf %50 : vector<128x256xf32> to vector<128x256xbf16>
    %c0_30 = arith.constant 0 : index
    %c0_31 = arith.constant 0 : index
    %52 = vector.load %arg4[%c0_30, %c0_31] : memref<256x256xbf16, #tpu.memory_space<vmem>>, vector<256x256xbf16>
    %cst_32 = arith.constant dense<0.000000e+00> : vector<128x256xf32>
    %53 = tpu.matmul %51, %52, %cst_32 {dimension_numbers = #tpu.dot_dimension_numbers<[1], [0], [0], [1], [0, 0, 1, 1], [], []>} : vector<128x256xbf16>, vector<256x256xbf16>, vector<128x256xf32> -> vector<128x256xf32>
    %54 = vector.extract_strided_slice %0 {offsets = [1, 0], sizes = [1, 256], strides = [1, 1]} : vector<8x256xf32> to vector<1x256xf32>
    %55 = vector.broadcast %54 : vector<1x256xf32> to vector<128x256xf32>
    %56 = arith.addf %53, %55 : vector<128x256xf32>
    %cst_33 = arith.constant 0.000000e+00 : f32
    %57 = vector.broadcast %cst_33 : f32 to vector<128x256xf32>
    %58 = arith.cmpf oge, %56, %57 : vector<128x256xf32>
    %59 = vector.extract_strided_slice %0 {offsets = [4, 0], sizes = [1, 256], strides = [1, 1]} : vector<8x256xf32> to vector<1x256xf32>
    %60 = vector.broadcast %59 : vector<1x256xf32> to vector<128x256xf32>
    %61 = arith.mulf %60, %56 : vector<128x256xf32>
    %62 = arith.select %58, %56, %61 : vector<128x256xi1>, vector<128x256xf32>
    %63 = arith.truncf %62 : vector<128x256xf32> to vector<128x256xbf16>
    %c0_34 = arith.constant 0 : index
    %c0_35 = arith.constant 0 : index
    %64 = vector.load %arg5[%c0_34, %c0_35] : memref<256x256xbf16, #tpu.memory_space<vmem>>, vector<256x256xbf16>
    %cst_36 = arith.constant dense<0.000000e+00> : vector<128x256xf32>
    %65 = tpu.matmul %63, %64, %cst_36 {dimension_numbers = #tpu.dot_dimension_numbers<[1], [0], [0], [1], [0, 0, 1, 1], [], []>} : vector<128x256xbf16>, vector<256x256xbf16>, vector<128x256xf32> -> vector<128x256xf32>
    %66 = vector.extract_strided_slice %0 {offsets = [2, 0], sizes = [1, 256], strides = [1, 1]} : vector<8x256xf32> to vector<1x256xf32>
    %67 = vector.broadcast %66 : vector<1x256xf32> to vector<128x256xf32>
    %68 = arith.addf %65, %67 : vector<128x256xf32>
    %cst_37 = arith.constant 0.000000e+00 : f32
    %69 = vector.broadcast %cst_37 : f32 to vector<128x256xf32>
    %70 = arith.cmpf oge, %68, %69 : vector<128x256xf32>
    %71 = vector.extract_strided_slice %0 {offsets = [5, 0], sizes = [1, 256], strides = [1, 1]} : vector<8x256xf32> to vector<1x256xf32>
    %72 = vector.broadcast %71 : vector<1x256xf32> to vector<128x256xf32>
    %73 = arith.mulf %72, %68 : vector<128x256xf32>
    %74 = arith.select %70, %68, %73 : vector<128x256xi1>, vector<128x256xf32>
    %75 = vector.extract_strided_slice %0 {offsets = [7, 0], sizes = [1, 256], strides = [1, 1]} : vector<8x256xf32> to vector<1x256xf32>
    %76 = vector.broadcast %75 : vector<1x256xf32> to vector<128x256xf32>
    %77 = arith.mulf %74, %76 : vector<128x256xf32>
    %cst_38 = arith.constant dense<0.000000e+00> : vector<128xf32>
    %78 = vector.multi_reduction <add>, %77, %cst_38 [1] : vector<128x256xf32> to vector<128xf32>
    %79 = vector.shape_cast %78 : vector<128xf32> to vector<128x1xf32>
    %80 = vector.extract_strided_slice %0 {offsets = [6, 0], sizes = [1, 1], strides = [1, 1]} : vector<8x256xf32> to vector<1x1xf32>
    %81 = vector.broadcast %80 : vector<1x1xf32> to vector<128x1xf32>
    %82 = arith.addf %79, %81 : vector<128x1xf32>
    %c0_39 = arith.constant 0 : index
    %c0_40 = arith.constant 0 : index
    %83 = vector.load %arg7[%c0_39, %c0_40] : memref<128x1xf32, #tpu.memory_space<vmem>>, vector<128x1xf32>
    tpu.vector_store %arg7[%c0_39, %c0_40], %82 {strides = array<i32>} : memref<128x1xf32, #tpu.memory_space<vmem>>, vector<128x1xf32>,
    return
  }
  func.func @transform_0(%arg0: i32) -> (i32, i32, i32) {
    %c0_i32 = arith.constant 0 : i32
    %c0_i32_0 = arith.constant 0 : i32
    %c0_i32_1 = arith.constant 0 : i32
    return %arg0, %c0_i32, %c0_i32_0 : i32, i32, i32
  }
  func.func @transform_1(%arg0: i32) -> (i32, i32) {
    %c0_i32 = arith.constant 0 : i32
    %c0_i32_0 = arith.constant 0 : i32
    %c0_i32_1 = arith.constant 0 : i32
    return %c0_i32, %c0_i32_0 : i32, i32
  }
  func.func @transform_2(%arg0: i32) -> (i32, i32, i32) {
    %c0_i32 = arith.constant 0 : i32
    %c0_i32_0 = arith.constant 0 : i32
    %c0_i32_1 = arith.constant 0 : i32
    %c0_i32_2 = arith.constant 0 : i32
    return %c0_i32, %c0_i32_0, %c0_i32_1 : i32, i32, i32
  }
  func.func @transform_3(%arg0: i32) -> (i32, i32) {
    %c0_i32 = arith.constant 0 : i32
    %c0_i32_0 = arith.constant 0 : i32
    %c0_i32_1 = arith.constant 0 : i32
    return %c0_i32, %c0_i32_0 : i32, i32
  }
  func.func @transform_4(%arg0: i32) -> (i32, i32) {
    %c0_i32 = arith.constant 0 : i32
    %c0_i32_0 = arith.constant 0 : i32
    %c0_i32_1 = arith.constant 0 : i32
    return %c0_i32, %c0_i32_0 : i32, i32
  }
  func.func @transform_5(%arg0: i32) -> (i32, i32) {
    %c0_i32 = arith.constant 0 : i32
    %c0_i32_0 = arith.constant 0 : i32
    %c0_i32_1 = arith.constant 0 : i32
    return %c0_i32, %c0_i32_0 : i32, i32
  }
  func.func @transform_6(%arg0: i32) -> (i32, i32) {
    %c0_i32 = arith.constant 0 : i32
    %c0_i32_0 = arith.constant 0 : i32
    return %arg0, %c0_i32 : i32, i32
  }
}

</mosaic_0001>

<bundles_post_ra>
// kernel: conv_critic_forward.1
= control target key start
LH: loop header
LB: loop body
LE: loop exit
PB: predicated region body
PF: predicated region fallthrough
CT: control target
= control target key end

     0   :  { %11 = vsyncpa [#allocation3], 0  ;;  %s8505_s0 = inlined_call_operand.vmem [shape: bf16[2,896,24], index: 0, kind: input, shape index: {}]   ;;  %s8506_s1 = inlined_call_operand.vmem [shape: bf16[24,256], index: 1, kind: input, shape index: {}]   ;;  %s8507_s2 = inlined_call_operand.vmem [shape: bf16[7,256,256], index: 2, kind: input, shape index: {}]   ;;  %s8508_s3 = inlined_call_operand.hbm [shape: bf16[256,256], index: 3, kind: input, shape index: {}]   ;;  %s8509_s4 = inlined_call_operand.hbm [shape: bf16[256,256], index: 4, kind: input, shape index: {}]   ;;  %s8510_s5 = inlined_call_operand.hbm [shape: f32[8,256], index: 5, kind: input, shape index: {}]   ;;  %s8511_s6 = inlined_call_operand.vmem [shape: f32[256,1], index: 6, kind: output, shape index: {}]  }
   0x1   :  { %12 = vsyncpa [#allocation5], 0  ;;  %s6851_s21 = smov 0  }
   0x2 LB: > { %s6857_s22 = sadd.s32 4294967295, %s6808_s21   ;;  %p5338_p0 = scmp.ge.s32.totalorder %s6808_s21, 1  ;;  %s6808_s21 = sphi %s6851_s21, %s18_s21  }
   0x3   : > { %p180_p1 = scmp.lt.s32.totalorder %s6808_s21, 3  ;;  %p8512_p2 = scmp.eq.s32.totalorder %s6857_s22, 0 }
   0x4   : > { %s6810_s24 = smov [#allocation4]   ;;  %s6811_s26 = smov [#allocation2]  }
   0x5   : > { %p6862_p3 = pnand %p5338_p0, %p180_p1  ;;  %s211_s25 = sshll.u32 %s6810_s24, 4  ;;  %s212_s25 = int_to_ptr.vmem [resolvable:$true] %s211_s25 }
   0x6   : > { %s198_s27 = sshll.u32 %s6811_s26, 4  ;;  %s6812_s29 = smov [#allocation6]   ;;  %s6874_s27 = int_to_ptr.vmem [resolvable:$true] %s198_s27 }
   0x7   : > { %s8514_s23 = scalar_select %p6862_p3, 1, 0 }
   0x8   : > { %p6186_p4 = pneg %p6862_p3  ;;  %s225_s30 = sshll.u32 %s6812_s29, 4  ;;  %s6876_s30 = int_to_ptr.vmem [resolvable:$true] %s225_s30 }
   0x9   : > { %s6710_s9 = scalar_lea.hbm %s8509_s4, 4096 }
   0xa   : > { %p6870_p5 = pnand %p8512_p2, %p6186_p4  ;;  %p6711_p6 = scmp.ne.s32.totalorder %s8509_s4, %s6710_s9 }
   0xb   : > { %p6717_p10 = scmp.lt.u32.totalorder %s6710_s9, %s8509_s4 }
   0xc   : > { %p6886_p7 = pneg %p6870_p5 }
   0xe   : > { %p6713_p8 = pnand %p6886_p7, %p6711_p6 }
  0x10   : > { %p6714_p9 = pneg %p6713_p8 }
  0x12   : > { %p6719_p11 = pnand %p6717_p10, %p6714_p9 }
  0x14   : > { %6722 = shalt.err (!%p6719_p11)
}
  0x15   : > { %s6723_s15 = scalar_lea.vmem %s212_s25, 4096  ;;  %p6731_p1 = scmp.lt.s32.totalorder %s212_s25, %s212_s25 }
  0x16   : > { %p6724_p12 = scmp.ne.s32.totalorder %s212_s25, %s6723_s15  ;;  %p6732_p4 = scmp.lt.s32.totalorder %s6723_s15, %s6723_s15 }
  0x18   : > { %p6726_p13 = pnand %p6724_p12, %p6886_p7  ;;  %p6733_p2 = por %p6732_p4, %p6731_p1 }
  0x1a   : > { %p6727_p0 = pneg %p6726_p13 }
  0x1c   : > { %p6734_p3 = pnand %p6733_p2, %p6727_p0 }
  0x1e   : > { %6737 = shalt.err (!%p6734_p3)
}
  0x1f   : > { %s6813_s16 = smov 128   ;;  %s6814_s17 = smov 8  }
  0x20   : > { %6192 = dma.hbm_to_vmem [thread:$0]  (!%p6870_p5), %s8509_s4, 4096, %s212_s25, [#allocation5], %s6813_s16, %s6813_s16, %s6814_s17  }
  0x21   : > { %s6738_s26 = scalar_lea.hbm %s8508_s3, 4096 }
  0x22   : > { %p6739_p6 = scmp.ne.s32.totalorder %s8508_s3, %s6738_s26  ;;  %p6745_p8 = scmp.lt.u32.totalorder %s6738_s26, %s8508_s3 }
  0x24   : > { %p6741_p2 = pnand %p6739_p6, %p6886_p7 }
  0x26   : > { %p6742_p3 = pneg %p6741_p2 }
  0x28   : > { %p6747_p9 = pnand %p6745_p8, %p6742_p3 }
  0x2a   : > { %6750 = shalt.err (!%p6747_p9)
}
  0x2b   : > { %s6751_s25 = scalar_lea.vmem %s6874_s27, 4096  ;;  %p6759_p13 = scmp.lt.s32.totalorder %s6874_s27, %s6874_s27 }
  0x2c   : > { %p6752_p10 = scmp.ne.s32.totalorder %s6874_s27, %s6751_s25  ;;  %p6760_p0 = scmp.lt.s32.totalorder %s6751_s25, %s6751_s25 }
  0x2e   : > { %p6754_p11 = pnand %p6752_p10, %p6886_p7  ;;  %p6761_p1 = por %p6760_p0, %p6759_p13 }
  0x30   : > { %p6755_p12 = pneg %p6754_p11 }
  0x32   : > { %p6762_p4 = pnand %p6761_p1, %p6755_p12 }
  0x34   : > { %6765 = shalt.err (!%p6762_p4)
}
  0x35   : > { %6189 = dma.hbm_to_vmem [thread:$0]  (!%p6870_p5), %s8508_s3, 4096, %s6874_s27, [#allocation3], %s6813_s16, %s6813_s16, %s6814_s17  }
  0x36   : > { %s6766_s15 = scalar_lea.hbm %s8510_s5, 256 }
  0x37   : > { %p6767_p6 = scmp.ne.s32.totalorder %s8510_s5, %s6766_s15  ;;  %p6773_p8 = scmp.lt.u32.totalorder %s6766_s15, %s8510_s5 }
  0x39   : > { %p6769_p2 = pnand %p6767_p6, %p6886_p7 }
  0x3b   : > { %p6770_p3 = pneg %p6769_p2 }
  0x3d   : > { %p6775_p9 = pnand %p6773_p8, %p6770_p3 }
  0x3f   : > { %6778 = shalt.err (!%p6775_p9)
}
  0x40   : > { %s6779_s27 = scalar_lea.vmem %s6876_s30, 256  ;;  %p6787_p13 = scmp.lt.s32.totalorder %s6876_s30, %s6876_s30 }
  0x41   : > { %p6780_p10 = scmp.ne.s32.totalorder %s6876_s30, %s6779_s27  ;;  %p6788_p0 = scmp.lt.s32.totalorder %s6779_s27, %s6779_s27 }
  0x43   : > { %p6782_p11 = pnand %p6780_p10, %p6886_p7  ;;  %p6789_p1 = por %p6788_p0, %p6787_p13 }
  0x45   : > { %p6783_p12 = pneg %p6782_p11 }
  0x47   : > { %p6790_p4 = pnand %p6789_p1, %p6783_p12 }
  0x49   : > { %6793 = shalt.err (!%p6790_p4)
}
  0x4a   : > { %6195 = dma.hbm_to_vmem [thread:$0]  (!%p6870_p5), %s8510_s5, 256, %s6876_s30, [#allocation5]  }
  0x4b   : > { %p8517_p6 = scmp.ne.s32.totalorder %s8514_s23, 0 }
  0x4c   : > { %p8518_p2 = scmp.eq.s32.totalorder (!%p8517_p6), %s6857_s22, 0 }
  0x4d   : > { %246 = sbr.rel (%p8517_p6) target bundleno = 1636 (0x664), region = 44 }
  0x54   : > { %6799 = dma.done.wait (%p8518_p2), [#allocation3], 4096   ;;  %p8519_p7 = pmov %p8518_p2 }
  0x55   : > { %p8520_p3 = pmov %p8518_p2 }
  0x56   : > { %6801 = vsyncadd (%p8519_p7), [#allocation3], 4294963200 }
  0x57   : > { %6803 = dma.done.wait (%p8520_p3), [#allocation5], 4352   ;;  %p8521_p8 = pmov %p8518_p2 }
  0x58   : > { %p284_p9 = scmp.lt.s32.totalorder %s6857_s22, 1  ;;  %v6815_v0 = vmov 0   ;;  %v6216_v1 = vld [vmem:[%s8506_s1 + $0x4] ss:$8 sps:$4 sm:$0xff]   ;;  %v6218_v2 = vld [vmem:[%s8506_s1] ss:$8 sps:$4 sm:$0xff]  }
  0x59   : > { %6805 = vsyncadd (%p8521_p8), [#allocation5], 4294962944  ;;  %916 = vmatprep.mubr.bf16.mxu0 %v6815_v0  ;;  %v412_v3 = vld [vmem:[%s8506_s1 + $0x10] sm:$0xff]  ;;  %vm877_vm0 = vcmask 1043456   ;;  %884 = vmatprep.subr.bf16.mxu0 %v6216_v1  ;;  %vm708_vm1 = vcmask 195584   ;;  %s5348_s8 = sshll.u32 %s6857_s22, 4 }
  0x5a   : > { %s285_s23 = scalar_select %p284_p9, %s6857_s22, 1  ;;  %v5409_v4 = vcombine.high %v412_v3, %v412_v3  ;;  %v5408_v5 = vcombine.low %v412_v3, %v412_v3  ;;  %885 = vmatpush1.bf16.msra.mxu0 %v6218_v2  ;;  %v6241_v19 = vld [vmem:[%s8507_s2 + $0x104] ss:$8 sps:$4 sm:$0xff]   ;;  %v6243_v21 = vld [vmem:[%s8507_s2 + $0x100] ss:$8 sps:$4 sm:$0xff]  }
  0x5b   : > { %2038 = vmatprep.subr.bf16.mxu1 %v6241_v19  ;;  %v6245_v22 = vld [vmem:[%s8507_s2 + $0x114] ss:$8 sps:$4 sm:$0xff]   ;;  %v6247_v23 = vld [vmem:[%s8507_s2 + $0x110] ss:$8 sps:$4 sm:$0xff]   ;;  %v6248_v24 = vld [vmem:[%s8507_s2 + $0x124] ss:$8 sps:$4 sm:$0xff]  }
  0x5c   : > { %s6173_s28 = smul.u32 448, %s285_s23  ;;  %5410 = vmatprep.subr.msk.bf16.mxu0 %vm877_vm0, %v5409_v4  ;;  %v879_v6 = vsel %vm877_vm0, %v5408_v5, 0  ;;  %2039 = vmatpush1.bf16.msra.mxu1 %v6243_v21  ;;  %v6250_v26 = vld [vmem:[%s8507_s2 + $0x120] ss:$8 sps:$4 sm:$0xff]   ;;  %v6252_v27 = vld [vmem:[%s8507_s2 + $0x134] ss:$8 sps:$4 sm:$0xff]  }
  0x5d   : > { %2040 = vmatprep.subr.bf16.mxu1 %v6245_v22  ;;  %v6254_v28 = vld [vmem:[%s8507_s2 + $0x130] ss:$8 sps:$4 sm:$0xff]   ;;  %v6255_v29 = vld [vmem:[%s8507_s2 + $0x144] ss:$8 sps:$4 sm:$0xff]   ;;  %v6257_v31 = vld [vmem:[%s8507_s2 + $0x140] ss:$8 sps:$4 sm:$0xff]  }
  0x5e   : > { %s6967_s7 = scalar_lea.vmem %s8505_s0, %s6173_s28  ;;  %887 = vmatpush1.bf16.msra.mxu0 %v879_v6  ;;  %v6259_v32 = vld [vmem:[%s8507_s2 + $0x154] ss:$8 sps:$4 sm:$0xff]   ;;  %v6261_v33 = vld [vmem:[%s8507_s2 + $0x150] ss:$8 sps:$4 sm:$0xff]   ;;  %v6262_v34 = vld [vmem:[%s8507_s2 + $0x164] ss:$8 sps:$4 sm:$0xff]  }
  0x5f   : > { %v6221_v7 = vld [vmem:[%s6967_s7] sm:$0xff]   ;;  %v6222_v8 = vld [vmem:[%s6967_s7 + $0x8] sm:$0xff]   ;;  %v6223_v9 = vld [vmem:[%s6967_s7 + $0x10] sm:$0xff]   ;;  %p290_p5 = scmp.lt.s32.totalorder %s5348_s8, 31 }
  0x60   : > { %v6224_v10 = vld [vmem:[%s6967_s7 + $0x18] sm:$0xff]   ;;  %v6225_v11 = vld [vmem:[%s6967_s7 + $0x20] sm:$0xff]   ;;  %v6226_v12 = vld [vmem:[%s6967_s7 + $0x28] sm:$0xff]   ;;  %2041 = vmatpush1.bf16.msra.mxu1 %v6247_v23 }
  0x61   : > { %5411 = vmatmul.mubr.msk.bf16.vlgmr.msra.gmra.mrb[0].mxu0 %vm708_vm1, %v6221_v7  ;;  %v6227_v13 = vld [vmem:[%s6967_s7 + $0x30] sm:$0xff]   ;;  %v6228_v14 = vld [vmem:[%s6967_s7 + $0x38] sm:$0xff]   ;;  %v6229_v15 = vld [vmem:[%s6967_s7 + $0x40] sm:$0xff]   ;;  %2042 = vmatprep.subr.bf16.mxu1 %v6248_v24  ;;  %s8523_s8 = smov (!%p290_p5, %s5348_s8), 31 }
  0x62   : > { %926 = vmatprep.mubr.bf16.mxu0 %v6815_v0  ;;  %v6230_v16 = vld [vmem:[%s6967_s7 + $0x48] sm:$0xff]   ;;  %v6231_v17 = vld [vmem:[%s6967_s7 + $0x50] sm:$0xff]   ;;  %v6232_v18 = vld [vmem:[%s6967_s7 + $0x58] sm:$0xff]   ;;  %s5349_s9 = sshll.u32 %s8523_s8, 3 }
  0x63   : > { %v6233_v20 = vld [vmem:[%s6967_s7 + $0x60] sm:$0xff]   ;;  %v6234_v25 = vld [vmem:[%s6967_s7 + $0x68] sm:$0xff]   ;;  %v6235_v30 = vld [vmem:[%s6967_s7 + $0x70] sm:$0xff]   ;;  %s8468_s11 = scalar_lea.vmem %s8511_s6, %s5349_s9 }
  0x64   : > { %2043 = vmatpush1.bf16.msra.mxu1 %v6250_v26  ;;  %v6236_v35 = vld [vmem:[%s6967_s7 + $0x78] sm:$0xff]   ;;  %v6264_v36 = vld [vmem:[%s8507_s2 + $0x160] ss:$8 sps:$4 sm:$0xff]   ;;  %v6269_v39 = vld [vmem:[%s8507_s2 + $0x184] ss:$8 sps:$4 sm:$0xff]  }
  0x65   : > { %2044 = vmatprep.subr.bf16.mxu1 %v6252_v27  ;;  %v6266_v37 = vld [vmem:[%s8507_s2 + $0x174] ss:$8 sps:$4 sm:$0xff]   ;;  %v6268_v38 = vld [vmem:[%s8507_s2 + $0x170] ss:$8 sps:$4 sm:$0xff]   ;;  %v6237_v40 = vld [vmem:[%s6967_s7 + $0x80] sm:$0xff]  }
  0x66   : > { %v6271_v41 = vld [vmem:[%s8507_s2 + $0x180] ss:$8 sps:$4 sm:$0xff]   ;;  %v6273_v42 = vld [vmem:[%s8507_s2 + $0x194] ss:$8 sps:$4 sm:$0xff]   ;;  %v6275_v43 = vld [vmem:[%s8507_s2 + $0x190] ss:$8 sps:$4 sm:$0xff]  }
  0x67   : > { %v6276_v44 = vld [vmem:[%s8507_s2 + $0x1a4] ss:$8 sps:$4 sm:$0xff]   ;;  %v6278_v46 = vld [vmem:[%s8507_s2 + $0x1a0] ss:$8 sps:$4 sm:$0xff]   ;;  %v6280_v47 = vld [vmem:[%s8507_s2 + $0x1b4] ss:$8 sps:$4 sm:$0xff]  }
  0x68   : > { %2045 = vmatpush1.bf16.msra.mxu1 %v6254_v28  ;;  %v6238_v45 = vld [vmem:[%s6967_s7 + $0x88] sm:$0xff]   ;;  %v6282_v48 = vld [vmem:[%s8507_s2 + $0x1b0] ss:$8 sps:$4 sm:$0xff]   ;;  %v6287_v52 = vld [vmem:[%s8507_s2 + $0x1d4] ss:$8 sps:$4 sm:$0xff]  }
  0x69   : > { %5412 = vmatmul.mubr.msk.bf16.gmra.mrb[4].mxu0 %vm708_vm1, %v6222_v8  ;;  %2046 = vmatprep.subr.bf16.mxu1 %v6255_v29  ;;  %v6283_v49 = vld [vmem:[%s8507_s2 + $0x1c4] ss:$8 sps:$4 sm:$0xff]   ;;  %v6239_v50 = vld [vmem:[%s6967_s7 + $0x90] sm:$0xff]   ;;  %v6285_v51 = vld [vmem:[%s8507_s2 + $0x1c0] ss:$8 sps:$4 sm:$0xff]  }
  0x6a   : > { %936 = vmatprep.mubr.bf16.mxu0 %v6815_v0  ;;  %v6289_v53 = vld [vmem:[%s8507_s2 + $0x1d0] ss:$8 sps:$4 sm:$0xff]   ;;  %v6290_v54 = vld [vmem:[%s8507_s2 + $0x1e4] ss:$8 sps:$4 sm:$0xff]   ;;  %v6292_v55 = vld [vmem:[%s8507_s2 + $0x1e0] ss:$8 sps:$4 sm:$0xff]  }
  0x6b   : > { %v6240_v56 = vld [vmem:[%s6967_s7 + $0x98] sm:$0xff]   ;;  %v6299_v59 = vld [vmem:[%s8507_s2 + $0x4] ss:$8 sps:$4 sm:$0xff]   ;;  %v6258_v62 = vld [vmem:[%s6967_s7 + $0xb0] sm:$0xff]  }
  0x6c   : > { %2047 = vmatpush1.bf16.msra.mxu1 %v6257_v31  ;;  %v6294_v57 = vld [vmem:[%s8507_s2 + $0x1f4] ss:$8 sps:$4 sm:$0xff]   ;;  %v6296_v58 = vld [vmem:[%s8507_s2 + $0x1f0] ss:$8 sps:$4 sm:$0xff]   ;;  %v6244_v60 = vld [vmem:[%s6967_s7 + $0xa0] sm:$0xff]  }
  0x6d   : > { %2048 = vmatprep.subr.bf16.mxu1 %v6259_v32  ;;  %v6251_v61 = vld [vmem:[%s6967_s7 + $0xa8] sm:$0xff]   ;;  %v6265_v63 = vld [vmem:[%s6967_s7 + $0xb8] sm:$0xff]   ;;  %v6272_v1 = vld [vmem:[%s6967_s7 + $0xc0] sm:$0xff]  }
  0x6e   : > { %v6279_v2 = vld [vmem:[%s6967_s7 + $0xc8] sm:$0xff]   ;;  %v6286_v3 = vld [vmem:[%s6967_s7 + $0xd0] sm:$0xff]   ;;  %v6293_v6 = vld [vmem:[%s6967_s7 + $0xd8] sm:$0xff]  }
  0x6f   : > { %v6307_v28 = vld [vmem:[%s6967_s7 + $0xe8] sm:$0xff]  }
  0x70   : > { %2049 = vmatpush1.bf16.msra.mxu1 %v6261_v33 }
  0x71   : > { %5413 = vmatmul.mubr.msk.bf16.gmra.mrb[8].mxu0 %vm708_vm1, %v6223_v9  ;;  %2050 = vmatprep.subr.bf16.mxu1 %v6262_v34 }
  0x72   : > { %946 = vmatprep.mubr.bf16.mxu0 %v6815_v0 }
  0x74   : > { %2051 = vmatpush1.bf16.msra.mxu1 %v6264_v36 }
  0x75   : > { %2052 = vmatprep.subr.bf16.mxu1 %v6266_v37 }
  0x78   : > { %2053 = vmatpush1.bf16.msra.mxu1 %v6268_v38 }
  0x79   : > { %5414 = vmatmul.mubr.msk.bf16.gmra.mrb[12].mxu0 %vm708_vm1, %v6224_v10  ;;  %2054 = vmatprep.subr.bf16.mxu1 %v6269_v39  ;;  %v6314_v39 = vld [vmem:[%s6967_s7 + $0xf0] sm:$0xff]  }
  0x7a   : > { %956 = vmatprep.mubr.bf16.mxu0 %v6815_v0 }
  0x7c   : > { %2055 = vmatpush1.bf16.msra.mxu1 %v6271_v41 }
  0x7d   : > { %2056 = vmatprep.subr.bf16.mxu1 %v6273_v42 }
  0x80   : > { %2057 = vmatpush1.bf16.msra.mxu1 %v6275_v43 }
  0x81   : > { %5415 = vmatmul.mubr.msk.bf16.gmra.mrb[16].mxu0 %vm708_vm1, %v6225_v11  ;;  %2058 = vmatprep.subr.bf16.mxu1 %v6276_v44 }
  0x82   : > { %966 = vmatprep.mubr.bf16.mxu0 %v6815_v0 }
  0x84   : > { %2059 = vmatpush1.bf16.msra.mxu1 %v6278_v46 }
  0x85   : > { %2060 = vmatprep.subr.bf16.mxu1 %v6280_v47 }
  0x88   : > { %2061 = vmatpush1.bf16.msra.mxu1 %v6282_v48 }
  0x89   : > { %5416 = vmatmul.mubr.msk.bf16.gmra.mrb[20].mxu0 %vm708_vm1, %v6226_v12  ;;  %2062 = vmatprep.subr.bf16.mxu1 %v6283_v49 }
  0x8a   : > { %976 = vmatprep.mubr.bf16.mxu0 %v6815_v0 }
  0x8c   : > { %2063 = vmatpush1.bf16.msra.mxu1 %v6285_v51 }
  0x8d   : > { %2064 = vmatprep.subr.bf16.mxu1 %v6287_v52 }
  0x90   : > { %2065 = vmatpush1.bf16.msra.mxu1 %v6289_v53 }
  0x91   : > { %5417 = vmatmul.mubr.msk.bf16.gmra.mrb[24].mxu0 %vm708_vm1, %v6227_v13  ;;  %2066 = vmatprep.subr.bf16.mxu1 %v6290_v54 }
  0x92   : > { %986 = vmatprep.mubr.bf16.mxu0 %v6815_v0 }
  0x94   : > { %2067 = vmatpush1.bf16.msra.mxu1 %v6292_v55 }
  0x95   : > { %2068 = vmatprep.subr.bf16.mxu1 %v6294_v57 }
  0x98   : > { %2069 = vmatpush1.bf16.msra.mxu1 %v6296_v58 }
  0x99   : > { %5418 = vmatmul.mubr.msk.bf16.gmra.mrb[28].mxu0 %vm708_vm1, %v6228_v14  ;;  %2311 = vmatprep.subr.bf16.mxu1 %v6299_v59 }
  0x9a   : > { %996 = vmatprep.mubr.bf16.mxu0 %v6815_v0 }
  0xa1   : > { %5419 = vmatmul.mubr.msk.bf16.gmra.mrb[32].mxu0 %vm708_vm1, %v6229_v15 }
  0xa2   : > { %1006 = vmatprep.mubr.bf16.mxu0 %v6815_v0 }
  0xa9   : > { %5420 = vmatmul.mubr.msk.bf16.gmra.mrb[36].mxu0 %vm708_vm1, %v6230_v16 }
  0xaa   : > { %1016 = vmatprep.mubr.bf16.mxu0 %v6815_v0 }
  0xb1   : > { %5421 = vmatmul.mubr.msk.bf16.gmra.mrb[40].mxu0 %vm708_vm1, %v6231_v17  ;;  %v6300_v17 = vld [vmem:[%s6967_s7 + $0xe0] sm:$0xff]  }
  0xb2   : > { %1026 = vmatprep.mubr.bf16.mxu0 %v6815_v0 }
  0xb9   : > { %5422 = vmatmul.mubr.msk.bf16.gmra.mrb[44].mxu0 %vm708_vm1, %v6232_v18 }
  0xba   : > { %1036 = vmatprep.mubr.bf16.mxu0 %v6815_v0 }
  0xc1   : > { %5423 = vmatmul.mubr.msk.bf16.gmra.mrb[48].mxu0 %vm708_vm1, %v6233_v20 }
  0xc2   : > { %1046 = vmatprep.mubr.bf16.mxu0 %v6815_v0 }
  0xc9   : > { %5424 = vmatmul.mubr.msk.bf16.gmra.mrb[52].mxu0 %vm708_vm1, %v6234_v25 }
  0xca   : > { %1056 = vmatprep.mubr.bf16.mxu0 %v6815_v0 }
  0xd1   : > { %5425 = vmatmul.mubr.msk.bf16.gmra.mrb[56].mxu0 %vm708_vm1, %v6235_v30 }
  0xd2   : > { %1066 = vmatprep.mubr.bf16.mxu0 %v6815_v0 }
  0xd9   : > { %5426 = vmatmul.mubr.msk.bf16.gmra.mrb[60].mxu0 %vm708_vm1, %v6236_v35 }
  0xda   : > { %1076 = vmatprep.mubr.bf16.mxu0 %v6815_v0 }
  0xe1   : > { %5427 = vmatmul.mubr.msk.bf16.gmra.mrb[64].mxu0 %vm708_vm1, %v6237_v40 }
  0xe2   : > { %1086 = vmatprep.mubr.bf16.mxu0 %v6815_v0 }
  0xe9   : > { %5428 = vmatmul.mubr.msk.bf16.gmra.mrb[68].mxu0 %vm708_vm1, %v6238_v45 }
  0xea   : > { %1096 = vmatprep.mubr.bf16.mxu0 %v6815_v0 }
  0xf1   : > { %5429 = vmatmul.mubr.msk.bf16.gmra.mrb[72].mxu0 %vm708_vm1, %v6239_v50  ;;  %v6321_v50 = vld [vmem:[%s6967_s7 + $0xf8] sm:$0xff]  }
  0xf2   : > { %1106 = vmatprep.mubr.bf16.mxu0 %v6815_v0 }
  0xf9   : > { %5430 = vmatmul.mubr.msk.bf16.gmra.mrb[76].mxu0 %vm708_vm1, %v6240_v56 }
  0xfa   : > { %1116 = vmatprep.mubr.bf16.mxu0 %v6815_v0 }
 0x101   : > { %5431 = vmatmul.mubr.msk.bf16.gmra.mrb[80].mxu0 %vm708_vm1, %v6244_v60 }
 0x102   : > { %1126 = vmatprep.mubr.bf16.mxu0 %v6815_v0 }
 0x109   : > { %5432 = vmatmul.mubr.msk.bf16.gmra.mrb[84].mxu0 %vm708_vm1, %v6251_v61  ;;  %v6328_v61 = vld [vmem:[%s6967_s7 + $0x100] sm:$0xff]  }
 0x10a   : > { %1136 = vmatprep.mubr.bf16.mxu0 %v6815_v0 }
 0x111   : > { %5433 = vmatmul.mubr.msk.bf16.gmra.mrb[88].mxu0 %vm708_vm1, %v6258_v62 }
 0x112   : > { %1146 = vmatprep.mubr.bf16.mxu0 %v6815_v0 }
 0x119   : > { %5434 = vmatmul.mubr.msk.bf16.gmra.mrb[92].mxu0 %vm708_vm1, %v6265_v63 }
 0x11a   : > { %1156 = vmatprep.mubr.bf16.mxu0 %v6815_v0 }
 0x121   : > { %5435 = vmatmul.mubr.msk.bf16.gmra.mrb[96].mxu0 %vm708_vm1, %v6272_v1 }
 0x122   : > { %1166 = vmatprep.mubr.bf16.mxu0 %v6815_v0 }
 0x129   : > { %5436 = vmatmul.mubr.msk.bf16.gmra.mrb[100].mxu0 %vm708_vm1, %v6279_v2 }
 0x12a   : > { %1176 = vmatprep.mubr.bf16.mxu0 %v6815_v0 }
 0x131   : > { %5437 = vmatmul.mubr.msk.bf16.gmra.mrb[104].mxu0 %vm708_vm1, %v6286_v3 }
 0x132   : > { %1186 = vmatprep.mubr.bf16.mxu0 %v6815_v0 }
 0x134   : > { %v918_v4 = vpop.f32.mrb[0].mxu0 }
 0x135   : > { %v920_v5 = vpop.f32.mrb[1].mxu0  ;;  %v1477_v8 = vmax.f32 %v918_v4, 0.0 }
 0x136   : > { %v922_v7 = vpop.f32.mrb[2].mxu0  ;;  %v1478_v11 = vmax.f32 %v920_v5, 0.0 }
 0x137   : > { %v1479_v9 = vmax.f32 %v922_v7, 0.0  ;;  %v924_v10 = vpop.f32.mrb[3].mxu0 }
 0x138   : > { %v1480_v12 = vmax.f32 %v924_v10, 0.0 }
 0x139   : > { %v7156_v13 = vpack.c.bf16 %v1479_v9, %v1477_v8  ;;  %5438 = vmatmul.mubr.msk.bf16.gmra.mrb[108].mxu0 %vm708_vm1, %v6293_v6  ;;  %v6335_v9 = vld [vmem:[%s6967_s7 + $0x108] sm:$0xff]  }
 0x13a   : > { %1196 = vmatprep.mubr.bf16.mxu0 %v6815_v0  ;;  %v7160_v14 = vpack.c.bf16 %v1480_v12, %v1478_v11 }
 0x13c   : > { %v928_v15 = vpop.f32.mrb[4].mxu0 }
 0x13d   : > { %v930_v16 = vpop.f32.mrb[5].mxu0  ;;  %v1481_v19 = vmax.f32 %v928_v15, 0.0 }
 0x13e   : > { %v932_v18 = vpop.f32.mrb[6].mxu0  ;;  %v1482_v22 = vmax.f32 %v930_v16, 0.0 }
 0x13f   : > { %v1483_v20 = vmax.f32 %v932_v18, 0.0  ;;  %v934_v21 = vpop.f32.mrb[7].mxu0 }
 0x140   : > { %v1484_v23 = vmax.f32 %v934_v21, 0.0 }
 0x141   : > { %5439 = vmatmul.mubr.msk.bf16.gmra.mrb[112].mxu0 %vm708_vm1, %v6300_v17  ;;  %v7164_v24 = vpack.c.bf16 %v1483_v20, %v1481_v19 }
 0x142   : > { %1206 = vmatprep.mubr.bf16.mxu0 %v6815_v0  ;;  %v7167_v25 = vpack.c.bf16 %v1484_v23, %v1482_v22  ;;  %v6342_v22 = vld [vmem:[%s6967_s7 + $0x110] sm:$0xff]  }
 0x144   : > { %v938_v26 = vpop.f32.mrb[8].mxu0 }
 0x145   : > { %v940_v27 = vpop.f32.mrb[9].mxu0  ;;  %v1485_v30 = vmax.f32 %v938_v26, 0.0 }
 0x146   : > { %v942_v29 = vpop.f32.mrb[10].mxu0  ;;  %v1486_v33 = vmax.f32 %v940_v27, 0.0 }
 0x147   : > { %v1487_v31 = vmax.f32 %v942_v29, 0.0  ;;  %v944_v32 = vpop.f32.mrb[11].mxu0 }
 0x148   : > { %v1488_v34 = vmax.f32 %v944_v32, 0.0 }
 0x149   : > { %5440 = vmatmul.mubr.msk.bf16.gmra.mrb[116].mxu0 %vm708_vm1, %v6307_v28  ;;  %v7171_v35 = vpack.c.bf16 %v1487_v31, %v1485_v30 }
 0x14a   : > { %1216 = vmatprep.mubr.bf16.mxu0 %v6815_v0  ;;  %v7174_v36 = vpack.c.bf16 %v1488_v34, %v1486_v33 }
 0x14c   : > { %v948_v37 = vpop.f32.mrb[12].mxu0 }
 0x14d   : > { %v950_v38 = vpop.f32.mrb[13].mxu0  ;;  %v1489_v41 = vmax.f32 %v948_v37, 0.0  ;;  %v6349_v37 = vld [vmem:[%s6967_s7 + $0x118] sm:$0xff]  }
 0x14e   : > { %v952_v40 = vpop.f32.mrb[14].mxu0  ;;  %v1490_v44 = vmax.f32 %v950_v38, 0.0 }
 0x14f   : > { %v1491_v42 = vmax.f32 %v952_v40, 0.0  ;;  %v954_v43 = vpop.f32.mrb[15].mxu0 }
 0x150   : > { %v1492_v45 = vmax.f32 %v954_v43, 0.0 }
 0x151   : > { %v7177_v46 = vpack.c.bf16 %v1491_v42, %v1489_v41  ;;  %5441 = vmatmul.mubr.msk.bf16.gmra.mrb[120].mxu0 %vm708_vm1, %v6314_v39 }
 0x152   : > { %v7180_v47 = vpack.c.bf16 %v1492_v45, %v1490_v44  ;;  %1226 = vmatprep.mubr.bf16.mxu0 %v6815_v0 }
 0x154   : > { %v958_v48 = vpop.f32.mrb[16].mxu0 }
 0x155   : > { %v960_v49 = vpop.f32.mrb[17].mxu0  ;;  %v1493_v52 = vmax.f32 %v958_v48, 0.0  ;;  %v6297_v48 = vld [vmem:[%s8507_s2] ss:$8 sps:$4 sm:$0xff]  }
 0x156   : > { %v962_v51 = vpop.f32.mrb[18].mxu0  ;;  %v1494_v55 = vmax.f32 %v960_v49, 0.0  ;;  %v6303_v49 = vld [vmem:[%s8507_s2 + $0x14] ss:$8 sps:$4 sm:$0xff]  }
 0x157   : > { %v1495_v53 = vmax.f32 %v962_v51, 0.0  ;;  %v964_v54 = vpop.f32.mrb[19].mxu0 }
 0x158   : > { %v1496_v56 = vmax.f32 %v964_v54, 0.0  ;;  %v6301_v54 = vld [vmem:[%s8507_s2 + $0x10] ss:$8 sps:$4 sm:$0xff]  }
 0x159   : > { %v7184_v57 = vpack.c.bf16 %v1495_v53, %v1493_v52  ;;  %5442 = vmatmul.mubr.msk.bf16.gmra.mrb[124].mxu0 %vm708_vm1, %v6321_v50  ;;  %v6356_v52 = vld [vmem:[%s6967_s7 + $0x120] sm:$0xff]  }
 0x15a   : > { %v7187_v58 = vpack.c.bf16 %v1496_v56, %v1494_v55  ;;  %1236 = vmatprep.mubr.bf16.mxu0 %v6815_v0 }
 0x15c   : > { %v968_v59 = vpop.f32.mrb[20].mxu0 }
 0x15d   : > { %v970_v60 = vpop.f32.mrb[21].mxu0  ;;  %v1497_v63 = vmax.f32 %v968_v59, 0.0 }
 0x15e   : > { %v972_v62 = vpop.f32.mrb[22].mxu0  ;;  %v1498_v3 = vmax.f32 %v970_v60, 0.0  ;;  %v6306_v60 = vld [vmem:[%s8507_s2 + $0x24] ss:$8 sps:$4 sm:$0xff]  }
 0x15f   : > { %v1499_v1 = vmax.f32 %v972_v62, 0.0  ;;  %v974_v2 = vpop.f32.mrb[23].mxu0 }
 0x160   : > { %v1500_v4 = vmax.f32 %v974_v2, 0.0  ;;  %v6304_v2 = vld [vmem:[%s8507_s2 + $0x20] ss:$8 sps:$4 sm:$0xff]  }
 0x161   : > { %v7191_v5 = vpack.c.bf16 %v1499_v1, %v1497_v63  ;;  %5443 = vmatmul.mubr.msk.bf16.gmra.mrb[128].mxu0 %vm708_vm1, %v6328_v61 }
 0x162   : > { %v7194_v6 = vpack.c.bf16 %v1500_v4, %v1498_v3  ;;  %1246 = vmatprep.mubr.bf16.mxu0 %v6815_v0  ;;  %v6310_v3 = vld [vmem:[%s8507_s2 + $0x34] ss:$8 sps:$4 sm:$0xff]  }
 0x164   : > { %v978_v7 = vpop.f32.mrb[24].mxu0 }
 0x165   : > { %v980_v8 = vpop.f32.mrb[25].mxu0  ;;  %v1501_v11 = vmax.f32 %v978_v7, 0.0 }
 0x166   : > { %v982_v10 = vpop.f32.mrb[26].mxu0  ;;  %v1502_v16 = vmax.f32 %v980_v8, 0.0  ;;  %v6363_v8 = vld [vmem:[%s6967_s7 + $0x128] sm:$0xff]  }
 0x167   : > { %v1503_v12 = vmax.f32 %v982_v10, 0.0  ;;  %v984_v15 = vpop.f32.mrb[27].mxu0  ;;  %v6308_v10 = vld [vmem:[%s8507_s2 + $0x30] ss:$8 sps:$4 sm:$0xff]  }
 0x168   : > { %v1504_v17 = vmax.f32 %v984_v15, 0.0 }
 0x169   : > { %v7198_v18 = vpack.c.bf16 %v1503_v12, %v1501_v11  ;;  %5444 = vmatmul.mubr.msk.bf16.gmra.mrb[132].mxu0 %vm708_vm1, %v6335_v9 }
 0x16a   : > { %v7201_v19 = vpack.c.bf16 %v1504_v17, %v1502_v16  ;;  %1256 = vmatprep.mubr.bf16.mxu0 %v6815_v0  ;;  %v6313_v16 = vld [vmem:[%s8507_s2 + $0x44] ss:$8 sps:$4 sm:$0xff]  }
 0x16c   : > { %v988_v20 = vpop.f32.mrb[28].mxu0 }
 0x16d   : > { %v990_v21 = vpop.f32.mrb[29].mxu0  ;;  %v1505_v26 = vmax.f32 %v988_v20, 0.0 }
 0x16e   : > { %v992_v23 = vpop.f32.mrb[30].mxu0  ;;  %v1506_v29 = vmax.f32 %v990_v21, 0.0 }
 0x16f   : > { %v1507_v27 = vmax.f32 %v992_v23, 0.0  ;;  %v994_v28 = vpop.f32.mrb[31].mxu0  ;;  %v6311_v23 = vld [vmem:[%s8507_s2 + $0x40] ss:$8 sps:$4 sm:$0xff]  }
 0x170   : > { %v1508_v30 = vmax.f32 %v994_v28, 0.0 }
 0x171   : > { %v7205_v31 = vpack.c.bf16 %v1507_v27, %v1505_v26  ;;  %5445 = vmatmul.mubr.msk.bf16.gmra.mrb[136].mxu0 %vm708_vm1, %v6342_v22  ;;  %v6317_v26 = vld [vmem:[%s8507_s2 + $0x54] ss:$8 sps:$4 sm:$0xff]  }
 0x172   : > { %v7208_v32 = vpack.c.bf16 %v1508_v30, %v1506_v29  ;;  %1266 = vmatprep.mubr.bf16.mxu0 %v6815_v0  ;;  %v6370_v29 = vld [vmem:[%s6967_s7 + $0x130] sm:$0xff]  }
 0x174   : > { %v998_v33 = vpop.f32.mrb[32].mxu0 }
 0x175   : > { %v1000_v34 = vpop.f32.mrb[33].mxu0  ;;  %v1509_v39 = vmax.f32 %v998_v33, 0.0  ;;  %v6315_v33 = vld [vmem:[%s8507_s2 + $0x50] ss:$8 sps:$4 sm:$0xff]  }
 0x176   : > { %v1002_v38 = vpop.f32.mrb[34].mxu0  ;;  %v1510_v42 = vmax.f32 %v1000_v34, 0.0 }
 0x177   : > { %v1511_v40 = vmax.f32 %v1002_v38, 0.0  ;;  %v1004_v41 = vpop.f32.mrb[35].mxu0 }
 0x178   : > { %v1512_v43 = vmax.f32 %v1004_v41, 0.0 }
 0x179   : > { %v1717_v44 = vpack.c.bf16 %v1511_v40, %v1509_v39  ;;  %5446 = vmatmul.mubr.msk.bf16.gmra.mrb[140].mxu0 %vm708_vm1, %v6349_v37  ;;  %v6320_v39 = vld [vmem:[%s8507_s2 + $0x64] ss:$8 sps:$4 sm:$0xff]  }
 0x17a   : > { %v1718_v45 = vpack.c.bf16 %v1512_v43, %v1510_v42  ;;  %1276 = vmatprep.mubr.bf16.mxu0 %v6815_v0 }
 0x17c   : > { %v1008_v50 = vpop.f32.mrb[36].mxu0  ;;  %2070 = vmatprep.mubr.bf16.mxu1 %v1718_v45  ;;  %v6324_v45 = vld [vmem:[%s8507_s2 + $0x74] ss:$8 sps:$4 sm:$0xff]  }
 0x17d   : > { %v1010_v51 = vpop.f32.mrb[37].mxu0  ;;  %2071 = vmatmul.mubr.bf16.vlgmr.msra.gmra.mrb[0].mxu1 %v1717_v44  ;;  %v1513_v55 = vmax.f32 %v1008_v50, 0.0  ;;  %v6318_v44 = vld [vmem:[%s8507_s2 + $0x60] ss:$8 sps:$4 sm:$0xff]   ;;  %v6377_v50 = vld [vmem:[%s6967_s7 + $0x138] sm:$0xff]  }
 0x17e   : > { %2312 = vmatpush1.bf16.msra.mxu1 %v6297_v48  ;;  %v1012_v53 = vpop.f32.mrb[38].mxu0  ;;  %v1514_v61 = vmax.f32 %v1010_v51, 0.0 }
 0x17f   : > { %v1515_v56 = vmax.f32 %v1012_v53, 0.0  ;;  %v1014_v59 = vpop.f32.mrb[39].mxu0  ;;  %2313 = vmatprep.subr.bf16.mxu1 %v6303_v49 }
 0x180   : > { %v1516_v62 = vmax.f32 %v1014_v59, 0.0 }
 0x181   : > { %v1719_v63 = vpack.c.bf16 %v1515_v56, %v1513_v55  ;;  %5447 = vmatmul.mubr.msk.bf16.gmra.mrb[144].mxu0 %vm708_vm1, %v6356_v52  ;;  %v6322_v52 = vld [vmem:[%s8507_s2 + $0x70] ss:$8 sps:$4 sm:$0xff]   ;;  %v6327_v56 = vld [vmem:[%s8507_s2 + $0x84] ss:$8 sps:$4 sm:$0xff]  }
 0x182   : > { %v1720_v1 = vpack.c.bf16 %v1516_v62, %v1514_v61  ;;  %2314 = vmatpush1.bf16.msra.mxu1 %v6301_v54  ;;  %1286 = vmatprep.mubr.bf16.mxu0 %v6815_v0 }
 0x183   : > { %2315 = vmatprep.subr.bf16.mxu1 %v6306_v60 }
 0x184   : > { %v1018_v4 = vpop.f32.mrb[40].mxu0  ;;  %2080 = vmatprep.mubr.bf16.mxu1 %v1720_v1  ;;  %v6437_v1 = vld [vmem:[#allocation2] ss:$8 sps:$4 sm:$0xff]  }
 0x185   : > { %v1020_v7 = vpop.f32.mrb[41].mxu0  ;;  %2081 = vmatmul.mubr.bf16.gmra.mrb[4].mxu1 %v1719_v63  ;;  %v1517_v11 = vmax.f32 %v1018_v4, 0.0  ;;  %v6325_v63 = vld [vmem:[%s8507_s2 + $0x80] ss:$8 sps:$4 sm:$0xff]  }
 0x186   : > { %2316 = vmatpush1.bf16.msra.mxu1 %v6304_v2  ;;  %v1022_v9 = vpop.f32.mrb[42].mxu0  ;;  %v1518_v17 = vmax.f32 %v1020_v7, 0.0  ;;  %v6439_v2 = vld [vmem:[#allocation2 + $0x4] ss:$8 sps:$4 sm:$0xff]  }
 0x187   : > { %v1519_v12 = vmax.f32 %v1022_v9, 0.0  ;;  %v1024_v15 = vpop.f32.mrb[43].mxu0  ;;  %2317 = vmatprep.subr.bf16.mxu1 %v6310_v3  ;;  %v6331_v3 = vld [vmem:[%s8507_s2 + $0x94] ss:$8 sps:$4 sm:$0xff]   ;;  %4474 = vmatprep.subr.bf16.mxu0 %v6439_v2 }
 0x188   : > { %v1520_v20 = vmax.f32 %v1024_v15, 0.0  ;;  %4475 = vmatpush1.bf16.msra.mxu0 %v6437_v1  ;;  %v6352_v1 = vld [vmem:[%s8507_s2 + $0xf4] ss:$8 sps:$4 sm:$0xff]  }
 0x189   : > { %v1721_v21 = vpack.c.bf16 %v1519_v12, %v1517_v11  ;;  %5448 = vmatmul.mubr.msk.bf16.gmra.mrb[148].mxu0 %vm708_vm1, %v6363_v8  ;;  %v6384_v8 = vld [vmem:[%s6967_s7 + $0x140] sm:$0xff]  }
 0x18a   : > { %v1722_v22 = vpack.c.bf16 %v1520_v20, %v1518_v17  ;;  %2318 = vmatpush1.bf16.msra.mxu1 %v6308_v10  ;;  %1296 = vmatprep.mubr.bf16.mxu0 %v6815_v0  ;;  %v6329_v10 = vld [vmem:[%s8507_s2 + $0x90] ss:$8 sps:$4 sm:$0xff]  }
 0x18b   : > { %2319 = vmatprep.subr.bf16.mxu1 %v6313_v16  ;;  %v6334_v16 = vld [vmem:[%s8507_s2 + $0xa4] ss:$8 sps:$4 sm:$0xff]  }
 0x18c   : > { %v1028_v27 = vpop.f32.mrb[44].mxu0  ;;  %2090 = vmatprep.mubr.bf16.mxu1 %v1722_v22 }
 0x18d   : > { %v1030_v28 = vpop.f32.mrb[45].mxu0  ;;  %2091 = vmatmul.mubr.bf16.gmra.mrb[8].mxu1 %v1721_v21  ;;  %v1521_v34 = vmax.f32 %v1028_v27, 0.0 }
 0x18e   : > { %2320 = vmatpush1.bf16.msra.mxu1 %v6311_v23  ;;  %v1032_v30 = vpop.f32.mrb[46].mxu0  ;;  %v1522_v40 = vmax.f32 %v1030_v28, 0.0  ;;  %v6332_v23 = vld [vmem:[%s8507_s2 + $0xa0] ss:$8 sps:$4 sm:$0xff]  }
 0x18f   : > { %v1523_v37 = vmax.f32 %v1032_v30, 0.0  ;;  %v1034_v38 = vpop.f32.mrb[47].mxu0  ;;  %2321 = vmatprep.subr.bf16.mxu1 %v6317_v26  ;;  %v6338_v26 = vld [vmem:[%s8507_s2 + $0xb4] ss:$8 sps:$4 sm:$0xff]  }
 0x190   : > { %v1524_v41 = vmax.f32 %v1034_v38, 0.0 }
 0x191   : > { %v1723_v42 = vpack.c.bf16 %v1523_v37, %v1521_v34  ;;  %5449 = vmatmul.mubr.msk.bf16.gmra.mrb[152].mxu0 %vm708_vm1, %v6370_v29  ;;  %v6391_v29 = vld [vmem:[%s6967_s7 + $0x148] sm:$0xff]  }
 0x192   : > { %v1724_v43 = vpack.c.bf16 %v1524_v41, %v1522_v40  ;;  %2322 = vmatpush1.bf16.msra.mxu1 %v6315_v33  ;;  %1306 = vmatprep.mubr.bf16.mxu0 %v6815_v0  ;;  %v6336_v33 = vld [vmem:[%s8507_s2 + $0xb0] ss:$8 sps:$4 sm:$0xff]  }
 0x193   : > { %2323 = vmatprep.subr.bf16.mxu1 %v6320_v39  ;;  %v6341_v39 = vld [vmem:[%s8507_s2 + $0xc4] ss:$8 sps:$4 sm:$0xff]  }
 0x194   : > { %v1038_v48 = vpop.f32.mrb[48].mxu0  ;;  %2100 = vmatprep.mubr.bf16.mxu1 %v1724_v43 }
 0x195   : > { %v1040_v49 = vpop.f32.mrb[49].mxu0  ;;  %2101 = vmatmul.mubr.bf16.gmra.mrb[12].mxu1 %v1723_v42  ;;  %v1525_v53 = vmax.f32 %v1038_v48, 0.0 }
 0x196   : > { %2324 = vmatpush1.bf16.msra.mxu1 %v6318_v44  ;;  %v1042_v51 = vpop.f32.mrb[50].mxu0  ;;  %v1526_v59 = vmax.f32 %v1040_v49, 0.0  ;;  %v6339_v44 = vld [vmem:[%s8507_s2 + $0xc0] ss:$8 sps:$4 sm:$0xff]  }
 0x197   : > { %v1527_v54 = vmax.f32 %v1042_v51, 0.0  ;;  %v1044_v55 = vpop.f32.mrb[51].mxu0  ;;  %2325 = vmatprep.subr.bf16.mxu1 %v6324_v45  ;;  %v6345_v45 = vld [vmem:[%s8507_s2 + $0xd4] ss:$8 sps:$4 sm:$0xff]  }
 0x198   : > { %v1528_v60 = vmax.f32 %v1044_v55, 0.0 }
 0x199   : > { %v1725_v61 = vpack.c.bf16 %v1527_v54, %v1525_v53  ;;  %5450 = vmatmul.mubr.msk.bf16.gmra.mrb[156].mxu0 %vm708_vm1, %v6377_v50  ;;  %v6398_v50 = vld [vmem:[%s6967_s7 + $0x150] sm:$0xff]  }
 0x19a   : > { %v1726_v62 = vpack.c.bf16 %v1528_v60, %v1526_v59  ;;  %2326 = vmatpush1.bf16.msra.mxu1 %v6322_v52  ;;  %1316 = vmatprep.mubr.bf16.mxu0 %v6815_v0  ;;  %v6343_v52 = vld [vmem:[%s8507_s2 + $0xd0] ss:$8 sps:$4 sm:$0xff]  }
 0x19b   : > { %2327 = vmatprep.subr.bf16.mxu1 %v6327_v56  ;;  %v6348_v56 = vld [vmem:[%s8507_s2 + $0xe4] ss:$8 sps:$4 sm:$0xff]  }
 0x19c   : > { %v1048_v4 = vpop.f32.mrb[52].mxu0  ;;  %2110 = vmatprep.mubr.bf16.mxu1 %v1726_v62 }
 0x19d   : > { %v1050_v7 = vpop.f32.mrb[53].mxu0  ;;  %2111 = vmatmul.mubr.bf16.gmra.mrb[16].mxu1 %v1725_v61  ;;  %v1529_v11 = vmax.f32 %v1048_v4, 0.0 }
 0x19e   : > { %2328 = vmatpush1.bf16.msra.mxu1 %v6325_v63  ;;  %v1052_v9 = vpop.f32.mrb[54].mxu0  ;;  %v1530_v17 = vmax.f32 %v1050_v7, 0.0  ;;  %v6346_v63 = vld [vmem:[%s8507_s2 + $0xe0] ss:$8 sps:$4 sm:$0xff]   ;;  %v6405_v7 = vld [vmem:[%s6967_s7 + $0x158] sm:$0xff]  }
 0x19f   : > { %v1531_v12 = vmax.f32 %v1052_v9, 0.0  ;;  %v1054_v15 = vpop.f32.mrb[55].mxu0  ;;  %2329 = vmatprep.subr.bf16.mxu1 %v6331_v3 }
 0x1a0   : > { %v1532_v20 = vmax.f32 %v1054_v15, 0.0 }
 0x1a1   : > { %v1727_v21 = vpack.c.bf16 %v1531_v12, %v1529_v11  ;;  %5451 = vmatmul.mubr.msk.bf16.gmra.mrb[160].mxu0 %vm708_vm1, %v6384_v8  ;;  %v6350_v8 = vld [vmem:[%s8507_s2 + $0xf0] ss:$8 sps:$4 sm:$0xff]   ;;  %v6467_v11 = vld [vmem:[#allocation2 + $0x14] ss:$8 sps:$4 sm:$0xff]   ;;  %v6355_v12 = vld [vmem:[%s8507_s2 + $0x204] ss:$8 sps:$4 sm:$0xff]  }
 0x1a2   : > { %v1728_v22 = vpack.c.bf16 %v1532_v20, %v1530_v17  ;;  %2330 = vmatpush1.bf16.msra.mxu1 %v6329_v10  ;;  %1326 = vmatprep.mubr.bf16.mxu0 %v6815_v0  ;;  %v6465_v17 = vld [vmem:[#allocation2 + $0x10] ss:$8 sps:$4 sm:$0xff]  }
 0x1a3   : > { %2331 = vmatprep.subr.bf16.mxu1 %v6334_v16  ;;  %4476 = vmatprep.subr.bf16.mxu0 %v6467_v11  ;;  %v6492_v11 = vld [vmem:[#allocation2 + $0x20] ss:$8 sps:$4 sm:$0xff]  }
 0x1a4   : > { %v1058_v27 = vpop.f32.mrb[56].mxu0  ;;  %2120 = vmatprep.mubr.bf16.mxu1 %v1728_v22  ;;  %4477 = vmatpush1.bf16.msra.mxu0 %v6465_v17 }
 0x1a5   : > { %v1060_v28 = vpop.f32.mrb[57].mxu0  ;;  %2121 = vmatmul.mubr.bf16.gmra.mrb[20].mxu1 %v1727_v21  ;;  %v1533_v34 = vmax.f32 %v1058_v27, 0.0 }
 0x1a6   : > { %2332 = vmatpush1.bf16.msra.mxu1 %v6332_v23  ;;  %v1062_v30 = vpop.f32.mrb[58].mxu0  ;;  %v1534_v40 = vmax.f32 %v1060_v28, 0.0  ;;  %v6359_v23 = vld [vmem:[%s8507_s2 + $0x214] ss:$8 sps:$4 sm:$0xff]  }
 0x1a7   : > { %v1535_v37 = vmax.f32 %v1062_v30, 0.0  ;;  %v1064_v38 = vpop.f32.mrb[59].mxu0  ;;  %2333 = vmatprep.subr.bf16.mxu1 %v6338_v26  ;;  %v6357_v30 = vld [vmem:[%s8507_s2 + $0x210] ss:$8 sps:$4 sm:$0xff]  }
 0x1a8   : > { %v1536_v41 = vmax.f32 %v1064_v38, 0.0 }
 0x1a9   : > { %v1729_v42 = vpack.c.bf16 %v1535_v37, %v1533_v34  ;;  %5452 = vmatmul.mubr.msk.bf16.gmra.mrb[164].mxu0 %vm708_vm1, %v6391_v29  ;;  %v6412_v29 = vld [vmem:[%s6967_s7 + $0x160] sm:$0xff]  }
 0x1aa   : > { %v1730_v43 = vpack.c.bf16 %v1536_v41, %v1534_v40  ;;  %2334 = vmatpush1.bf16.msra.mxu1 %v6336_v33  ;;  %1336 = vmatprep.mubr.bf16.mxu0 %v6815_v0  ;;  %v6362_v37 = vld [vmem:[%s8507_s2 + $0x224] ss:$8 sps:$4 sm:$0xff]  }
 0x1ab   : > { %2335 = vmatprep.subr.bf16.mxu1 %v6341_v39 }
 0x1ac   : > { %v1068_v48 = vpop.f32.mrb[60].mxu0  ;;  %2130 = vmatprep.mubr.bf16.mxu1 %v1730_v43 }
 0x1ad   : > { %v1070_v49 = vpop.f32.mrb[61].mxu0  ;;  %2131 = vmatmul.mubr.bf16.gmra.mrb[24].mxu1 %v1729_v42  ;;  %v1537_v53 = vmax.f32 %v1068_v48, 0.0  ;;  %v6366_v42 = vld [vmem:[%s8507_s2 + $0x234] ss:$8 sps:$4 sm:$0xff]   ;;  %v6419_v48 = vld [vmem:[%s6967_s7 + $0x168] sm:$0xff]  }
 0x1ae   : > { %2336 = vmatpush1.bf16.msra.mxu1 %v6339_v44  ;;  %v1072_v51 = vpop.f32.mrb[62].mxu0  ;;  %v1538_v59 = vmax.f32 %v1070_v49, 0.0  ;;  %v6364_v49 = vld [vmem:[%s8507_s2 + $0x230] ss:$8 sps:$4 sm:$0xff]  }
 0x1af   : > { %v1539_v54 = vmax.f32 %v1072_v51, 0.0  ;;  %v1074_v55 = vpop.f32.mrb[63].mxu0  ;;  %2337 = vmatprep.subr.bf16.mxu1 %v6345_v45 }
 0x1b0   : > { %v1540_v60 = vmax.f32 %v1074_v55, 0.0 }
 0x1b1   : > { %v1731_v61 = vpack.c.bf16 %v1539_v54, %v1537_v53  ;;  %5453 = vmatmul.mubr.msk.bf16.gmra.mrb[168].mxu0 %vm708_vm1, %v6398_v50 }
 0x1b2   : > { %v1732_v62 = vpack.c.bf16 %v1540_v60, %v1538_v59  ;;  %2338 = vmatpush1.bf16.msra.mxu1 %v6343_v52  ;;  %1346 = vmatprep.mubr.bf16.mxu0 %v6815_v0  ;;  %v6369_v52 = vld [vmem:[%s8507_s2 + $0x244] ss:$8 sps:$4 sm:$0xff]   ;;  %v6373_v59 = vld [vmem:[%s8507_s2 + $0x254] ss:$8 sps:$4 sm:$0xff]  }
 0x1b3   : > { %2339 = vmatprep.subr.bf16.mxu1 %v6348_v56 }
 0x1b4   : > { %2140 = vmatprep.mubr.bf16.mxu1 %v1732_v62  ;;  %v1078_v2 = vpop.f32.mrb[64].mxu0 }
 0x1b5   : > { %2141 = vmatmul.mubr.bf16.gmra.mrb[28].mxu1 %v1731_v61  ;;  %v1541_v3 = vmax.f32 %v1078_v2, 0.0  ;;  %v1080_v4 = vpop.f32.mrb[65].mxu0 }
 0x1b6   : > { %2340 = vmatpush1.bf16.msra.mxu1 %v6346_v63  ;;  %2343 = vmatprep.mubr.bf16.mxu1 %v7160_v14  ;;  %v1542_v9 = vmax.f32 %v1080_v4, 0.0  ;;  %v1082_v10 = vpop.f32.mrb[66].mxu0  ;;  %v6353_v14 = vld [vmem:[%s8507_s2 + $0x200] ss:$8 sps:$4 sm:$0xff]   ;;  %v6426_v63 = vld [vmem:[%s6967_s7 + $0x170] sm:$0xff]  }
 0x1b7   : > { %2341 = vmatprep.subr.bf16.mxu1 %v6352_v1  ;;  %v1543_v15 = vmax.f32 %v1082_v10, 0.0  ;;  %v1084_v16 = vpop.f32.mrb[67].mxu0  ;;  %v6371_v1 = vld [vmem:[%s8507_s2 + $0x250] ss:$8 sps:$4 sm:$0xff]   ;;  %v6376_v4 = vld [vmem:[%s8507_s2 + $0x264] ss:$8 sps:$4 sm:$0xff]  }
 0x1b8   : > { %v1544_v20 = vmax.f32 %v1084_v16, 0.0 }
 0x1b9   : > { %v7333_v21 = vpack.c.bf16 %v1543_v15, %v1541_v3  ;;  %5454 = vmatmul.mubr.msk.bf16.gmra.mrb[172].mxu0 %vm708_vm1, %v6405_v7  ;;  %v6380_v15 = vld [vmem:[%s8507_s2 + $0x274] ss:$8 sps:$4 sm:$0xff]  }
 0x1ba   : > { %2342 = vmatpush1.bf16.msra.mxu1 %v6350_v8  ;;  %v7339_v22 = vpack.c.bf16 %v1544_v20, %v1542_v9  ;;  %1356 = vmatprep.mubr.bf16.mxu0 %v6815_v0 }
 0x1bb   : > { %2617 = vmatprep.subr.bf16.mxu1 %v6355_v12  ;;  %v6494_v12 = vld [vmem:[#allocation2 + $0x24] ss:$8 sps:$4 sm:$0xff]  }
 0x1bc   : > { %v1088_v26 = vpop.f32.mrb[68].mxu0  ;;  %4478 = vmatprep.subr.bf16.mxu0 %v6494_v12 }
 0x1bd   : > { %2344 = vmatmul.mubr.bf16.vlgmr.msra.gmra.mrb[0].mxu1 %v7156_v13  ;;  %v1545_v27 = vmax.f32 %v1088_v26, 0.0  ;;  %v1090_v28 = vpop.f32.mrb[69].mxu0  ;;  %4479 = vmatpush1.bf16.msra.mxu0 %v6492_v11  ;;  %v6399_v11 = vld [vmem:[%s8507_s2 + $0x2d0] ss:$8 sps:$4 sm:$0xff]  }
 0x1be   : > { %2618 = vmatpush1.bf16.msra.mxu1 %v6353_v14  ;;  %2353 = vmatprep.mubr.bf16.mxu1 %v7167_v25  ;;  %v1546_v33 = vmax.f32 %v1090_v28, 0.0  ;;  %v1092_v34 = vpop.f32.mrb[70].mxu0  ;;  %v6360_v25 = vld [vmem:[%s8507_s2 + $0x220] ss:$8 sps:$4 sm:$0xff]   ;;  %v6433_v14 = vld [vmem:[%s6967_s7 + $0x178] sm:$0xff]  }
 0x1bf   : > { %2619 = vmatprep.subr.bf16.mxu1 %v6359_v23  ;;  %v1547_v38 = vmax.f32 %v1092_v34, 0.0  ;;  %v1094_v13 = vpop.f32.mrb[71].mxu0  ;;  %v6378_v23 = vld [vmem:[%s8507_s2 + $0x270] ss:$8 sps:$4 sm:$0xff]   ;;  %v6383_v28 = vld [vmem:[%s8507_s2 + $0x284] ss:$8 sps:$4 sm:$0xff]  }
 0x1c0   : > { %v1548_v39 = vmax.f32 %v1094_v13, 0.0 }
 0x1c1   : > { %v7354_v40 = vpack.c.bf16 %v1547_v38, %v1545_v27  ;;  %5455 = vmatmul.mubr.msk.bf16.gmra.mrb[176].mxu0 %vm708_vm1, %v6412_v29 }
 0x1c2   : > { %2620 = vmatpush1.bf16.msra.mxu1 %v6357_v30  ;;  %v7360_v41 = vpack.c.bf16 %v1548_v39, %v1546_v33  ;;  %1366 = vmatprep.mubr.bf16.mxu0 %v6815_v0 }
 0x1c3   : > { %2621 = vmatprep.subr.bf16.mxu1 %v6362_v37  ;;  %v6387_v37 = vld [vmem:[%s8507_s2 + $0x294] ss:$8 sps:$4 sm:$0xff]  }
 0x1c4   : > { %v1098_v43 = vpop.f32.mrb[72].mxu0 }
 0x1c5   : > { %2354 = vmatmul.mubr.bf16.gmra.mrb[4].mxu1 %v7164_v24  ;;  %v1549_v44 = vmax.f32 %v1098_v43, 0.0  ;;  %v1100_v45 = vpop.f32.mrb[73].mxu0 }
 0x1c6   : > { %2622 = vmatpush1.bf16.msra.mxu1 %v6360_v25  ;;  %2363 = vmatprep.mubr.bf16.mxu1 %v7174_v36  ;;  %v1550_v50 = vmax.f32 %v1100_v45, 0.0  ;;  %v1102_v51 = vpop.f32.mrb[74].mxu0  ;;  %v6367_v36 = vld [vmem:[%s8507_s2 + $0x240] ss:$8 sps:$4 sm:$0xff]   ;;  %v6390_v45 = vld [vmem:[%s8507_s2 + $0x2a4] ss:$8 sps:$4 sm:$0xff]  }
 0x1c7   : > { %2623 = vmatprep.subr.bf16.mxu1 %v6366_v42  ;;  %v1551_v53 = vmax.f32 %v1102_v51, 0.0  ;;  %v1104_v24 = vpop.f32.mrb[75].mxu0  ;;  %v6443_v25 = vld [vmem:[%s6967_s7 + $0x180] sm:$0xff]   ;;  %v6385_v42 = vld [vmem:[%s8507_s2 + $0x290] ss:$8 sps:$4 sm:$0xff]  }
 0x1c8   : > { %v1552_v54 = vmax.f32 %v1104_v24, 0.0 }
 0x1c9   : > { %v7375_v55 = vpack.c.bf16 %v1551_v53, %v1549_v44  ;;  %5456 = vmatmul.mubr.msk.bf16.gmra.mrb[180].mxu0 %vm708_vm1, %v6419_v48 }
 0x1ca   : > { %2624 = vmatpush1.bf16.msra.mxu1 %v6364_v49  ;;  %v7381_v56 = vpack.c.bf16 %v1552_v54, %v1550_v50  ;;  %1376 = vmatprep.mubr.bf16.mxu0 %v6815_v0 }
 0x1cb   : > { %2625 = vmatprep.subr.bf16.mxu1 %v6369_v52  ;;  %v6394_v52 = vld [vmem:[%s8507_s2 + $0x2b4] ss:$8 sps:$4 sm:$0xff]  }
 0x1cc   : > { %v1108_v60 = vpop.f32.mrb[76].mxu0 }
 0x1cd   : > { %2364 = vmatmul.mubr.bf16.gmra.mrb[8].mxu1 %v7171_v35  ;;  %v1553_v61 = vmax.f32 %v1108_v60, 0.0  ;;  %v1110_v62 = vpop.f32.mrb[77].mxu0 }
 0x1ce   : > { %2626 = vmatpush1.bf16.msra.mxu1 %v6367_v36  ;;  %2373 = vmatprep.mubr.bf16.mxu1 %v7180_v47  ;;  %v1554_v2 = vmax.f32 %v1110_v62, 0.0  ;;  %v1112_v3 = vpop.f32.mrb[78].mxu0  ;;  %v6374_v47 = vld [vmem:[%s8507_s2 + $0x260] ss:$8 sps:$4 sm:$0xff]   ;;  %v6397_v62 = vld [vmem:[%s8507_s2 + $0x2c4] ss:$8 sps:$4 sm:$0xff]  }
 0x1cf   : > { %2627 = vmatprep.subr.bf16.mxu1 %v6373_v59  ;;  %v1555_v7 = vmax.f32 %v1112_v3, 0.0  ;;  %v1114_v8 = vpop.f32.mrb[79].mxu0  ;;  %v6450_v36 = vld [vmem:[%s6967_s7 + $0x188] sm:$0xff]   ;;  %v6392_v59 = vld [vmem:[%s8507_s2 + $0x2b0] ss:$8 sps:$4 sm:$0xff]  }
 0x1d0   : > { %v1556_v35 = vmax.f32 %v1114_v8, 0.0 }
 0x1d1   : > { %v7396_v9 = vpack.c.bf16 %v1555_v7, %v1553_v61  ;;  %5457 = vmatmul.mubr.msk.bf16.gmra.mrb[184].mxu0 %vm708_vm1, %v6426_v63 }
 0x1d2   : > { %2628 = vmatpush1.bf16.msra.mxu1 %v6371_v1  ;;  %v7402_v10 = vpack.c.bf16 %v1556_v35, %v1554_v2  ;;  %1386 = vmatprep.mubr.bf16.mxu0 %v6815_v0 }
 0x1d3   : > { %2629 = vmatprep.subr.bf16.mxu1 %v6376_v4  ;;  %v6401_v4 = vld [vmem:[%s8507_s2 + $0x2d4] ss:$8 sps:$4 sm:$0xff]  }
 0x1d4   : > { %v1118_v16 = vpop.f32.mrb[80].mxu0 }
 0x1d5   : > { %2374 = vmatmul.mubr.bf16.gmra.mrb[12].mxu1 %v7177_v46  ;;  %v1557_v17 = vmax.f32 %v1118_v16, 0.0  ;;  %v1120_v20 = vpop.f32.mrb[81].mxu0  ;;  %v6519_v16 = vld [vmem:[#allocation2 + $0x34] ss:$8 sps:$4 sm:$0xff]  }
 0x1d6   : > { %2630 = vmatpush1.bf16.msra.mxu1 %v6374_v47  ;;  %2383 = vmatprep.mubr.bf16.mxu1 %v7187_v58  ;;  %v1558_v26 = vmax.f32 %v1120_v20, 0.0  ;;  %v1122_v27 = vpop.f32.mrb[82].mxu0  ;;  %v6381_v58 = vld [vmem:[%s8507_s2 + $0x280] ss:$8 sps:$4 sm:$0xff]   ;;  %v6457_v47 = vld [vmem:[%s6967_s7 + $0x190] sm:$0xff]  }
 0x1d7   : > { %2631 = vmatprep.subr.bf16.mxu1 %v6380_v15  ;;  %v1559_v46 = vmax.f32 %v1122_v27, 0.0  ;;  %v1124_v29 = vpop.f32.mrb[83].mxu0  ;;  %4480 = vmatprep.subr.bf16.mxu0 %v6519_v16  ;;  %v6541_v16 = vld [vmem:[#allocation2 + $0x40] ss:$8 sps:$4 sm:$0xff]  }
 0x1d8   : > { %v1560_v30 = vmax.f32 %v1124_v29, 0.0 }
 0x1d9   : > { %v7417_v33 = vpack.c.bf16 %v1559_v46, %v1557_v17  ;;  %5458 = vmatmul.mubr.msk.bf16.gmra.mrb[188].mxu0 %vm708_vm1, %v6433_v14  ;;  %v6404_v17 = vld [vmem:[%s8507_s2 + $0x2e4] ss:$8 sps:$4 sm:$0xff]   ;;  %v6517_v14 = vld [vmem:[#allocation2 + $0x30] ss:$8 sps:$4 sm:$0xff]  }
 0x1da   : > { %2632 = vmatpush1.bf16.msra.mxu1 %v6378_v23  ;;  %v7423_v34 = vpack.c.bf16 %v1560_v30, %v1558_v26  ;;  %1396 = vmatprep.mubr.bf16.mxu0 %v6815_v0 }
 0x1db   : > { %2633 = vmatprep.subr.bf16.mxu1 %v6383_v28  ;;  %v6408_v28 = vld [vmem:[%s8507_s2 + $0x2f4] ss:$8 sps:$4 sm:$0xff]   ;;  %4481 = vmatpush1.bf16.msra.mxu0 %v6517_v14 }
 0x1dc   : > { %v1128_v38 = vpop.f32.mrb[84].mxu0 }
 0x1dd   : > { %2384 = vmatmul.mubr.bf16.gmra.mrb[16].mxu1 %v7184_v57  ;;  %v1561_v13 = vmax.f32 %v1128_v38, 0.0  ;;  %v1130_v39 = vpop.f32.mrb[85].mxu0 }
 0x1de   : > { %2634 = vmatpush1.bf16.msra.mxu1 %v6381_v58  ;;  %2393 = vmatprep.mubr.bf16.mxu1 %v7194_v6  ;;  %v1562_v43 = vmax.f32 %v1130_v39, 0.0  ;;  %v1132_v44 = vpop.f32.mrb[86].mxu0  ;;  %v6388_v6 = vld [vmem:[%s8507_s2 + $0x2a0] ss:$8 sps:$4 sm:$0xff]   ;;  %v6464_v58 = vld [vmem:[%s6967_s7 + $0x198] sm:$0xff]  }
 0x1df   : > { %2635 = vmatprep.subr.bf16.mxu1 %v6387_v37  ;;  %v1563_v48 = vmax.f32 %v1132_v44, 0.0  ;;  %v1134_v57 = vpop.f32.mrb[87].mxu0  ;;  %v6406_v37 = vld [vmem:[%s8507_s2 + $0x2f0] ss:$8 sps:$4 sm:$0xff]   ;;  %v6411_v39 = vld [vmem:[%s8507_s2 + $0x304] ss:$8 sps:$4 sm:$0xff]  }
 0x1e0   : > { %v1564_v49 = vmax.f32 %v1134_v57, 0.0 }
 0x1e1   : > { %v7438_v50 = vpack.c.bf16 %v1563_v48, %v1561_v13  ;;  %5459 = vmatmul.mubr.msk.bf16.gmra.mrb[192].mxu0 %vm708_vm1, %v6443_v25 }
 0x1e2   : > { %2636 = vmatpush1.bf16.msra.mxu1 %v6385_v42  ;;  %v7444_v51 = vpack.c.bf16 %v1564_v49, %v1562_v43  ;;  %1406 = vmatprep.mubr.bf16.mxu0 %v6815_v0 }
 0x1e3   : > { %2637 = vmatprep.subr.bf16.mxu1 %v6390_v45  ;;  %v6415_v45 = vld [vmem:[%s8507_s2 + $0x314] ss:$8 sps:$4 sm:$0xff]  }
 0x1e4   : > { %v1138_v53 = vpop.f32.mrb[88].mxu0 }
 0x1e5   : > { %2394 = vmatmul.mubr.bf16.gmra.mrb[20].mxu1 %v7191_v5  ;;  %v1565_v24 = vmax.f32 %v1138_v53, 0.0  ;;  %v1140_v54 = vpop.f32.mrb[89].mxu0 }
 0x1e6   : > { %2638 = vmatpush1.bf16.msra.mxu1 %v6388_v6  ;;  %2403 = vmatprep.mubr.bf16.mxu1 %v7201_v19  ;;  %v1566_v60 = vmax.f32 %v1140_v54, 0.0  ;;  %v1142_v61 = vpop.f32.mrb[90].mxu0  ;;  %v6395_v19 = vld [vmem:[%s8507_s2 + $0x2c0] ss:$8 sps:$4 sm:$0xff]   ;;  %v6418_v54 = vld [vmem:[%s8507_s2 + $0x324] ss:$8 sps:$4 sm:$0xff]  }
 0x1e7   : > { %2639 = vmatprep.subr.bf16.mxu1 %v6394_v52  ;;  %v1567_v63 = vmax.f32 %v1142_v61, 0.0  ;;  %v1144_v5 = vpop.f32.mrb[91].mxu0  ;;  %v6474_v6 = vld [vmem:[%s6967_s7 + $0x1a0] sm:$0xff]   ;;  %v6413_v52 = vld [vmem:[%s8507_s2 + $0x310] ss:$8 sps:$4 sm:$0xff]  }
 0x1e8   : > { %v1568_v1 = vmax.f32 %v1144_v5, 0.0 }
 0x1e9   : > { %v7459_v2 = vpack.c.bf16 %v1567_v63, %v1565_v24  ;;  %5460 = vmatmul.mubr.msk.bf16.gmra.mrb[196].mxu0 %vm708_vm1, %v6450_v36 }
 0x1ea   : > { %2640 = vmatpush1.bf16.msra.mxu1 %v6392_v59  ;;  %v7465_v3 = vpack.c.bf16 %v1568_v1, %v1566_v60  ;;  %1416 = vmatprep.mubr.bf16.mxu0 %v6815_v0 }
 0x1eb   : > { %2641 = vmatprep.subr.bf16.mxu1 %v6397_v62  ;;  %v6422_v62 = vld [vmem:[%s8507_s2 + $0x334] ss:$8 sps:$4 sm:$0xff]  }
 0x1ec   : > { %v1148_v7 = vpop.f32.mrb[92].mxu0 }
 0x1ed   : > { %2404 = vmatmul.mubr.bf16.gmra.mrb[24].mxu1 %v7198_v18  ;;  %v1569_v8 = vmax.f32 %v1148_v7, 0.0  ;;  %v1150_v35 = vpop.f32.mrb[93].mxu0 }
 0x1ee   : > { %2642 = vmatpush1.bf16.msra.mxu1 %v6395_v19  ;;  %2413 = vmatprep.mubr.bf16.mxu1 %v7208_v32  ;;  %v1570_v12 = vmax.f32 %v1150_v35, 0.0  ;;  %v1152_v15 = vpop.f32.mrb[94].mxu0  ;;  %v6402_v32 = vld [vmem:[%s8507_s2 + $0x2e0] ss:$8 sps:$4 sm:$0xff]   ;;  %v6425_v35 = vld [vmem:[%s8507_s2 + $0x344] ss:$8 sps:$4 sm:$0xff]  }
 0x1ef   : > { %2643 = vmatprep.subr.bf16.mxu1 %v6401_v4  ;;  %v1571_v20 = vmax.f32 %v1152_v15, 0.0  ;;  %v1154_v18 = vpop.f32.mrb[95].mxu0  ;;  %v6481_v19 = vld [vmem:[%s6967_s7 + $0x1a8] sm:$0xff]   ;;  %v6420_v4 = vld [vmem:[%s8507_s2 + $0x330] ss:$8 sps:$4 sm:$0xff]  }
 0x1f0   : > { %v1572_v23 = vmax.f32 %v1154_v18, 0.0 }
 0x1f1   : > { %v7480_v26 = vpack.c.bf16 %v1571_v20, %v1569_v8  ;;  %5461 = vmatmul.mubr.msk.bf16.gmra.mrb[200].mxu0 %vm708_vm1, %v6457_v47  ;;  %v6429_v20 = vld [vmem:[%s8507_s2 + $0x354] ss:$8 sps:$4 sm:$0xff]  }
 0x1f2   : > { %2644 = vmatpush1.bf16.msra.mxu1 %v6399_v11  ;;  %v7486_v27 = vpack.c.bf16 %v1572_v23, %v1570_v12  ;;  %1426 = vmatprep.mubr.bf16.mxu0 %v6815_v0 }
 0x1f3   : > { %2645 = vmatprep.subr.bf16.mxu1 %v6404_v17  ;;  %v6543_v17 = vld [vmem:[#allocation2 + $0x44] ss:$8 sps:$4 sm:$0xff]  }
 0x1f4   : > { %v1158_v46 = vpop.f32.mrb[96].mxu0  ;;  %4482 = vmatprep.subr.bf16.mxu0 %v6543_v17  ;;  %v6567_v17 = vld [vmem:[#allocation2 + $0x54] ss:$8 sps:$4 sm:$0xff]  }
 0x1f5   : > { %2414 = vmatmul.mubr.bf16.gmra.mrb[28].mxu1 %v7205_v31  ;;  %v1573_v29 = vmax.f32 %v1158_v46, 0.0  ;;  %v1160_v30 = vpop.f32.mrb[97].mxu0  ;;  %4483 = vmatpush1.bf16.msra.mxu0 %v6541_v16  ;;  %v6565_v16 = vld [vmem:[#allocation2 + $0x50] ss:$8 sps:$4 sm:$0xff]  }
 0x1f6   : > { %2646 = vmatpush1.bf16.msra.mxu1 %v6402_v32  ;;  %2649 = vmatprep.mubr.bf16.mxu1 %v7339_v22  ;;  %v1574_v38 = vmax.f32 %v1160_v30, 0.0  ;;  %v1162_v13 = vpop.f32.mrb[98].mxu0  ;;  %v6409_v22 = vld [vmem:[%s8507_s2 + $0x300] ss:$8 sps:$4 sm:$0xff]   ;;  %v6488_v32 = vld [vmem:[%s6967_s7 + $0x1b0] sm:$0xff]  }
 0x1f7   : > { %2647 = vmatprep.subr.bf16.mxu1 %v6408_v28  ;;  %v1575_v25 = vmax.f32 %v1162_v13, 0.0  ;;  %v1164_v31 = vpop.f32.mrb[99].mxu0  ;;  %v6427_v28 = vld [vmem:[%s8507_s2 + $0x350] ss:$8 sps:$4 sm:$0xff]   ;;  %v6432_v30 = vld [vmem:[%s8507_s2 + $0x364] ss:$8 sps:$4 sm:$0xff]   ;;  %4484 = vmatprep.subr.bf16.mxu0 %v6567_v17 }
 0x1f8   : > { %v1576_v42 = vmax.f32 %v1164_v31, 0.0 }
 0x1f9   : > { %v7501_v43 = vpack.c.bf16 %v1575_v25, %v1573_v29  ;;  %5462 = vmatmul.mubr.msk.bf16.gmra.mrb[204].mxu0 %vm708_vm1, %v6464_v58 }
 0x1fa   : > { %2648 = vmatpush1.bf16.msra.mxu1 %v6406_v37  ;;  %v7507_v44 = vpack.c.bf16 %v1576_v42, %v1574_v38  ;;  %1436 = vmatprep.mubr.bf16.mxu0 %v6815_v0 }
 0x1fb   : > { %2955 = vmatprep.subr.bf16.mxu1 %v6411_v39  ;;  %v6436_v39 = vld [vmem:[%s8507_s2 + $0x374] ss:$8 sps:$4 sm:$0xff]   ;;  %4485 = vmatpush1.bf16.msra.mxu0 %v6565_v16 }
 0x1fc   : > { %v1168_v48 = vpop.f32.mrb[100].mxu0 }
 0x1fd   : > { %2650 = vmatmul.mubr.bf16.vlgmr.msra.gmra.mrb[0].mxu1 %v7333_v21  ;;  %v1577_v57 = vmax.f32 %v1168_v48, 0.0  ;;  %v1170_v49 = vpop.f32.mrb[101].mxu0 }
 0x1fe   : > { %2956 = vmatpush1.bf16.msra.mxu1 %v6409_v22  ;;  %2659 = vmatprep.mubr.bf16.mxu1 %v7360_v41  ;;  %v1578_v53 = vmax.f32 %v1170_v49, 0.0  ;;  %v1172_v24 = vpop.f32.mrb[102].mxu0  ;;  %v6416_v41 = vld [vmem:[%s8507_s2 + $0x320] ss:$8 sps:$4 sm:$0xff]   ;;  %v6498_v22 = vld [vmem:[%s6967_s7 + $0x1b8] sm:$0xff]  }
 0x1ff   : > { %2957 = vmatprep.subr.bf16.mxu1 %v6415_v45  ;;  %v1579_v36 = vmax.f32 %v1172_v24, 0.0  ;;  %v1174_v21 = vpop.f32.mrb[103].mxu0  ;;  %v6434_v45 = vld [vmem:[%s8507_s2 + $0x370] ss:$8 sps:$4 sm:$0xff]   ;;  %v6446_v24 = vld [vmem:[%s8507_s2 + $0x394] ss:$8 sps:$4 sm:$0xff]  }
 0x200   : > { %v1580_v59 = vmax.f32 %v1174_v21, 0.0 }
 0x201   : > { %v7522_v60 = vpack.c.bf16 %v1579_v36, %v1577_v57  ;;  %5463 = vmatmul.mubr.msk.bf16.gmra.mrb[208].mxu0 %vm708_vm1, %v6474_v6  ;;  %v6442_v57 = vld [vmem:[%s8507_s2 + $0x384] ss:$8 sps:$4 sm:$0xff]  }
 0x202   : > { %2958 = vmatpush1.bf16.msra.mxu1 %v6413_v52  ;;  %v7528_v61 = vpack.c.bf16 %v1580_v59, %v1578_v53  ;;  %1446 = vmatprep.mubr.bf16.mxu0 %v6815_v0  ;;  %v6440_v53 = vld [vmem:[%s8507_s2 + $0x380] ss:$8 sps:$4 sm:$0xff]   ;;  %v6444_v59 = vld [vmem:[%s8507_s2 + $0x390] ss:$8 sps:$4 sm:$0xff]  }
 0x203   : > { %2959 = vmatprep.subr.bf16.mxu1 %v6418_v54 }
 0x204   : > { %v1178_v63 = vpop.f32.mrb[104].mxu0 }
 0x205   : > { %2660 = vmatmul.mubr.bf16.gmra.mrb[4].mxu1 %v7354_v40  ;;  %v1581_v5 = vmax.f32 %v1178_v63, 0.0  ;;  %v1180_v1 = vpop.f32.mrb[105].mxu0  ;;  %v6449_v63 = vld [vmem:[%s8507_s2 + $0x3a4] ss:$8 sps:$4 sm:$0xff]  }
 0x206   : > { %2960 = vmatpush1.bf16.msra.mxu1 %v6416_v41  ;;  %2669 = vmatprep.mubr.bf16.mxu1 %v7381_v56  ;;  %v1582_v7 = vmax.f32 %v1180_v1, 0.0  ;;  %v1182_v8 = vpop.f32.mrb[106].mxu0  ;;  %v6423_v56 = vld [vmem:[%s8507_s2 + $0x340] ss:$8 sps:$4 sm:$0xff]  }
 0x207   : > { %2961 = vmatprep.subr.bf16.mxu1 %v6422_v62  ;;  %v1583_v47 = vmax.f32 %v1182_v8, 0.0  ;;  %v1184_v11 = vpop.f32.mrb[107].mxu0 }
 0x208   : > { %v1584_v40 = vmax.f32 %v1184_v11, 0.0 }
 0x209   : > { %v7543_v12 = vpack.c.bf16 %v1583_v47, %v1581_v5  ;;  %5464 = vmatmul.mubr.msk.bf16.gmra.mrb[212].mxu0 %vm708_vm1, %v6481_v19 }
 0x20a   : > { %2962 = vmatpush1.bf16.msra.mxu1 %v6420_v4  ;;  %v7549_v15 = vpack.c.bf16 %v1584_v40, %v1582_v7  ;;  %1456 = vmatprep.mubr.bf16.mxu0 %v6815_v0  ;;  %v6447_v4 = vld [vmem:[%s8507_s2 + $0x3a0] ss:$8 sps:$4 sm:$0xff]  }
 0x20b   : > { %2963 = vmatprep.subr.bf16.mxu1 %v6425_v35  ;;  %v6451_v35 = vld [vmem:[%s8507_s2 + $0x3b0] ss:$8 sps:$4 sm:$0xff]  }
 0x20c   : > { %v1188_v18 = vpop.f32.mrb[108].mxu0 }
 0x20d   : > { %2670 = vmatmul.mubr.bf16.gmra.mrb[8].mxu1 %v7375_v55  ;;  %v1585_v14 = vmax.f32 %v1188_v18, 0.0  ;;  %v1190_v23 = vpop.f32.mrb[109].mxu0 }
 0x20e   : > { %2964 = vmatpush1.bf16.msra.mxu1 %v6423_v56  ;;  %2679 = vmatprep.mubr.bf16.mxu1 %v7402_v10  ;;  %v1586_v46 = vmax.f32 %v1190_v23, 0.0  ;;  %v1192_v29 = vpop.f32.mrb[110].mxu0  ;;  %v6430_v10 = vld [vmem:[%s8507_s2 + $0x360] ss:$8 sps:$4 sm:$0xff]  }
 0x20f   : > { %2965 = vmatprep.subr.bf16.mxu1 %v6429_v20  ;;  %v1587_v55 = vmax.f32 %v1192_v29, 0.0  ;;  %v1194_v58 = vpop.f32.mrb[111].mxu0  ;;  %v6456_v20 = vld [vmem:[%s8507_s2 + $0x3c4] ss:$8 sps:$4 sm:$0xff]  }
 0x210   : > { %v1588_v37 = vmax.f32 %v1194_v58, 0.0 }
 0x211   : > { %v7564_v38 = vpack.c.bf16 %v1587_v55, %v1585_v14  ;;  %5465 = vmatmul.mubr.msk.bf16.gmra.mrb[216].mxu0 %vm708_vm1, %v6488_v32  ;;  %v6458_v55 = vld [vmem:[%s8507_s2 + $0x3d0] ss:$8 sps:$4 sm:$0xff]  }
 0x212   : > { %2966 = vmatpush1.bf16.msra.mxu1 %v6427_v28  ;;  %v7570_v13 = vpack.c.bf16 %v1588_v37, %v1586_v46  ;;  %1466 = vmatprep.mubr.bf16.mxu0 %v6815_v0  ;;  %v6460_v28 = vld [vmem:[%s8507_s2 + $0x3d4] ss:$8 sps:$4 sm:$0xff]  }
 0x213   : > { %2967 = vmatprep.subr.bf16.mxu1 %v6432_v30 }
 0x214   : > { %v1198_v25 = vpop.f32.mrb[112].mxu0 }
 0x215   : > { %2680 = vmatmul.mubr.bf16.gmra.mrb[12].mxu1 %v7396_v9  ;;  %v1589_v31 = vmax.f32 %v1198_v25, 0.0  ;;  %v1200_v42 = vpop.f32.mrb[113].mxu0 }
 0x216   : > { %2968 = vmatpush1.bf16.msra.mxu1 %v6430_v10  ;;  %2689 = vmatprep.mubr.bf16.mxu1 %v7423_v34  ;;  %v1590_v48 = vmax.f32 %v1200_v42, 0.0  ;;  %v1202_v0 = vpop.f32.mrb[114].mxu0  ;;  %v6463_v10 = vld [vmem:[%s8507_s2 + $0x3e4] ss:$8 sps:$4 sm:$0xff]   ;;  %v6461_v42 = vld [vmem:[%s8507_s2 + $0x3e0] ss:$8 sps:$4 sm:$0xff]  }
 0x217   : > { %2969 = vmatprep.subr.bf16.mxu1 %v6436_v39  ;;  %v1591_v49 = vmax.f32 %v1202_v0, 0.0  ;;  %v1204_v6 = vpop.f32.mrb[115].mxu0 }
 0x218   : > { %v1592_v9 = vmax.f32 %v1204_v6, 0.0 }
 0x219   : > { %v7585_v52 = vpack.c.bf16 %v1591_v49, %v1589_v31  ;;  %5466 = vmatmul.mubr.msk.bf16.gmra.mrb[220].mxu0 %vm708_vm1, %v6498_v22 }
 0x21a   : > { %2970 = vmatpush1.bf16.msra.mxu1 %v6434_v45  ;;  %v7591_v34 = vpack.c.bf16 %v1592_v9, %v1590_v48  ;;  %v6473_v9 = vld [vmem:[%s8507_s2 + $0x404] ss:$8 sps:$4 sm:$0xff]  }
 0x21b   : > { %2971 = vmatprep.subr.bf16.mxu1 %v6442_v57  ;;  %v6468_v57 = vld [vmem:[%s8507_s2 + $0x3f0] ss:$8 sps:$4 sm:$0xff]  }
 0x21c   : > { %v1208_v54 = vpop.f32.mrb[116].mxu0 }
 0x21d   : > { %2690 = vmatmul.mubr.bf16.gmra.mrb[16].mxu1 %v7417_v33  ;;  %v1593_v36 = vmax.f32 %v1208_v54, 0.0  ;;  %v1210_v21 = vpop.f32.mrb[117].mxu0 }
 0x21e   : > { %2972 = vmatpush1.bf16.msra.mxu1 %v6440_v53  ;;  %2699 = vmatprep.mubr.bf16.mxu1 %v7444_v51  ;;  %v1594_v41 = vmax.f32 %v1210_v21, 0.0  ;;  %v1212_v62 = vpop.f32.mrb[118].mxu0  ;;  %v6453_v51 = vld [vmem:[%s8507_s2 + $0x3b4] ss:$8 sps:$4 sm:$0xff]  }
 0x21f   : > { %2973 = vmatprep.subr.bf16.mxu1 %v6446_v24  ;;  %v1595_v5 = vmax.f32 %v1212_v62, 0.0  ;;  %v1214_v1 = vpop.f32.mrb[119].mxu0 }
 0x220   : > { %v1596_v19 = vmax.f32 %v1214_v1, 0.0 }
 0x221   : > { %v7604_v33 = vpack.c.bf16 %v1595_v5, %v1593_v36  ;;  %v6471_v36 = vld [vmem:[%s8507_s2 + $0x400] ss:$8 sps:$4 sm:$0xff]  }
 0x222   : > { %2974 = vmatpush1.bf16.msra.mxu1 %v6444_v59  ;;  %v7609_v7 = vpack.c.bf16 %v1596_v19, %v1594_v41  ;;  %v6480_v19 = vld [vmem:[%s8507_s2 + $0x424] ss:$8 sps:$4 sm:$0xff]  }
 0x223   : > { %2975 = vmatprep.subr.bf16.mxu1 %v6449_v63  ;;  %v6475_v63 = vld [vmem:[%s8507_s2 + $0x410] ss:$8 sps:$4 sm:$0xff]  }
 0x224   : > { %v1218_v8 = vpop.f32.mrb[120].mxu0 }
 0x225   : > { %2700 = vmatmul.mubr.bf16.gmra.mrb[20].mxu1 %v7438_v50  ;;  %v1597_v47 = vmax.f32 %v1218_v8, 0.0  ;;  %v1220_v11 = vpop.f32.mrb[121].mxu0 }
 0x226   : > { %2976 = vmatpush1.bf16.msra.mxu1 %v6447_v4  ;;  %2709 = vmatprep.mubr.bf16.mxu1 %v7465_v3  ;;  %v1598_v40 = vmax.f32 %v1220_v11, 0.0  ;;  %v1222_v56 = vpop.f32.mrb[122].mxu0  ;;  %v6454_v3 = vld [vmem:[%s8507_s2 + $0x3c0] ss:$8 sps:$4 sm:$0xff]   ;;  %v6591_v11 = vld [vmem:[#allocation2 + $0x64] ss:$8 sps:$4 sm:$0xff]  }
 0x227   : > { %2977 = vmatprep.subr.bf16.mxu1 %v6453_v51  ;;  %v1599_v18 = vmax.f32 %v1222_v56, 0.0  ;;  %v1224_v50 = vpop.f32.mrb[123].mxu0  ;;  %4486 = vmatprep.subr.bf16.mxu0 %v6591_v11 }
 0x228   : > { %v1600_v14 = vmax.f32 %v1224_v50, 0.0 }
 0x229   : > { %v7622_v23 = vpack.c.bf16 %v1599_v18, %v1597_v47 }
 0x22a   : > { %2978 = vmatpush1.bf16.msra.mxu1 %v6451_v35  ;;  %v7627_v32 = vpack.c.bf16 %v1600_v14, %v1598_v40  ;;  %v6478_v35 = vld [vmem:[%s8507_s2 + $0x420] ss:$8 sps:$4 sm:$0xff]   ;;  %v6484_v40 = vld [vmem:[%s8507_s2 + $0x434] ss:$8 sps:$4 sm:$0xff]   ;;  %v6487_v14 = vld [vmem:[%s8507_s2 + $0x444] ss:$8 sps:$4 sm:$0xff]  }
 0x22b   : > { %2979 = vmatprep.subr.bf16.mxu1 %v6456_v20  ;;  %v6482_v20 = vld [vmem:[%s8507_s2 + $0x430] ss:$8 sps:$4 sm:$0xff]  }
 0x22c   : > { %v1228_v46 = vpop.f32.mrb[124].mxu0 }
 0x22d   : > { %2710 = vmatmul.mubr.bf16.gmra.mrb[24].mxu1 %v7459_v2  ;;  %v1601_v29 = vmax.f32 %v1228_v46, 0.0  ;;  %v1230_v30 = vpop.f32.mrb[125].mxu0 }
 0x22e   : > { %2980 = vmatpush1.bf16.msra.mxu1 %v6454_v3  ;;  %2719 = vmatprep.mubr.bf16.mxu1 %v7486_v27  ;;  %v1602_v58 = vmax.f32 %v1230_v30, 0.0  ;;  %v1232_v37 = vpop.f32.mrb[126].mxu0  ;;  %v6470_v27 = vld [vmem:[%s8507_s2 + $0x3f4] ss:$8 sps:$4 sm:$0xff]  }
 0x22f   : > { %2981 = vmatprep.subr.bf16.mxu1 %v6460_v28  ;;  %v1603_v39 = vmax.f32 %v1232_v37, 0.0  ;;  %v1234_v25 = vpop.f32.mrb[127].mxu0 }
 0x230   : > { %v1604_v31 = vmax.f32 %v1234_v25, 0.0 }
 0x231   : > { %v7640_v2 = vpack.c.bf16 %v1603_v39, %v1601_v29  ;;  %v6485_v29 = vld [vmem:[%s8507_s2 + $0x440] ss:$8 sps:$4 sm:$0xff]  }
 0x232   : > { %2982 = vmatpush1.bf16.msra.mxu1 %v6458_v55  ;;  %v7645_v22 = vpack.c.bf16 %v1604_v31, %v1602_v58  ;;  %v6497_v31 = vld [vmem:[%s8507_s2 + $0x464] ss:$8 sps:$4 sm:$0xff]  }
 0x233   : > { %2983 = vmatprep.subr.bf16.mxu1 %v6463_v10  ;;  %v6489_v10 = vld [vmem:[%s8507_s2 + $0x450] ss:$8 sps:$4 sm:$0xff]  }
 0x234   : > { %v1238_v45 = vpop.f32.mrb[128].mxu0 }
 0x235   : > { %2720 = vmatmul.mubr.bf16.gmra.mrb[28].mxu1 %v7480_v26  ;;  %v1605_v48 = vmax.f32 %v1238_v45, 0.0  ;;  %v1240_v0 = vpop.f32.mrb[129].mxu0 }
 0x236   : > { %2984 = vmatpush1.bf16.msra.mxu1 %v6461_v42  ;;  %2987 = vmatprep.mubr.bf16.mxu1 %v7507_v44  ;;  %v1606_v49 = vmax.f32 %v1240_v0, 0.0  ;;  %v1242_v6 = vpop.f32.mrb[130].mxu0  ;;  %v6477_v44 = vld [vmem:[%s8507_s2 + $0x414] ss:$8 sps:$4 sm:$0xff]  }
 0x237   : > { %2985 = vmatprep.subr.bf16.mxu1 %v6470_v27  ;;  %v1607_v53 = vmax.f32 %v1242_v6, 0.0  ;;  %v1244_v24 = vpop.f32.mrb[131].mxu0 }
 0x238   : > { %v1608_v54 = vmax.f32 %v1244_v24, 0.0 }
 0x239   : > { %v7658_v26 = vpack.c.bf16 %v1607_v53, %v1605_v48  ;;  %v6495_v48 = vld [vmem:[%s8507_s2 + $0x460] ss:$8 sps:$4 sm:$0xff]  }
 0x23a   : > { %2986 = vmatpush1.bf16.msra.mxu1 %v6468_v57  ;;  %v7663_v21 = vpack.c.bf16 %v1608_v54, %v1606_v49  ;;  %v6504_v54 = vld [vmem:[%s8507_s2 + $0x484] ss:$8 sps:$4 sm:$0xff]  }
 0x23b   : > { %3293 = vmatprep.subr.bf16.mxu1 %v6473_v9  ;;  %v6499_v9 = vld [vmem:[%s8507_s2 + $0x470] ss:$8 sps:$4 sm:$0xff]  }
 0x23c   : > { %v1248_v59 = vpop.f32.mrb[132].mxu0 }
 0x23d   : > { %2988 = vmatmul.mubr.bf16.vlgmr.msra.gmra.mrb[0].mxu1 %v7501_v43  ;;  %v1609_v41 = vmax.f32 %v1248_v59, 0.0  ;;  %v1250_v62 = vpop.f32.mrb[133].mxu0 }
 0x23e   : > { %3294 = vmatpush1.bf16.msra.mxu1 %v6471_v36  ;;  %2997 = vmatprep.mubr.bf16.mxu1 %v7528_v61  ;;  %v1610_v5 = vmax.f32 %v1250_v62, 0.0  ;;  %v1252_v1 = vpop.f32.mrb[134].mxu0  ;;  %v6589_v61 = vld [vmem:[#allocation2 + $0x60] ss:$8 sps:$4 sm:$0xff]  }
 0x23f   : > { %3295 = vmatprep.subr.bf16.mxu1 %v6477_v44  ;;  %v1611_v4 = vmax.f32 %v1252_v1, 0.0  ;;  %v1254_v51 = vpop.f32.mrb[135].mxu0  ;;  %4487 = vmatpush1.bf16.msra.mxu0 %v6589_v61  ;;  %v6510_v61 = vld [vmem:[%s8507_s2 + $0x4a4] ss:$8 sps:$4 sm:$0xff]  }
 0x240   : > { %v1612_v8 = vmax.f32 %v1254_v51, 0.0 }
 0x241   : > { %v7676_v43 = vpack.c.bf16 %v1611_v4, %v1609_v41  ;;  %v6502_v41 = vld [vmem:[%s8507_s2 + $0x480] ss:$8 sps:$4 sm:$0xff]  }
 0x242   : > { %3296 = vmatpush1.bf16.msra.mxu1 %v6475_v63  ;;  %v7681_v47 = vpack.c.bf16 %v1612_v8, %v1610_v5  ;;  %v6505_v5 = vld [vmem:[%s8507_s2 + $0x490] ss:$8 sps:$4 sm:$0xff]  }
 0x243   : > { %3297 = vmatprep.subr.bf16.mxu1 %v6480_v19  ;;  %v6613_v8 = vld [vmem:[#allocation2 + $0x70] ss:$8 sps:$4 sm:$0xff]  }
 0x244   : > { %v1258_v56 = vpop.f32.mrb[136].mxu0 }
 0x245   : > { %2998 = vmatmul.mubr.bf16.gmra.mrb[4].mxu1 %v7522_v60  ;;  %v1613_v16 = vmax.f32 %v1258_v56, 0.0  ;;  %v1260_v17 = vpop.f32.mrb[137].mxu0 }
 0x246   : > { %3298 = vmatpush1.bf16.msra.mxu1 %v6478_v35  ;;  %3007 = vmatprep.mubr.bf16.mxu1 %v7549_v15  ;;  %v1614_v18 = vmax.f32 %v1260_v17, 0.0  ;;  %v1262_v50 = vpop.f32.mrb[138].mxu0  ;;  %v6491_v15 = vld [vmem:[%s8507_s2 + $0x454] ss:$8 sps:$4 sm:$0xff]  }
 0x247   : > { %3299 = vmatprep.subr.bf16.mxu1 %v6484_v40  ;;  %v1615_v3 = vmax.f32 %v1262_v50, 0.0  ;;  %v1264_v28 = vpop.f32.mrb[139].mxu0  ;;  %v6615_v35 = vld [vmem:[#allocation2 + $0x74] ss:$8 sps:$4 sm:$0xff]  }
 0x248   : > { %v1616_v60 = vmax.f32 %v1264_v28, 0.0  ;;  %4488 = vmatprep.subr.bf16.mxu0 %v6615_v35  ;;  %v6513_v17 = vld [vmem:[%s8507_s2 + $0x4b4] ss:$8 sps:$4 sm:$0xff]  }
 0x249   : > { %v7694_v46 = vpack.c.bf16 %v1615_v3, %v1613_v16  ;;  %4489 = vmatpush1.bf16.msra.mxu0 %v6613_v8 }
 0x24a   : > { %3300 = vmatpush1.bf16.msra.mxu1 %v6482_v20  ;;  %v7699_v30 = vpack.c.bf16 %v1616_v60, %v1614_v18  ;;  %v6516_v60 = vld [vmem:[%s8507_s2 + $0x4c4] ss:$8 sps:$4 sm:$0xff]  }
 0x24b   : > { %3301 = vmatprep.subr.bf16.mxu1 %v6487_v14  ;;  %v6511_v14 = vld [vmem:[%s8507_s2 + $0x4b0] ss:$8 sps:$4 sm:$0xff]  }
 0x24c   : > { %v1268_v55 = vpop.f32.mrb[140].mxu0 }
 0x24d   : > { %3008 = vmatmul.mubr.bf16.gmra.mrb[8].mxu1 %v7543_v12  ;;  %v1617_v58 = vmax.f32 %v1268_v55, 0.0  ;;  %v1270_v37 = vpop.f32.mrb[141].mxu0 }
 0x24e   : > { %3302 = vmatpush1.bf16.msra.mxu1 %v6485_v29  ;;  %3017 = vmatprep.mubr.bf16.mxu1 %v7570_v13  ;;  %v1618_v39 = vmax.f32 %v1270_v37, 0.0  ;;  %v1272_v25 = vpop.f32.mrb[142].mxu0  ;;  %v6501_v13 = vld [vmem:[%s8507_s2 + $0x474] ss:$8 sps:$4 sm:$0xff]  }
 0x24f   : > { %3303 = vmatprep.subr.bf16.mxu1 %v6491_v15  ;;  %v1619_v42 = vmax.f32 %v1272_v25, 0.0  ;;  %v1274_v27 = vpop.f32.mrb[143].mxu0 }
 0x250   : > { %v1620_v45 = vmax.f32 %v1274_v27, 0.0 }
 0x251   : > { %v7712_v12 = vpack.c.bf16 %v1619_v42, %v1617_v58  ;;  %v6514_v58 = vld [vmem:[%s8507_s2 + $0x4c0] ss:$8 sps:$4 sm:$0xff]  }
 0x252   : > { %3304 = vmatpush1.bf16.msra.mxu1 %v6489_v10  ;;  %v7717_v0 = vpack.c.bf16 %v1620_v45, %v1618_v39  ;;  %v6525_v45 = vld [vmem:[%s8507_s2 + $0x4e4] ss:$8 sps:$4 sm:$0xff]  }
 0x253   : > { %3305 = vmatprep.subr.bf16.mxu1 %v6497_v31  ;;  %v6520_v31 = vld [vmem:[%s8507_s2 + $0x4d0] ss:$8 sps:$4 sm:$0xff]  }
 0x254   : > { %v1278_v57 = vpop.f32.mrb[144].mxu0 }
 0x255   : > { %3018 = vmatmul.mubr.bf16.gmra.mrb[12].mxu1 %v7564_v38  ;;  %v1621_v49 = vmax.f32 %v1278_v57, 0.0  ;;  %v1280_v6 = vpop.f32.mrb[145].mxu0 }
 0x256   : > { %3306 = vmatpush1.bf16.msra.mxu1 %v6495_v48  ;;  %3027 = vmatprep.mubr.bf16.mxu1 %v7591_v34  ;;  %v1622_v53 = vmax.f32 %v1280_v6, 0.0  ;;  %v1282_v24 = vpop.f32.mrb[146].mxu0  ;;  %v6507_v34 = vld [vmem:[%s8507_s2 + $0x494] ss:$8 sps:$4 sm:$0xff]  }
 0x257   : > { %3307 = vmatprep.subr.bf16.mxu1 %v6501_v13  ;;  %v1623_v36 = vmax.f32 %v1282_v24, 0.0  ;;  %v1284_v44 = vpop.f32.mrb[147].mxu0 }
 0x258   : > { %v1624_v59 = vmax.f32 %v1284_v44, 0.0 }
 0x259   : > { %v7730_v38 = vpack.c.bf16 %v1623_v36, %v1621_v49  ;;  %v6523_v49 = vld [vmem:[%s8507_s2 + $0x4e0] ss:$8 sps:$4 sm:$0xff]  }
 0x25a   : > { %3308 = vmatpush1.bf16.msra.mxu1 %v6499_v9  ;;  %v7735_v62 = vpack.c.bf16 %v1624_v59, %v1622_v53  ;;  %v6531_v59 = vld [vmem:[%s8507_s2 + $0x504] ss:$8 sps:$4 sm:$0xff]  }
 0x25b   : > { %3309 = vmatprep.subr.bf16.mxu1 %v6504_v54  ;;  %v6526_v54 = vld [vmem:[%s8507_s2 + $0x4f0] ss:$8 sps:$4 sm:$0xff]  }
 0x25c   : > { %v1288_v63 = vpop.f32.mrb[148].mxu0 }
 0x25d   : > { %3028 = vmatmul.mubr.bf16.gmra.mrb[16].mxu1 %v7585_v52  ;;  %v1625_v1 = vmax.f32 %v1288_v63, 0.0  ;;  %v1290_v19 = vpop.f32.mrb[149].mxu0 }
 0x25e   : > { %3310 = vmatpush1.bf16.msra.mxu1 %v6502_v41  ;;  %3037 = vmatprep.mubr.bf16.mxu1 %v7609_v7  ;;  %v1626_v4 = vmax.f32 %v1290_v19, 0.0  ;;  %v1292_v51 = vpop.f32.mrb[150].mxu0  ;;  %v6508_v7 = vld [vmem:[%s8507_s2 + $0x4a0] ss:$8 sps:$4 sm:$0xff]   ;;  %v6639_v19 = vld [vmem:[#allocation2 + $0x84] ss:$8 sps:$4 sm:$0xff]  }
 0x25f   : > { %3311 = vmatprep.subr.bf16.mxu1 %v6507_v34  ;;  %v1627_v11 = vmax.f32 %v1292_v51, 0.0  ;;  %v1294_v52 = vpop.f32.mrb[151].mxu0  ;;  %4490 = vmatprep.subr.bf16.mxu0 %v6639_v19 }
 0x260   : > { %v1628_v40 = vmax.f32 %v1294_v52, 0.0 }
 0x261   : > { %v7748_v56 = vpack.c.bf16 %v1627_v11, %v1625_v1 }
 0x262   : > { %3312 = vmatpush1.bf16.msra.mxu1 %v6505_v5  ;;  %v7753_v16 = vpack.c.bf16 %v1628_v40, %v1626_v4  ;;  %v6529_v5 = vld [vmem:[%s8507_s2 + $0x500] ss:$8 sps:$4 sm:$0xff]   ;;  %v6534_v4 = vld [vmem:[%s8507_s2 + $0x514] ss:$8 sps:$4 sm:$0xff]   ;;  %v6537_v40 = vld [vmem:[%s8507_s2 + $0x524] ss:$8 sps:$4 sm:$0xff]  }
 0x263   : > { %3313 = vmatprep.subr.bf16.mxu1 %v6510_v61  ;;  %v6532_v61 = vld [vmem:[%s8507_s2 + $0x510] ss:$8 sps:$4 sm:$0xff]  }
 0x264   : > { %v1298_v20 = vpop.f32.mrb[152].mxu0 }
 0x265   : > { %3038 = vmatmul.mubr.bf16.gmra.mrb[20].mxu1 %v7604_v33  ;;  %v1629_v18 = vmax.f32 %v1298_v20, 0.0  ;;  %v1300_v50 = vpop.f32.mrb[153].mxu0 }
 0x266   : > { %3314 = vmatpush1.bf16.msra.mxu1 %v6508_v7  ;;  %3047 = vmatprep.mubr.bf16.mxu1 %v7627_v32  ;;  %v1630_v3 = vmax.f32 %v1300_v50, 0.0  ;;  %v1302_v28 = vpop.f32.mrb[154].mxu0  ;;  %v6522_v32 = vld [vmem:[%s8507_s2 + $0x4d4] ss:$8 sps:$4 sm:$0xff]  }
 0x267   : > { %3315 = vmatprep.subr.bf16.mxu1 %v6513_v17  ;;  %v1631_v29 = vmax.f32 %v1302_v28, 0.0  ;;  %v1304_v15 = vpop.f32.mrb[155].mxu0 }
 0x268   : > { %v1632_v55 = vmax.f32 %v1304_v15, 0.0 }
 0x269   : > { %v7766_v33 = vpack.c.bf16 %v1631_v29, %v1629_v18  ;;  %v6535_v18 = vld [vmem:[%s8507_s2 + $0x520] ss:$8 sps:$4 sm:$0xff]  }
 0x26a   : > { %3316 = vmatpush1.bf16.msra.mxu1 %v6511_v14  ;;  %v7771_v37 = vpack.c.bf16 %v1632_v55, %v1630_v3  ;;  %v6546_v55 = vld [vmem:[%s8507_s2 + $0x544] ss:$8 sps:$4 sm:$0xff]  }
 0x26b   : > { %3317 = vmatprep.subr.bf16.mxu1 %v6516_v60  ;;  %v6538_v60 = vld [vmem:[%s8507_s2 + $0x530] ss:$8 sps:$4 sm:$0xff]  }
 0x26c   : > { %v1308_v10 = vpop.f32.mrb[156].mxu0 }
 0x26d   : > { %3048 = vmatmul.mubr.bf16.gmra.mrb[24].mxu1 %v7622_v23  ;;  %v1633_v39 = vmax.f32 %v1308_v10, 0.0  ;;  %v1310_v25 = vpop.f32.mrb[157].mxu0 }
 0x26e   : > { %3318 = vmatpush1.bf16.msra.mxu1 %v6514_v58  ;;  %3057 = vmatprep.mubr.bf16.mxu1 %v7645_v22  ;;  %v1634_v42 = vmax.f32 %v1310_v25, 0.0  ;;  %v1312_v27 = vpop.f32.mrb[158].mxu0  ;;  %v6528_v22 = vld [vmem:[%s8507_s2 + $0x4f4] ss:$8 sps:$4 sm:$0xff]  }
 0x26f   : > { %3319 = vmatprep.subr.bf16.mxu1 %v6522_v32  ;;  %v1635_v48 = vmax.f32 %v1312_v27, 0.0  ;;  %v1314_v13 = vpop.f32.mrb[159].mxu0 }
 0x270   : > { %v1636_v57 = vmax.f32 %v1314_v13, 0.0 }
 0x271   : > { %v7784_v23 = vpack.c.bf16 %v1635_v48, %v1633_v39  ;;  %v6544_v39 = vld [vmem:[%s8507_s2 + $0x540] ss:$8 sps:$4 sm:$0xff]  }
 0x272   : > { %3320 = vmatpush1.bf16.msra.mxu1 %v6520_v31  ;;  %v7789_v6 = vpack.c.bf16 %v1636_v57, %v1634_v42  ;;  %v6552_v57 = vld [vmem:[%s8507_s2 + $0x564] ss:$8 sps:$4 sm:$0xff]  }
 0x273   : > { %3321 = vmatprep.subr.bf16.mxu1 %v6525_v45  ;;  %v6547_v45 = vld [vmem:[%s8507_s2 + $0x550] ss:$8 sps:$4 sm:$0xff]  }
 0x274   : > { %v1318_v9 = vpop.f32.mrb[160].mxu0 }
 0x275   : > { %3058 = vmatmul.mubr.bf16.gmra.mrb[28].mxu1 %v7640_v2  ;;  %v1637_v53 = vmax.f32 %v1318_v9, 0.0  ;;  %v1320_v24 = vpop.f32.mrb[161].mxu0 }
 0x276   : > { %3322 = vmatpush1.bf16.msra.mxu1 %v6523_v49  ;;  %3325 = vmatprep.mubr.bf16.mxu1 %v7663_v21  ;;  %v1638_v36 = vmax.f32 %v1320_v24, 0.0  ;;  %v1322_v44 = vpop.f32.mrb[162].mxu0  ;;  %v6637_v21 = vld [vmem:[#allocation2 + $0x80] ss:$8 sps:$4 sm:$0xff]  }
 0x277   : > { %3323 = vmatprep.subr.bf16.mxu1 %v6528_v22  ;;  %v1639_v41 = vmax.f32 %v1322_v44, 0.0  ;;  %v1324_v34 = vpop.f32.mrb[163].mxu0  ;;  %4491 = vmatpush1.bf16.msra.mxu0 %v6637_v21  ;;  %v6558_v21 = vld [vmem:[%s8507_s2 + $0x584] ss:$8 sps:$4 sm:$0xff]  }
 0x278   : > { %v1640_v63 = vmax.f32 %v1324_v34, 0.0  ;;  %v6553_v34 = vld [vmem:[%s8507_s2 + $0x570] ss:$8 sps:$4 sm:$0xff]  }
 0x279   : > { %v7802_v2 = vpack.c.bf16 %v1639_v41, %v1637_v53  ;;  %v6550_v53 = vld [vmem:[%s8507_s2 + $0x560] ss:$8 sps:$4 sm:$0xff]   ;;  %v6642_v41 = vld [vmem:[#allocation2 + $0x94] ss:$8 sps:$4 sm:$0xff]  }
 0x27a   : > { %3324 = vmatpush1.bf16.msra.mxu1 %v6526_v54  ;;  %v7807_v1 = vpack.c.bf16 %v1640_v63, %v1638_v36  ;;  %4492 = vmatprep.subr.bf16.mxu0 %v6642_v41  ;;  %v6582_v41 = vld [vmem:[%s8507_s2 + $0x5f4] ss:$8 sps:$4 sm:$0xff]  }
 0x27b   : > { %3631 = vmatprep.subr.bf16.mxu1 %v6531_v59  ;;  %v6640_v59 = vld [vmem:[#allocation2 + $0x90] ss:$8 sps:$4 sm:$0xff]  }
 0x27c   : > { %v1328_v51 = vpop.f32.mrb[164].mxu0  ;;  %4493 = vmatpush1.bf16.msra.mxu0 %v6640_v59 }
 0x27d   : > { %3326 = vmatmul.mubr.bf16.vlgmr.msra.gmra.mrb[0].mxu1 %v7658_v26  ;;  %v1641_v8 = vmax.f32 %v1328_v51, 0.0  ;;  %v1330_v35 = vpop.f32.mrb[165].mxu0 }
 0x27e   : > { %3632 = vmatpush1.bf16.msra.mxu1 %v6529_v5  ;;  %3335 = vmatprep.mubr.bf16.mxu1 %v7681_v47  ;;  %v1642_v11 = vmax.f32 %v1330_v35, 0.0  ;;  %v1332_v52 = vpop.f32.mrb[166].mxu0  ;;  %v6540_v47 = vld [vmem:[%s8507_s2 + $0x534] ss:$8 sps:$4 sm:$0xff]  }
 0x27f   : > { %3633 = vmatprep.subr.bf16.mxu1 %v6534_v4  ;;  %v1643_v7 = vmax.f32 %v1332_v52, 0.0  ;;  %v1334_v17 = vpop.f32.mrb[167].mxu0  ;;  %v6561_v35 = vld [vmem:[%s8507_s2 + $0x594] ss:$8 sps:$4 sm:$0xff]  }
 0x280   : > { %v1644_v26 = vmax.f32 %v1334_v17, 0.0 }
 0x281   : > { %v7820_v20 = vpack.c.bf16 %v1643_v7, %v1641_v8  ;;  %v6556_v8 = vld [vmem:[%s8507_s2 + $0x580] ss:$8 sps:$4 sm:$0xff]  }
 0x282   : > { %3634 = vmatpush1.bf16.msra.mxu1 %v6532_v61  ;;  %v7825_v50 = vpack.c.bf16 %v1644_v26, %v1642_v11  ;;  %v6564_v26 = vld [vmem:[%s8507_s2 + $0x5a4] ss:$8 sps:$4 sm:$0xff]  }
 0x283   : > { %3635 = vmatprep.subr.bf16.mxu1 %v6537_v40  ;;  %v6559_v40 = vld [vmem:[%s8507_s2 + $0x590] ss:$8 sps:$4 sm:$0xff]  }
 0x284   : > { %v1338_v14 = vpop.f32.mrb[168].mxu0 }
 0x285   : > { %3336 = vmatmul.mubr.bf16.gmra.mrb[4].mxu1 %v7676_v43  ;;  %v1645_v3 = vmax.f32 %v1338_v14, 0.0  ;;  %v1340_v28 = vpop.f32.mrb[169].mxu0 }
 0x286   : > { %3636 = vmatpush1.bf16.msra.mxu1 %v6535_v18  ;;  %3345 = vmatprep.mubr.bf16.mxu1 %v7699_v30  ;;  %v1646_v29 = vmax.f32 %v1340_v28, 0.0  ;;  %v1342_v15 = vpop.f32.mrb[170].mxu0  ;;  %v6549_v30 = vld [vmem:[%s8507_s2 + $0x554] ss:$8 sps:$4 sm:$0xff]  }
 0x287   : > { %3637 = vmatprep.subr.bf16.mxu1 %v6540_v47  ;;  %v1647_v58 = vmax.f32 %v1342_v15, 0.0  ;;  %v1344_v32 = vpop.f32.mrb[171].mxu0 }
 0x288   : > { %v1648_v10 = vmax.f32 %v1344_v32, 0.0 }
 0x289   : > { %v7838_v43 = vpack.c.bf16 %v1647_v58, %v1645_v3  ;;  %v6562_v3 = vld [vmem:[%s8507_s2 + $0x5a0] ss:$8 sps:$4 sm:$0xff]  }
 0x28a   : > { %3638 = vmatpush1.bf16.msra.mxu1 %v6538_v60  ;;  %v7843_v25 = vpack.c.bf16 %v1648_v10, %v1646_v29  ;;  %v6573_v10 = vld [vmem:[%s8507_s2 + $0x5c4] ss:$8 sps:$4 sm:$0xff]  }
 0x28b   : > { %3639 = vmatprep.subr.bf16.mxu1 %v6546_v55  ;;  %v6568_v55 = vld [vmem:[%s8507_s2 + $0x5b0] ss:$8 sps:$4 sm:$0xff]  }
 0x28c   : > { %v1348_v31 = vpop.f32.mrb[172].mxu0 }
 0x28d   : > { %3346 = vmatmul.mubr.bf16.gmra.mrb[8].mxu1 %v7694_v46  ;;  %v1649_v42 = vmax.f32 %v1348_v31, 0.0  ;;  %v1350_v27 = vpop.f32.mrb[173].mxu0 }
 0x28e   : > { %3640 = vmatpush1.bf16.msra.mxu1 %v6544_v39  ;;  %3355 = vmatprep.mubr.bf16.mxu1 %v7717_v0  ;;  %v1650_v48 = vmax.f32 %v1350_v27, 0.0  ;;  %v1352_v13 = vpop.f32.mrb[174].mxu0  ;;  %v6555_v0 = vld [vmem:[%s8507_s2 + $0x574] ss:$8 sps:$4 sm:$0xff]  }
 0x28f   : > { %3641 = vmatprep.subr.bf16.mxu1 %v6549_v30  ;;  %v1651_v49 = vmax.f32 %v1352_v13, 0.0  ;;  %v1354_v22 = vpop.f32.mrb[175].mxu0 }
 0x290   : > { %v1652_v9 = vmax.f32 %v1354_v22, 0.0 }
 0x291   : > { %v7856_v46 = vpack.c.bf16 %v1651_v49, %v1649_v42  ;;  %v6571_v42 = vld [vmem:[%s8507_s2 + $0x5c0] ss:$8 sps:$4 sm:$0xff]  }
 0x292   : > { %3642 = vmatpush1.bf16.msra.mxu1 %v6547_v45  ;;  %v7861_v24 = vpack.c.bf16 %v1652_v9, %v1650_v48  ;;  %v6574_v48 = vld [vmem:[%s8507_s2 + $0x5d0] ss:$8 sps:$4 sm:$0xff]   ;;  %v6643_v9 = vld [vmem:[#allocation2 + $0xa0] ss:$8 sps:$4 sm:$0xff]  }
 0x293   : > { %3643 = vmatprep.subr.bf16.mxu1 %v6552_v57 }
 0x294   : > { %v1358_v54 = vpop.f32.mrb[176].mxu0 }
 0x295   : > { %3356 = vmatmul.mubr.bf16.gmra.mrb[12].mxu1 %v7712_v12  ;;  %v1653_v36 = vmax.f32 %v1358_v54, 0.0  ;;  %v1360_v44 = vpop.f32.mrb[177].mxu0 }
 0x296   : > { %3644 = vmatpush1.bf16.msra.mxu1 %v6550_v53  ;;  %3365 = vmatprep.mubr.bf16.mxu1 %v7735_v62  ;;  %v1654_v63 = vmax.f32 %v1360_v44, 0.0  ;;  %v1362_v5 = vpop.f32.mrb[178].mxu0  ;;  %v6645_v53 = vld [vmem:[#allocation2 + $0xa4] ss:$8 sps:$4 sm:$0xff]  }
 0x297   : > { %3645 = vmatprep.subr.bf16.mxu1 %v6555_v0  ;;  %v1655_v19 = vmax.f32 %v1362_v5, 0.0  ;;  %v1364_v12 = vpop.f32.mrb[179].mxu0  ;;  %v6579_v0 = vld [vmem:[%s8507_s2 + $0x5e4] ss:$8 sps:$4 sm:$0xff]   ;;  %4494 = vmatprep.subr.bf16.mxu0 %v6645_v53 }
 0x298   : > { %v1656_v4 = vmax.f32 %v1364_v12, 0.0  ;;  %4495 = vmatpush1.bf16.msra.mxu0 %v6643_v9  ;;  %v6580_v12 = vld [vmem:[%s8507_s2 + $0x5f0] ss:$8 sps:$4 sm:$0xff]   ;;  %v6600_v53 = vld [vmem:[%s8507_s2 + $0x644] ss:$8 sps:$4 sm:$0xff]  }
 0x299   : > { %v7874_v51 = vpack.c.bf16 %v1655_v19, %v1653_v36  ;;  %v6648_v19 = vld [vmem:[#allocation2 + $0xb4] ss:$8 sps:$4 sm:$0xff]  }
 0x29a   : > { %3646 = vmatpush1.bf16.msra.mxu1 %v6553_v34  ;;  %v7879_v62 = vpack.c.bf16 %v1656_v4, %v1654_v63  ;;  %4496 = vmatprep.subr.bf16.mxu0 %v6648_v19 }
 0x29b   : > { %3647 = vmatprep.subr.bf16.mxu1 %v6558_v21  ;;  %v6646_v21 = vld [vmem:[#allocation2 + $0xb0] ss:$8 sps:$4 sm:$0xff]  }
 0x29c   : > { %v1368_v61 = vpop.f32.mrb[180].mxu0  ;;  %4497 = vmatpush1.bf16.msra.mxu0 %v6646_v21 }
 0x29d   : > { %3366 = vmatmul.mubr.bf16.gmra.mrb[16].mxu1 %v7730_v38  ;;  %v1657_v11 = vmax.f32 %v1368_v61, 0.0  ;;  %v1370_v52 = vpop.f32.mrb[181].mxu0  ;;  %v6585_v61 = vld [vmem:[%s8507_s2 + $0x604] ss:$8 sps:$4 sm:$0xff]  }
 0x29e   : > { %3648 = vmatpush1.bf16.msra.mxu1 %v6556_v8  ;;  %3375 = vmatprep.mubr.bf16.mxu1 %v7753_v16  ;;  %v1658_v7 = vmax.f32 %v1370_v52, 0.0  ;;  %v1372_v17 = vpop.f32.mrb[182].mxu0  ;;  %v6570_v16 = vld [vmem:[%s8507_s2 + $0x5b4] ss:$8 sps:$4 sm:$0xff]  }
 0x29f   : > { %3649 = vmatprep.subr.bf16.mxu1 %v6561_v35  ;;  %v1659_v18 = vmax.f32 %v1372_v17, 0.0  ;;  %v1374_v47 = vpop.f32.mrb[183].mxu0  ;;  %v6651_v35 = vld [vmem:[#allocation2 + $0xc4] ss:$8 sps:$4 sm:$0xff]   ;;  %v6654_v17 = vld [vmem:[#allocation2 + $0xd4] ss:$8 sps:$4 sm:$0xff]  }
 0x2a0   : > { %v1660_v14 = vmax.f32 %v1374_v47, 0.0  ;;  %4498 = vmatprep.subr.bf16.mxu0 %v6651_v35 }
 0x2a1   : > { %v7892_v38 = vpack.c.bf16 %v1659_v18, %v1657_v11  ;;  %v6588_v18 = vld [vmem:[%s8507_s2 + $0x614] ss:$8 sps:$4 sm:$0xff]  }
 0x2a2   : > { %3650 = vmatpush1.bf16.msra.mxu1 %v6559_v40  ;;  %v7897_v28 = vpack.c.bf16 %v1660_v14, %v1658_v7  ;;  %v6649_v40 = vld [vmem:[#allocation2 + $0xc0] ss:$8 sps:$4 sm:$0xff]   ;;  %v6652_v14 = vld [vmem:[#allocation2 + $0xd0] ss:$8 sps:$4 sm:$0xff]  }
 0x2a3   : > { %3651 = vmatprep.subr.bf16.mxu1 %v6564_v26  ;;  %4499 = vmatpush1.bf16.msra.mxu0 %v6649_v40 }
 0x2a4   : > { %v1378_v60 = vpop.f32.mrb[184].mxu0  ;;  %4500 = vmatprep.subr.bf16.mxu0 %v6654_v17  ;;  %v6607_v17 = vld [vmem:[%s8507_s2 + $0x670] ss:$8 sps:$4 sm:$0xff]  }
 0x2a5   : > { %3376 = vmatmul.mubr.bf16.gmra.mrb[20].mxu1 %v7748_v56  ;;  %v1661_v29 = vmax.f32 %v1378_v60, 0.0  ;;  %v1380_v15 = vpop.f32.mrb[185].mxu0  ;;  %v6657_v60 = vld [vmem:[#allocation2 + $0xe4] ss:$8 sps:$4 sm:$0xff]  }
 0x2a6   : > { %3652 = vmatpush1.bf16.msra.mxu1 %v6562_v3  ;;  %3385 = vmatprep.mubr.bf16.mxu1 %v7771_v37  ;;  %v1662_v58 = vmax.f32 %v1380_v15, 0.0  ;;  %v1382_v32 = vpop.f32.mrb[186].mxu0  ;;  %v6576_v37 = vld [vmem:[%s8507_s2 + $0x5d4] ss:$8 sps:$4 sm:$0xff]  }
 0x2a7   : > { %3653 = vmatprep.subr.bf16.mxu1 %v6570_v16  ;;  %v1663_v39 = vmax.f32 %v1382_v32, 0.0  ;;  %v1384_v30 = vpop.f32.mrb[187].mxu0  ;;  %4501 = vmatpush1.bf16.msra.mxu0 %v6652_v14 }
 0x2a8   : > { %v1664_v31 = vmax.f32 %v1384_v30, 0.0  ;;  %4502 = vmatprep.subr.bf16.mxu0 %v6657_v60  ;;  %v6610_v60 = vld [vmem:[%s8507_s2 + $0x680] ss:$8 sps:$4 sm:$0xff]  }
 0x2a9   : > { %v7910_v56 = vpack.c.bf16 %v1663_v39, %v1661_v29  ;;  %v6586_v29 = vld [vmem:[%s8507_s2 + $0x610] ss:$8 sps:$4 sm:$0xff]   ;;  %v6655_v39 = vld [vmem:[#allocation2 + $0xe0] ss:$8 sps:$4 sm:$0xff]  }
 0x2aa   : > { %3654 = vmatpush1.bf16.msra.mxu1 %v6568_v55  ;;  %v7915_v27 = vpack.c.bf16 %v1664_v31, %v1662_v58  ;;  %v6594_v58 = vld [vmem:[%s8507_s2 + $0x624] ss:$8 sps:$4 sm:$0xff]   ;;  %v6660_v31 = vld [vmem:[#allocation2 + $0xf4] ss:$8 sps:$4 sm:$0xff]  }
 0x2ab   : > { %3655 = vmatprep.subr.bf16.mxu1 %v6573_v10  ;;  %4503 = vmatpush1.bf16.msra.mxu0 %v6655_v39  ;;  %v6621_v39 = vld [vmem:[%s8507_s2 + $0x6a4] ss:$8 sps:$4 sm:$0xff]  }
 0x2ac   : > { %v1388_v45 = vpop.f32.mrb[188].mxu0  ;;  %4504 = vmatprep.subr.bf16.mxu0 %v6660_v31 }
 0x2ad   : > { %3386 = vmatmul.mubr.bf16.gmra.mrb[24].mxu1 %v7766_v33  ;;  %v1665_v13 = vmax.f32 %v1388_v45, 0.0  ;;  %v1390_v57 = vpop.f32.mrb[189].mxu0 }
 0x2ae   : > { %3656 = vmatpush1.bf16.msra.mxu1 %v6571_v42  ;;  %3395 = vmatprep.mubr.bf16.mxu1 %v7789_v6  ;;  %v1666_v49 = vmax.f32 %v1390_v57, 0.0  ;;  %v1392_v22 = vpop.f32.mrb[190].mxu0  ;;  %v6577_v6 = vld [vmem:[%s8507_s2 + $0x5e0] ss:$8 sps:$4 sm:$0xff]  }
 0x2af   : > { %3657 = vmatprep.subr.bf16.mxu1 %v6576_v37  ;;  %v1667_v54 = vmax.f32 %v1392_v22, 0.0  ;;  %v1394_v33 = vpop.f32.mrb[191].mxu0  ;;  %v6597_v37 = vld [vmem:[%s8507_s2 + $0x634] ss:$8 sps:$4 sm:$0xff]  }
 0x2b0   : > { %v1668_v36 = vmax.f32 %v1394_v33, 0.0 }
 0x2b1   : > { %v7928_v44 = vpack.c.bf16 %v1667_v54, %v1665_v13 }
 0x2b2   : > { %3658 = vmatpush1.bf16.msra.mxu1 %v6574_v48  ;;  %v7933_v59 = vpack.c.bf16 %v1668_v36, %v1666_v49  ;;  %v6658_v48 = vld [vmem:[#allocation2 + $0xf0] ss:$8 sps:$4 sm:$0xff]   ;;  %v6598_v36 = vld [vmem:[%s8507_s2 + $0x640] ss:$8 sps:$4 sm:$0xff]  }
 0x2b3   : > { %3659 = vmatprep.subr.bf16.mxu1 %v6579_v0  ;;  %v6595_v49 = vld [vmem:[%s8507_s2 + $0x630] ss:$8 sps:$4 sm:$0xff]   ;;  %4505 = vmatpush1.bf16.msra.mxu0 %v6658_v48 }
 0x2b4   : > { %v1398_v34 = vpop.f32.mrb[192].mxu0 }
 0x2b5   : > { %3396 = vmatmul.mubr.bf16.gmra.mrb[28].mxu1 %v7784_v23  ;;  %v1669_v63 = vmax.f32 %v1398_v34, 0.0  ;;  %v1400_v5 = vpop.f32.mrb[193].mxu0 }
 0x2b6   : > { %3660 = vmatpush1.bf16.msra.mxu1 %v6577_v6  ;;  %3663 = vmatprep.mubr.bf16.mxu1 %v7807_v1  ;;  %v1670_v4 = vmax.f32 %v1400_v5, 0.0  ;;  %v1402_v8 = vpop.f32.mrb[194].mxu0  ;;  %v6583_v1 = vld [vmem:[%s8507_s2 + $0x600] ss:$8 sps:$4 sm:$0xff]   ;;  %v6601_v5 = vld [vmem:[%s8507_s2 + $0x650] ss:$8 sps:$4 sm:$0xff]  }
 0x2b7   : > { %3661 = vmatprep.subr.bf16.mxu1 %v6582_v41  ;;  %v1671_v23 = vmax.f32 %v1402_v8, 0.0  ;;  %v1404_v11 = vpop.f32.mrb[195].mxu0 }
 0x2b8   : > { %v1672_v52 = vmax.f32 %v1404_v11, 0.0 }
 0x2b9   : > { %v7946_v7 = vpack.c.bf16 %v1671_v23, %v1669_v63 }
 0x2ba   : > { %3662 = vmatpush1.bf16.msra.mxu1 %v6580_v12  ;;  %v7951_v26 = vpack.c.bf16 %v1672_v52, %v1670_v4  ;;  %v6606_v12 = vld [vmem:[%s8507_s2 + $0x664] ss:$8 sps:$4 sm:$0xff]  }
 0x2bb   : > { %3969 = vmatprep.subr.bf16.mxu1 %v6585_v61  ;;  %v6604_v61 = vld [vmem:[%s8507_s2 + $0x660] ss:$8 sps:$4 sm:$0xff]  }
 0x2bc   : > { %v1408_v47 = vpop.f32.mrb[196].mxu0 }
 0x2bd   : > { %3664 = vmatmul.mubr.bf16.vlgmr.msra.gmra.mrb[0].mxu1 %v7802_v2  ;;  %v1673_v3 = vmax.f32 %v1408_v47, 0.0  ;;  %v1410_v16 = vpop.f32.mrb[197].mxu0  ;;  %v6612_v47 = vld [vmem:[%s8507_s2 + $0x684] ss:$8 sps:$4 sm:$0xff]  }
 0x2be   : > { %3970 = vmatpush1.bf16.msra.mxu1 %v6583_v1  ;;  %3673 = vmatprep.mubr.bf16.mxu1 %v7825_v50  ;;  %v1674_v15 = vmax.f32 %v1410_v16, 0.0  ;;  %v1412_v55 = vpop.f32.mrb[198].mxu0  ;;  %v6592_v50 = vld [vmem:[%s8507_s2 + $0x620] ss:$8 sps:$4 sm:$0xff]  }
 0x2bf   : > { %3971 = vmatprep.subr.bf16.mxu1 %v6588_v18  ;;  %v1675_v32 = vmax.f32 %v1412_v55, 0.0  ;;  %v1414_v2 = vpop.f32.mrb[199].mxu0 }
 0x2c0   : > { %v1676_v10 = vmax.f32 %v1414_v2, 0.0 }
 0x2c1   : > { %v7964_v30 = vpack.c.bf16 %v1675_v32, %v1673_v3  ;;  %v6616_v32 = vld [vmem:[%s8507_s2 + $0x690] ss:$8 sps:$4 sm:$0xff]  }
 0x2c2   : > { %3972 = vmatpush1.bf16.msra.mxu1 %v6586_v29  ;;  %v7969_v42 = vpack.c.bf16 %v1676_v10, %v1674_v15 }
 0x2c3   : > { %3973 = vmatprep.subr.bf16.mxu1 %v6594_v58 }
 0x2c4   : > { %v1418_v45 = vpop.f32.mrb[200].mxu0 }
 0x2c5   : > { %3674 = vmatmul.mubr.bf16.gmra.mrb[4].mxu1 %v7820_v20  ;;  %v1677_v13 = vmax.f32 %v1418_v45, 0.0  ;;  %v1420_v57 = vpop.f32.mrb[201].mxu0  ;;  %v6619_v45 = vld [vmem:[%s8507_s2 + $0x6a0] ss:$8 sps:$4 sm:$0xff]  }
 0x2c6   : > { %3974 = vmatpush1.bf16.msra.mxu1 %v6592_v50  ;;  %3683 = vmatprep.mubr.bf16.mxu1 %v7843_v25  ;;  %v1678_v22 = vmax.f32 %v1420_v57, 0.0  ;;  %v1422_v9 = vpop.f32.mrb[202].mxu0  ;;  %v6603_v25 = vld [vmem:[%s8507_s2 + $0x654] ss:$8 sps:$4 sm:$0xff]  }
 0x2c7   : > { %3975 = vmatprep.subr.bf16.mxu1 %v6597_v37  ;;  %v1679_v0 = vmax.f32 %v1422_v9, 0.0  ;;  %v1424_v54 = vpop.f32.mrb[203].mxu0 }
 0x2c8   : > { %v1680_v20 = vmax.f32 %v1424_v54, 0.0 }
 0x2c9   : > { %v7982_v33 = vpack.c.bf16 %v1679_v0, %v1677_v13  ;;  %v6627_v0 = vld [vmem:[%s8507_s2 + $0x6c4] ss:$8 sps:$4 sm:$0xff]  }
 0x2ca   : > { %3976 = vmatpush1.bf16.msra.mxu1 %v6595_v49  ;;  %v7987_v6 = vpack.c.bf16 %v1680_v20, %v1678_v22  ;;  %v6622_v22 = vld [vmem:[%s8507_s2 + $0x6b0] ss:$8 sps:$4 sm:$0xff]  }
 0x2cb   : > { %3977 = vmatprep.subr.bf16.mxu1 %v6600_v53 }
 0x2cc   : > { %v1428_v41 = vpop.f32.mrb[204].mxu0 }
 0x2cd   : > { %3684 = vmatmul.mubr.bf16.gmra.mrb[8].mxu1 %v7838_v43  ;;  %v1681_v34 = vmax.f32 %v1428_v41, 0.0  ;;  %v1430_v63 = vpop.f32.mrb[205].mxu0 }
 0x2ce   : > { %3978 = vmatpush1.bf16.msra.mxu1 %v6598_v36  ;;  %3693 = vmatprep.mubr.bf16.mxu1 %v7861_v24  ;;  %v1682_v21 = vmax.f32 %v1430_v63, 0.0  ;;  %v1432_v19 = vpop.f32.mrb[206].mxu0  ;;  %v6609_v24 = vld [vmem:[%s8507_s2 + $0x674] ss:$8 sps:$4 sm:$0xff]  }
 0x2cf   : > { %3979 = vmatprep.subr.bf16.mxu1 %v6603_v25  ;;  %v1683_v4 = vmax.f32 %v1432_v19, 0.0  ;;  %v1434_v8 = vpop.f32.mrb[207].mxu0  ;;  %v6625_v25 = vld [vmem:[%s8507_s2 + $0x6c0] ss:$8 sps:$4 sm:$0xff]  }
 0x2d0   : > { %v1684_v35 = vmax.f32 %v1434_v8, 0.0 }
 0x2d1   : > { %v8000_v43 = vpack.c.bf16 %v1683_v4, %v1681_v34  ;;  %v6633_v4 = vld [vmem:[%s8507_s2 + $0x6e4] ss:$8 sps:$4 sm:$0xff]  }
 0x2d2   : > { %3980 = vmatpush1.bf16.msra.mxu1 %v6601_v5  ;;  %v8005_v23 = vpack.c.bf16 %v1684_v35, %v1682_v21  ;;  %v6628_v21 = vld [vmem:[%s8507_s2 + $0x6d0] ss:$8 sps:$4 sm:$0xff]  }
 0x2d3   : > { %3981 = vmatprep.subr.bf16.mxu1 %v6606_v12 }
 0x2d4   : > { %v1438_v11 = vpop.f32.mrb[208].mxu0 }
 0x2d5   : > { %3694 = vmatmul.mubr.bf16.gmra.mrb[12].mxu1 %v7856_v46  ;;  %v1685_v52 = vmax.f32 %v1438_v11, 0.0  ;;  %v1440_v40 = vpop.f32.mrb[209].mxu0 }
 0x2d6   : > { %3982 = vmatpush1.bf16.msra.mxu1 %v6604_v61  ;;  %3703 = vmatprep.mubr.bf16.mxu1 %v7879_v62  ;;  %v1686_v1 = vmax.f32 %v1440_v40, 0.0  ;;  %v1442_v18 = vpop.f32.mrb[210].mxu0  ;;  %v6618_v62 = vld [vmem:[%s8507_s2 + $0x694] ss:$8 sps:$4 sm:$0xff]   ;;  %v8108_v40 = vld [vmem:[#allocation4 + $0x40] ss:$8 sps:$4 sm:$0xff]  }
 0x2d7   : > { %3983 = vmatprep.subr.bf16.mxu1 %v6609_v24  ;;  %v1687_v14 = vmax.f32 %v1442_v18, 0.0  ;;  %v1444_v3 = vpop.f32.mrb[211].mxu0  ;;  %v6631_v24 = vld [vmem:[%s8507_s2 + $0x6e0] ss:$8 sps:$4 sm:$0xff]   ;;  %v8116_v18 = vld [vmem:[#allocation4 + $0x64] ss:$8 sps:$4 sm:$0xff]  }
 0x2d8   : > { %v1688_v16 = vmax.f32 %v1444_v3, 0.0  ;;  %v8126_v3 = vld [vmem:[#allocation4 + $0x70] ss:$8 sps:$4 sm:$0xff]  }
 0x2d9   : > { %v8018_v46 = vpack.c.bf16 %v1687_v14, %v1685_v52  ;;  %v6634_v52 = vld [vmem:[%s8507_s2 + $0x6f0] ss:$8 sps:$4 sm:$0xff]   ;;  %v8122_v14 = vld [vmem:[#allocation4 + $0x74] ss:$8 sps:$4 sm:$0xff]  }
 0x2da   : > { %3984 = vmatpush1.bf16.msra.mxu1 %v6607_v17  ;;  %v8023_v29 = vpack.c.bf16 %v1688_v16, %v1686_v1  ;;  %v8110_v17 = vld [vmem:[#allocation4 + $0x54] ss:$8 sps:$4 sm:$0xff]   ;;  %v8114_v1 = vld [vmem:[#allocation4 + $0x50] ss:$8 sps:$4 sm:$0xff]   ;;  %v8128_v16 = vld [vmem:[#allocation4 + $0x84] ss:$8 sps:$4 sm:$0xff]  }
 0x2db   : > { %3985 = vmatprep.subr.bf16.mxu1 %v6612_v47  ;;  %v8120_v47 = vld [vmem:[#allocation4 + $0x60] ss:$8 sps:$4 sm:$0xff]  }
 0x2dc   : > { %v1448_v15 = vpop.f32.mrb[212].mxu0 }
 0x2dd   : > { %3704 = vmatmul.mubr.bf16.gmra.mrb[16].mxu1 %v7874_v51  ;;  %v1689_v55 = vmax.f32 %v1448_v15, 0.0  ;;  %v1450_v58 = vpop.f32.mrb[213].mxu0  ;;  %v8144_v15 = vld [vmem:[#allocation4 + $0xa0] ss:$8 sps:$4 sm:$0xff]  }
 0x2de   : > { %3986 = vmatpush1.bf16.msra.mxu1 %v6610_v60  ;;  %3713 = vmatprep.mubr.bf16.mxu1 %v7897_v28  ;;  %v1690_v2 = vmax.f32 %v1450_v58, 0.0  ;;  %v1452_v10 = vpop.f32.mrb[214].mxu0  ;;  %v6624_v28 = vld [vmem:[%s8507_s2 + $0x6b4] ss:$8 sps:$4 sm:$0xff]   ;;  %v4114_v58 = vlaneseq }
 0x2df   : > { %3987 = vmatprep.subr.bf16.mxu1 %v6618_v62  ;;  %v1691_v31 = vmax.f32 %v1452_v10, 0.0  ;;  %v1454_v50 = vpop.f32.mrb[215].mxu0  ;;  %v8134_v60 = vld [vmem:[#allocation4 + $0x94] ss:$8 sps:$4 sm:$0xff]   ;;  %v8140_v62 = vld [vmem:[#allocation4 + $0xa4] ss:$8 sps:$4 sm:$0xff]  }
 0x2e0   : > { %v1692_v37 = vmax.f32 %v1454_v50, 0.0  ;;  %v8156_v10 = vshrl.u32 %v4114_v58, 7  ;;  %v8162_v50 = vld [vmem:[#allocation6] sm:$0xff] }
 0x2e1   : > { %v1807_v51 = vpack.c.bf16 %v1691_v31, %v1689_v55  ;;  %v8146_v55 = vld [vmem:[#allocation4 + $0xb4] ss:$8 sps:$4 sm:$0xff]  }
 0x2e2   : > { %3988 = vmatpush1.bf16.msra.mxu1 %v6616_v32  ;;  %v1808_v48 = vpack.c.bf16 %v1692_v37, %v1690_v2  ;;  %v8150_v32 = vld [vmem:[#allocation4 + $0xb0] ss:$8 sps:$4 sm:$0xff]   ;;  %v8152_v2 = vld [vmem:[#allocation4 + $0xc4] ss:$8 sps:$4 sm:$0xff]   ;;  %v4116_v31 = vsub.s32 0, %v8156_v10  ;;  %v4188_v37 = vsub.s32 3, %v8156_v10 }
 0x2e3   : > { %3989 = vmatprep.subr.bf16.mxu1 %v6621_v39  ;;  %v8158_v39 = vld [vmem:[#allocation4 + $0xc0] ss:$8 sps:$4 sm:$0xff]  }
 0x2e4   : > { %v1458_v13 = vpop.f32.mrb[216].mxu0 }
 0x2e5   : > { %3714 = vmatmul.mubr.bf16.gmra.mrb[20].mxu1 %v7892_v38  ;;  %v1693_v57 = vmax.f32 %v1458_v13, 0.0  ;;  %v1460_v49 = vpop.f32.mrb[217].mxu0 }
 0x2e6   : > { %3990 = vmatpush1.bf16.msra.mxu1 %v6619_v45  ;;  %3723 = vmatprep.mubr.bf16.mxu1 %v7915_v27  ;;  %v1694_v9 = vmax.f32 %v1460_v49, 0.0  ;;  %v1462_v53 = vpop.f32.mrb[218].mxu0  ;;  %v6630_v27 = vld [vmem:[%s8507_s2 + $0x6d4] ss:$8 sps:$4 sm:$0xff]   ;;  %v8168_v45 = vrot.slane %v8162_v50, %v4116_v31 }
 0x2e7   : > { %3991 = vmatprep.subr.bf16.mxu1 %v6624_v28  ;;  %v1695_v54 = vmax.f32 %v1462_v53, 0.0  ;;  %v1464_v20 = vpop.f32.mrb[219].mxu0  ;;  %v8174_v28 = vrot.slane %v8162_v50, %v4188_v37 }
 0x2e8   : > { %v1696_v36 = vmax.f32 %v1464_v20, 0.0 }
 0x2e9   : > { %v1809_v38 = vpack.c.bf16 %v1695_v54, %v1693_v57 }
 0x2ea   : > { %3992 = vmatpush1.bf16.msra.mxu1 %v6622_v22  ;;  %v1810_v41 = vpack.c.bf16 %v1696_v36, %v1694_v9 }
 0x2eb   : > { %3993 = vmatprep.subr.bf16.mxu1 %v6627_v0 }
 0x2ec   : > { %v1468_v34 = vpop.f32.mrb[220].mxu0 }
 0x2ed   : > { %3724 = vmatmul.mubr.bf16.gmra.mrb[24].mxu1 %v7910_v56  ;;  %v1697_v63 = vmax.f32 %v1468_v34, 0.0  ;;  %v1470_v5 = vpop.f32.mrb[221].mxu0 }
 0x2ee   : > { %3994 = vmatpush1.bf16.msra.mxu1 %v6625_v25  ;;  %3733 = vmatprep.mubr.bf16.mxu1 %v7933_v59  ;;  %v1698_v19 = vmax.f32 %v1470_v5, 0.0  ;;  %v1472_v12 = vpop.f32.mrb[222].mxu0  ;;  %v6636_v59 = vld [vmem:[%s8507_s2 + $0x6f4] ss:$8 sps:$4 sm:$0xff]  }
 0x2ef   : > { %3995 = vmatprep.subr.bf16.mxu1 %v6630_v27  ;;  %v1699_v8 = vmax.f32 %v1472_v12, 0.0  ;;  %v1474_v35 = vpop.f32.mrb[223].mxu0 }
 0x2f0   : > { %v1700_v61 = vmax.f32 %v1474_v35, 0.0 }
 0x2f1   : > { %v1811_v56 = vpack.c.bf16 %v1699_v8, %v1697_v63 }
 0x2f2   : > { %3996 = vmatpush1.bf16.msra.mxu1 %v6628_v21  ;;  %v1812_v11 = vpack.c.bf16 %v1700_v61, %v1698_v19 }
 0x2f3   : > { %3997 = vmatprep.subr.bf16.mxu1 %v6633_v4 }
 0x2f5   : > { %3734 = vmatmul.mubr.bf16.gmra.mrb[28].mxu1 %v7928_v44  ;;  %v6663_v44 = vld [vmem:[#allocation4 + $0x4] ss:$8 sps:$4 sm:$0xff]  }
 0x2f6   : > { %3998 = vmatpush1.bf16.msra.mxu1 %v6631_v24  ;;  %4001 = vmatprep.mubr.bf16.mxu1 %v7951_v26  ;;  %v8086_v26 = vld [vmem:[#allocation4 + $0x14] ss:$8 sps:$4 sm:$0xff]  }
 0x2f7   : > { %3999 = vmatprep.subr.bf16.mxu1 %v6636_v59  ;;  %4907 = vmatprep.subr.bf16.mxu0 %v6663_v44 }
 0x2fa   : > { %4000 = vmatpush1.bf16.msra.mxu1 %v6634_v52 }
 0x2fb   : > { %5949 = vmatprep.subr.bf16.mxu1 %v6663_v44 }
 0x2fd   : > { %4002 = vmatmul.mubr.bf16.vlgmr.msra.gmra.mrb[0].mxu1 %v7946_v7  ;;  %v8084_v7 = vld [vmem:[#allocation4] ss:$8 sps:$4 sm:$0xff]  }
 0x2fe   : > { %4011 = vmatprep.mubr.bf16.mxu1 %v7969_v42  ;;  %5965 = vmatpush1.bf16.msra.mxu1 %v8084_v7  ;;  %v8092_v42 = vld [vmem:[#allocation4 + $0x24] ss:$8 sps:$4 sm:$0xff]  }
 0x2ff   : > { %5950 = vmatprep.subr.bf16.mxu1 %v8086_v26 }
 0x305   : > { %4012 = vmatmul.mubr.bf16.gmra.mrb[4].mxu1 %v7964_v30  ;;  %v8090_v30 = vld [vmem:[#allocation4 + $0x10] ss:$8 sps:$4 sm:$0xff]  }
 0x306   : > { %4021 = vmatprep.mubr.bf16.mxu1 %v7987_v6  ;;  %5966 = vmatpush1.bf16.msra.mxu1 %v8090_v30  ;;  %v8098_v6 = vld [vmem:[#allocation4 + $0x34] ss:$8 sps:$4 sm:$0xff]  }
 0x307   : > { %5951 = vmatprep.subr.bf16.mxu1 %v8092_v42 }
 0x30d   : > { %4022 = vmatmul.mubr.bf16.gmra.mrb[8].mxu1 %v7982_v33  ;;  %v8096_v33 = vld [vmem:[#allocation4 + $0x20] ss:$8 sps:$4 sm:$0xff]  }
 0x30e   : > { %4031 = vmatprep.mubr.bf16.mxu1 %v8005_v23  ;;  %5967 = vmatpush1.bf16.msra.mxu1 %v8096_v33  ;;  %v8104_v23 = vld [vmem:[#allocation4 + $0x44] ss:$8 sps:$4 sm:$0xff]  }
 0x30f   : > { %5952 = vmatprep.subr.bf16.mxu1 %v8098_v6 }
 0x315   : > { %4032 = vmatmul.mubr.bf16.gmra.mrb[12].mxu1 %v8000_v43  ;;  %v8102_v43 = vld [vmem:[#allocation4 + $0x30] ss:$8 sps:$4 sm:$0xff]  }
 0x316   : > { %4041 = vmatprep.mubr.bf16.mxu1 %v8023_v29  ;;  %5968 = vmatpush1.bf16.msra.mxu1 %v8102_v43  ;;  %v8138_v29 = vld [vmem:[#allocation4 + $0x90] ss:$8 sps:$4 sm:$0xff]  }
 0x317   : > { %5953 = vmatprep.subr.bf16.mxu1 %v8104_v23 }
 0x31a   : > { %5969 = vmatpush1.bf16.msra.mxu1 %v8108_v40 }
 0x31b   : > { %5954 = vmatprep.subr.bf16.mxu1 %v8110_v17 }
 0x31d   : > { %4042 = vmatmul.mubr.bf16.gmra.mrb[16].mxu1 %v8018_v46  ;;  %v8132_v46 = vld [vmem:[#allocation4 + $0x80] ss:$8 sps:$4 sm:$0xff]  }
 0x31e   : > { %4051 = vmatprep.mubr.bf16.mxu1 %v1808_v48  ;;  %5970 = vmatpush1.bf16.msra.mxu1 %v8114_v1 }
 0x31f   : > { %5955 = vmatprep.subr.bf16.mxu1 %v8116_v18 }
 0x322   : > { %5971 = vmatpush1.bf16.msra.mxu1 %v8120_v47 }
 0x323   : > { %5956 = vmatprep.subr.bf16.mxu1 %v8122_v14 }
 0x325   : > { %4052 = vmatmul.mubr.bf16.gmra.mrb[20].mxu1 %v1807_v51  ;;  %v8165_v51 = vld [vmem:[#allocation6 + $0x8] sm:$0xff] }
 0x326   : > { %4061 = vmatprep.mubr.bf16.mxu1 %v1810_v41  ;;  %5972 = vmatpush1.bf16.msra.mxu1 %v8126_v3  ;;  %v8171_v48 = vrot.slane %v8165_v51, %v4116_v31  ;;  %v8177_v57 = vrot.slane %v8165_v51, %v4188_v37 }
 0x327   : > { %5957 = vmatprep.subr.bf16.mxu1 %v8128_v16 }
 0x32a   : > { %5973 = vmatpush1.bf16.msra.mxu1 %v8132_v46 }
 0x32b   : > { %5958 = vmatprep.subr.bf16.mxu1 %v8134_v60 }
 0x32d   : > { %4062 = vmatmul.mubr.bf16.gmra.mrb[24].mxu1 %v1809_v38 }
 0x32e   : > { %4071 = vmatprep.mubr.bf16.mxu1 %v1812_v11  ;;  %5974 = vmatpush1.bf16.msra.mxu1 %v8138_v29 }
 0x32f   : > { %5959 = vmatprep.subr.bf16.mxu1 %v8140_v62 }
 0x332   : > { %5975 = vmatpush1.bf16.msra.mxu1 %v8144_v15 }
 0x333   : > { %5960 = vmatprep.subr.bf16.mxu1 %v8146_v55 }
 0x335   : > { %4072 = vmatmul.mubr.bf16.gmra.mrb[28].mxu1 %v1811_v56 }
 0x336   : > { %5976 = vmatpush1.bf16.msra.mxu1 %v8150_v32 }
 0x337   : > { %5961 = vmatprep.subr.bf16.mxu1 %v8152_v2 }
 0x33a   : > { %5977 = vmatpush1.bf16.msra.mxu1 %v8158_v39 }
 0x3d0   : > { %v4003_v13 = vpop.f32.mrb[0].mxu1 }
 0x3d1   : > { %v4122_v49 = vadd.f32 %v8168_v45, %v4003_v13  ;;  %v4005_v22 = vpop.f32.mrb[1].mxu1 }
 0x3d2   : > { %v4123_v9 = vadd.f32 %v8171_v48, %v4005_v22  ;;  %v4007_v53 = vpop.f32.mrb[2].mxu1 }
 0x3d3   : > { %v4194_v0 = vmul.f32 %v8174_v28, %v4122_v49  ;;  %v4124_v54 = vadd.f32 %v8168_v45, %v4007_v53  ;;  %v4009_v20 = vpop.f32.mrb[3].mxu1  ;;  %vm4154_vm2 = vcmp.ge.f32.partialorder %v4122_v49, 0.0 }
 0x3d4   : > { %v4195_v36 = vmul.f32 %v8177_v57, %v4123_v9  ;;  %v4125_v38 = vadd.f32 %v8171_v48, %v4009_v20  ;;  %vm4155_vm3 = vcmp.ge.f32.partialorder %v4123_v9, 0.0 }
 0x3d5   : > { %vm4156_vm4 = vcmp.ge.f32.partialorder %v4124_v54, 0.0  ;;  %v4196_v25 = vmul.f32 %v8174_v28, %v4124_v54  ;;  %v4226_v27 = vsel %vm4154_vm2, %v4122_v49, %v4194_v0 }
 0x3d6   : > { %vm4157_vm5 = vcmp.ge.f32.partialorder %v4125_v38, 0.0  ;;  %v4197_v41 = vmul.f32 %v8177_v57, %v4125_v38  ;;  %v4227_v21 = vsel %vm4155_vm3, %v4123_v9, %v4195_v36 }
 0x3d7   : > { %v4228_v34 = vsel %vm4156_vm4, %v4124_v54, %v4196_v25 }
 0x3d8   : > { %v4258_v63 = vpack.c.bf16 %v4228_v34, %v4226_v27  ;;  %v4013_v5 = vpop.f32.mrb[4].mxu1  ;;  %v4229_v19 = vsel %vm4157_vm5, %v4125_v38, %v4197_v41 }
 0x3d9   : > { %v4126_v12 = vadd.f32 %v8168_v45, %v4013_v5  ;;  %v4015_v4 = vpop.f32.mrb[5].mxu1  ;;  %v4259_v8 = vpack.c.bf16 %v4229_v19, %v4227_v21 }
 0x3da   : > { %v4127_v35 = vadd.f32 %v8171_v48, %v4015_v4  ;;  %v4017_v61 = vpop.f32.mrb[6].mxu1 }
 0x3db   : > { %v4198_v56 = vmul.f32 %v8174_v28, %v4126_v12  ;;  %v4128_v24 = vadd.f32 %v8168_v45, %v4017_v61  ;;  %v4019_v11 = vpop.f32.mrb[7].mxu1  ;;  %4506 = vmatprep.mubr.bf16.mxu0 %v4259_v8  ;;  %vm4158_vm6 = vcmp.ge.f32.partialorder %v4126_v12, 0.0 }
 0x3dc   : > { %v4199_v59 = vmul.f32 %v8177_v57, %v4127_v35  ;;  %v4129_v52 = vadd.f32 %v8171_v48, %v4019_v11  ;;  %4507 = vmatmul.mubr.bf16.vlgmr.msra.gmra.mrb[224].mxu0 %v4258_v63  ;;  %vm4159_vm7 = vcmp.ge.f32.partialorder %v4127_v35, 0.0 }
 0x3dd   : > { %vm4160_vm8 = vcmp.ge.f32.partialorder %v4128_v24, 0.0  ;;  %v4200_v44 = vmul.f32 %v8174_v28, %v4128_v24  ;;  %4908 = vmatpush1.bf16.msra.mxu0 %v8084_v7  ;;  %v4230_v31 = vsel %vm4158_vm6, %v4126_v12, %v4198_v56 }
 0x3de   : > { %vm4161_vm9 = vcmp.ge.f32.partialorder %v4129_v52, 0.0  ;;  %v4201_v58 = vmul.f32 %v8177_v57, %v4129_v52  ;;  %4909 = vmatprep.subr.bf16.mxu0 %v8086_v26  ;;  %v4231_v49 = vsel %vm4159_vm7, %v4127_v35, %v4199_v59 }
 0x3df   : > { %v4232_v37 = vsel %vm4160_vm8, %v4128_v24, %v4200_v44 }
 0x3e0   : > { %v4023_v13 = vpop.f32.mrb[8].mxu1  ;;  %v4233_v22 = vsel %vm4161_vm9, %v4129_v52, %v4201_v58  ;;  %v4260_v9 = vpack.c.bf16 %v4232_v37, %v4230_v31 }
 0x3e1   : > { %v4130_v53 = vadd.f32 %v8168_v45, %v4023_v13  ;;  %v4025_v0 = vpop.f32.mrb[9].mxu1  ;;  %v4261_v54 = vpack.c.bf16 %v4233_v22, %v4231_v49  ;;  %4910 = vmatpush1.bf16.msra.mxu0 %v8090_v30 }
 0x3e2   : > { %v4131_v20 = vadd.f32 %v8171_v48, %v4025_v0  ;;  %v4027_v7 = vpop.f32.mrb[10].mxu1  ;;  %4911 = vmatprep.subr.bf16.mxu0 %v8092_v42 }
 0x3e3   : > { %v4202_v36 = vmul.f32 %v8174_v28, %v4130_v53  ;;  %v4132_v26 = vadd.f32 %v8168_v45, %v4027_v7  ;;  %v4029_v38 = vpop.f32.mrb[11].mxu1  ;;  %4516 = vmatprep.mubr.bf16.mxu0 %v4261_v54  ;;  %vm4162_vm10 = vcmp.ge.f32.partialorder %v4130_v53, 0.0 }
 0x3e4   : > { %v4203_v25 = vmul.f32 %v8177_v57, %v4131_v20  ;;  %v4133_v41 = vadd.f32 %v8171_v48, %v4029_v38  ;;  %4517 = vmatmul.mubr.bf16.gmra.mrb[228].mxu0 %v4260_v9  ;;  %vm4163_vm11 = vcmp.ge.f32.partialorder %v4131_v20, 0.0 }
 0x3e5   : > { %vm4164_vm12 = vcmp.ge.f32.partialorder %v4132_v26, 0.0  ;;  %v4204_v30 = vmul.f32 %v8174_v28, %v4132_v26  ;;  %4912 = vmatpush1.bf16.msra.mxu0 %v8096_v33  ;;  %v4234_v27 = vsel %vm4162_vm10, %v4130_v53, %v4202_v36 }
 0x3e6   : > { %vm4165_vm13 = vcmp.ge.f32.partialorder %v4133_v41, 0.0  ;;  %v4205_v42 = vmul.f32 %v8177_v57, %v4133_v41  ;;  %4913 = vmatprep.subr.bf16.mxu0 %v8098_v6  ;;  %v4235_v5 = vsel %vm4163_vm11, %v4131_v20, %v4203_v25 }
 0x3e7   : > { %v4236_v34 = vsel %vm4164_vm12, %v4132_v26, %v4204_v30 }
 0x3e8   : > { %v4033_v63 = vpop.f32.mrb[12].mxu1  ;;  %v4237_v21 = vsel %vm4165_vm13, %v4133_v41, %v4205_v42  ;;  %v4262_v19 = vpack.c.bf16 %v4236_v34, %v4234_v27 }
 0x3e9   : > { %v4134_v12 = vadd.f32 %v8168_v45, %v4033_v63  ;;  %v4035_v4 = vpop.f32.mrb[13].mxu1  ;;  %v4263_v8 = vpack.c.bf16 %v4237_v21, %v4235_v5  ;;  %4914 = vmatpush1.bf16.msra.mxu0 %v8102_v43 }
 0x3ea   : > { %v4135_v35 = vadd.f32 %v8171_v48, %v4035_v4  ;;  %v4037_v33 = vpop.f32.mrb[14].mxu1  ;;  %4915 = vmatprep.subr.bf16.mxu0 %v8104_v23 }
 0x3eb   : > { %v4206_v61 = vmul.f32 %v8174_v28, %v4134_v12  ;;  %v4136_v6 = vadd.f32 %v8168_v45, %v4037_v33  ;;  %v4039_v56 = vpop.f32.mrb[15].mxu1  ;;  %4526 = vmatprep.mubr.bf16.mxu0 %v4263_v8  ;;  %vm4166_vm14 = vcmp.ge.f32.partialorder %v4134_v12, 0.0 }
 0x3ec   : > { %v4207_v24 = vmul.f32 %v8177_v57, %v4135_v35  ;;  %v4137_v11 = vadd.f32 %v8171_v48, %v4039_v56  ;;  %4527 = vmatmul.mubr.bf16.gmra.mrb[232].mxu0 %v4262_v19  ;;  %vm4167_vm15 = vcmp.ge.f32.partialorder %v4135_v35, 0.0 }
 0x3ed   : > { %vm4168_vm0 = vcmp.ge.f32.partialorder %v4136_v6, 0.0  ;;  %v4208_v43 = vmul.f32 %v8174_v28, %v4136_v6  ;;  %4916 = vmatpush1.bf16.msra.mxu0 %v8108_v40  ;;  %v4238_v59 = vsel %vm4166_vm14, %v4134_v12, %v4206_v61 }
 0x3ee   : > { %vm4169_vm1 = vcmp.ge.f32.partialorder %v4137_v11, 0.0  ;;  %v4209_v23 = vmul.f32 %v8177_v57, %v4137_v11  ;;  %4917 = vmatprep.subr.bf16.mxu0 %v8110_v17  ;;  %v4239_v58 = vsel %vm4167_vm15, %v4135_v35, %v4207_v24 }
 0x3ef   : > { %v4240_v52 = vsel %vm4168_vm0, %v4136_v6, %v4208_v43 }
 0x3f0   : > { %v4043_v44 = vpop.f32.mrb[16].mxu1  ;;  %v4241_v31 = vsel %vm4169_vm1, %v4137_v11, %v4209_v23  ;;  %v4264_v37 = vpack.c.bf16 %v4240_v52, %v4238_v59 }
 0x3f1   : > { %v4138_v13 = vadd.f32 %v8168_v45, %v4043_v44  ;;  %v4045_v49 = vpop.f32.mrb[17].mxu1  ;;  %v4265_v22 = vpack.c.bf16 %v4241_v31, %v4239_v58  ;;  %4918 = vmatpush1.bf16.msra.mxu0 %v8114_v1 }
 0x3f2   : > { %v4139_v9 = vadd.f32 %v8171_v48, %v4045_v49  ;;  %v4047_v40 = vpop.f32.mrb[18].mxu1  ;;  %4919 = vmatprep.subr.bf16.mxu0 %v8116_v18 }
 0x3f3   : > { %v4210_v53 = vmul.f32 %v8174_v28, %v4138_v13  ;;  %v4140_v17 = vadd.f32 %v8168_v45, %v4047_v40  ;;  %v4049_v0 = vpop.f32.mrb[19].mxu1  ;;  %4536 = vmatprep.mubr.bf16.mxu0 %v4265_v22  ;;  %vm4170_vm2 = vcmp.ge.f32.partialorder %v4138_v13, 0.0 }
 0x3f4   : > { %v4211_v54 = vmul.f32 %v8177_v57, %v4139_v9  ;;  %v4141_v20 = vadd.f32 %v8171_v48, %v4049_v0  ;;  %4537 = vmatmul.mubr.bf16.gmra.mrb[236].mxu0 %v4264_v37  ;;  %vm4171_vm3 = vcmp.ge.f32.partialorder %v4139_v9, 0.0 }
 0x3f5   : > { %vm4172_vm4 = vcmp.ge.f32.partialorder %v4140_v17, 0.0  ;;  %v4212_v1 = vmul.f32 %v8174_v28, %v4140_v17  ;;  %4920 = vmatpush1.bf16.msra.mxu0 %v8120_v47  ;;  %v4242_v7 = vsel %vm4170_vm2, %v4138_v13, %v4210_v53 }
 0x3f6   : > { %vm4173_vm5 = vcmp.ge.f32.partialorder %v4141_v20, 0.0  ;;  %v4213_v18 = vmul.f32 %v8177_v57, %v4141_v20  ;;  %4921 = vmatprep.subr.bf16.mxu0 %v8122_v14  ;;  %v4243_v38 = vsel %vm4171_vm3, %v4139_v9, %v4211_v54 }
 0x3f7   : > { %v4244_v36 = vsel %vm4172_vm4, %v4140_v17, %v4212_v1 }
 0x3f8   : > { %v4053_v26 = vpop.f32.mrb[20].mxu1  ;;  %v4245_v25 = vsel %vm4173_vm5, %v4141_v20, %v4213_v18  ;;  %v4266_v41 = vpack.c.bf16 %v4244_v36, %v4242_v7 }
 0x3f9   : > { %v4142_v30 = vadd.f32 %v8168_v45, %v4053_v26  ;;  %v4055_v42 = vpop.f32.mrb[21].mxu1  ;;  %v4267_v27 = vpack.c.bf16 %v4245_v25, %v4243_v38  ;;  %4922 = vmatpush1.bf16.msra.mxu0 %v8126_v3  ;;  %v6702_v38 = vld [vmem:[#allocation4 + $0xd4] ss:$8 sps:$4 sm:$0xff]   ;;  %v6703_v25 = vld [vmem:[#allocation4 + $0xe0] ss:$8 sps:$4 sm:$0xff]  }
 0x3fa   : > { %v4143_v34 = vadd.f32 %v8171_v48, %v4055_v42  ;;  %v4057_v47 = vpop.f32.mrb[22].mxu1  ;;  %4923 = vmatprep.subr.bf16.mxu0 %v8128_v16  ;;  %5962 = vmatprep.subr.bf16.mxu1 %v6702_v38 }
 0x3fb   : > { %v4214_v63 = vmul.f32 %v8174_v28, %v4142_v30  ;;  %v4144_v14 = vadd.f32 %v8168_v45, %v4057_v47  ;;  %v4059_v5 = vpop.f32.mrb[23].mxu1  ;;  %4546 = vmatprep.mubr.bf16.mxu0 %v4267_v27  ;;  %vm4174_vm6 = vcmp.ge.f32.partialorder %v4142_v30, 0.0 }
 0x3fc   : > { %v4215_v21 = vmul.f32 %v8177_v57, %v4143_v34  ;;  %v4145_v19 = vadd.f32 %v8171_v48, %v4059_v5  ;;  %4547 = vmatmul.mubr.bf16.gmra.mrb[240].mxu0 %v4266_v41  ;;  %vm4175_vm7 = vcmp.ge.f32.partialorder %v4143_v34, 0.0  ;;  %v4308_v41 = vsub.s32 1, %v8156_v10 }
 0x3fd   : > { %vm4176_vm8 = vcmp.ge.f32.partialorder %v4144_v14, 0.0  ;;  %v4216_v3 = vmul.f32 %v8174_v28, %v4144_v14  ;;  %4924 = vmatpush1.bf16.msra.mxu0 %v8132_v46  ;;  %v4246_v12 = vsel %vm4174_vm6, %v4142_v30, %v4214_v63  ;;  %v4621_v30 = vsub.s32 4, %v8156_v10 }
 0x3fe   : > { %vm4177_vm9 = vcmp.ge.f32.partialorder %v4145_v19, 0.0  ;;  %v4217_v16 = vmul.f32 %v8177_v57, %v4145_v19  ;;  %4925 = vmatprep.subr.bf16.mxu0 %v8134_v60  ;;  %v4247_v35 = vsel %vm4175_vm7, %v4143_v34, %v4215_v21  ;;  %v8271_v42 = vrot.slane %v8162_v50, %v4308_v41 }
 0x3ff   : > { %v4248_v4 = vsel %vm4176_vm8, %v4144_v14, %v4216_v3  ;;  %v8274_v27 = vrot.slane %v8165_v51, %v4308_v41  ;;  %v8277_v34 = vrot.slane %v8162_v50, %v4621_v30  ;;  %v8280_v63 = vrot.slane %v8165_v51, %v4621_v30 }
 0x400   : > { %v4063_v8 = vpop.f32.mrb[24].mxu1  ;;  %v4249_v33 = vsel %vm4177_vm9, %v4145_v19, %v4217_v16  ;;  %v4268_v61 = vpack.c.bf16 %v4248_v4, %v4246_v12 }
 0x401   : > { %v4146_v6 = vadd.f32 %v8168_v45, %v4063_v8  ;;  %v4065_v56 = vpop.f32.mrb[25].mxu1  ;;  %v4269_v24 = vpack.c.bf16 %v4249_v33, %v4247_v35  ;;  %4926 = vmatpush1.bf16.msra.mxu0 %v8138_v29 }
 0x402   : > { %v4147_v11 = vadd.f32 %v8171_v48, %v4065_v56  ;;  %v4067_v46 = vpop.f32.mrb[26].mxu1  ;;  %4927 = vmatprep.subr.bf16.mxu0 %v8140_v62 }
 0x403   : > { %v4218_v43 = vmul.f32 %v8174_v28, %v4146_v6  ;;  %v4148_v60 = vadd.f32 %v8168_v45, %v4067_v46  ;;  %v4069_v23 = vpop.f32.mrb[27].mxu1  ;;  %4556 = vmatprep.mubr.bf16.mxu0 %v4269_v24  ;;  %vm4178_vm10 = vcmp.ge.f32.partialorder %v4146_v6, 0.0 }
 0x404   : > { %v4219_v59 = vmul.f32 %v8177_v57, %v4147_v11  ;;  %v4149_v52 = vadd.f32 %v8171_v48, %v4069_v23  ;;  %4557 = vmatmul.mubr.bf16.gmra.mrb[244].mxu0 %v4268_v61  ;;  %vm4179_vm11 = vcmp.ge.f32.partialorder %v4147_v11, 0.0 }
 0x405   : > { %vm4180_vm12 = vcmp.ge.f32.partialorder %v4148_v60, 0.0  ;;  %v4220_v29 = vmul.f32 %v8174_v28, %v4148_v60  ;;  %4928 = vmatpush1.bf16.msra.mxu0 %v8144_v15  ;;  %v4250_v44 = vsel %vm4178_vm10, %v4146_v6, %v4218_v43 }
 0x406   : > { %vm4181_vm13 = vcmp.ge.f32.partialorder %v4149_v52, 0.0  ;;  %v4221_v62 = vmul.f32 %v8177_v57, %v4149_v52  ;;  %4929 = vmatprep.subr.bf16.mxu0 %v8146_v55  ;;  %v4251_v37 = vsel %vm4179_vm11, %v4147_v11, %v4219_v59 }
 0x407   : > { %v4252_v58 = vsel %vm4180_vm12, %v4148_v60, %v4220_v29 }
 0x408   : > { %v4073_v31 = vpop.f32.mrb[28].mxu1  ;;  %v4253_v13 = vsel %vm4181_vm13, %v4149_v52, %v4221_v62  ;;  %v4270_v49 = vpack.c.bf16 %v4252_v58, %v4250_v44 }
 0x409   : > { %v4150_v22 = vadd.f32 %v8168_v45, %v4073_v31  ;;  %v4075_v9 = vpop.f32.mrb[29].mxu1  ;;  %v4271_v40 = vpack.c.bf16 %v4253_v13, %v4251_v37  ;;  %4930 = vmatpush1.bf16.msra.mxu0 %v8150_v32 }
 0x40a   : > { %v4151_v53 = vadd.f32 %v8171_v48, %v4075_v9  ;;  %v4077_v15 = vpop.f32.mrb[30].mxu1  ;;  %4931 = vmatprep.subr.bf16.mxu0 %v8152_v2 }
 0x40b   : > { %v4222_v17 = vmul.f32 %v8174_v28, %v4150_v22  ;;  %v4152_v55 = vadd.f32 %v8168_v45, %v4077_v15  ;;  %v4079_v0 = vpop.f32.mrb[31].mxu1  ;;  %4566 = vmatprep.mubr.bf16.mxu0 %v4271_v40  ;;  %vm4182_vm14 = vcmp.ge.f32.partialorder %v4150_v22, 0.0 }
 0x40c   : > { %v4223_v54 = vmul.f32 %v8177_v57, %v4151_v53  ;;  %v4153_v20 = vadd.f32 %v8171_v48, %v4079_v0  ;;  %4567 = vmatmul.mubr.bf16.gmra.mrb[248].mxu0 %v4270_v49  ;;  %vm4183_vm15 = vcmp.ge.f32.partialorder %v4151_v53, 0.0  ;;  %v6700_v48 = vld [vmem:[#allocation4 + $0xd0] ss:$8 sps:$4 sm:$0xff]  }
 0x40d   : > { %vm4184_vm0 = vcmp.ge.f32.partialorder %v4152_v55, 0.0  ;;  %v4224_v32 = vmul.f32 %v8174_v28, %v4152_v55  ;;  %4932 = vmatpush1.bf16.msra.mxu0 %v8158_v39  ;;  %v4254_v1 = vsel %vm4182_vm14, %v4150_v22, %v4222_v17  ;;  %5978 = vmatpush1.bf16.msra.mxu1 %v6700_v48  ;;  %v6705_v28 = vld [vmem:[#allocation4 + $0xe4] ss:$8 sps:$4 sm:$0xff]   ;;  %v6708_v39 = vld [vmem:[#allocation4 + $0xf4] ss:$8 sps:$4 sm:$0xff]  }
 0x40e   : > { %vm4185_vm1 = vcmp.ge.f32.partialorder %v4153_v20, 0.0  ;;  %v4225_v2 = vmul.f32 %v8177_v57, %v4153_v20  ;;  %v4255_v45 = vsel %vm4183_vm15, %v4151_v53, %v4223_v54  ;;  %4933 = vmatprep.subr.bf16.mxu0 %v6702_v38  ;;  %5963 = vmatprep.subr.bf16.mxu1 %v6705_v28  ;;  %v6706_v57 = vld [vmem:[#allocation4 + $0xf0] ss:$8 sps:$4 sm:$0xff]  }
 0x40f   : > { %v4256_v18 = vsel %vm4184_vm0, %v4152_v55, %v4224_v32 }
 0x410   : > { %v4257_v7 = vsel %vm4185_vm1, %v4153_v20, %v4225_v2  ;;  %v4272_v36 = vpack.c.bf16 %v4256_v18, %v4254_v1 }
 0x411   : > { %v4273_v26 = vpack.c.bf16 %v4257_v7, %v4255_v45  ;;  %4934 = vmatpush1.bf16.msra.mxu0 %v6700_v48  ;;  %5979 = vmatpush1.bf16.msra.mxu1 %v6703_v25 }
 0x412   : > { %4935 = vmatprep.subr.bf16.mxu0 %v6705_v28  ;;  %5964 = vmatprep.subr.bf16.mxu1 %v6708_v39 }
 0x413   : > { %4576 = vmatprep.mubr.bf16.mxu0 %v4273_v26 }
 0x414   : > { %4577 = vmatmul.mubr.bf16.gmra.mrb[252].mxu0 %v4272_v36 }
 0x415   : > { %4936 = vmatpush1.bf16.msra.mxu0 %v6703_v25  ;;  %5980 = vmatpush1.bf16.msra.mxu1 %v6706_v57 }
 0x416   : > { %4937 = vmatprep.subr.bf16.mxu0 %v6708_v39 }
 0x419   : > { %4938 = vmatpush1.bf16.msra.mxu0 %v6706_v57 }
 0x4af   : > { %v4508_v47 = vpop.f32.mrb[224].mxu0 }
 0x4b0   : > { %v4509_v14 = vadd.f32 %v4508_v47, %v8271_v42  ;;  %v4510_v5 = vpop.f32.mrb[225].mxu0 }
 0x4b1   : > { %v4511_v21 = vadd.f32 %v4510_v5, %v8274_v27  ;;  %v4512_v19 = vpop.f32.mrb[226].mxu0 }
 0x4b2   : > { %v4627_v3 = vmul.f32 %v8277_v34, %v4509_v14  ;;  %v4513_v16 = vadd.f32 %v4512_v19, %v8271_v42  ;;  %v4514_v12 = vpop.f32.mrb[227].mxu0  ;;  %vm4587_vm2 = vcmp.ge.f32.partialorder %v4509_v14, 0.0 }
 0x4b3   : > { %v4628_v4 = vmul.f32 %v8280_v63, %v4511_v21  ;;  %v4515_v8 = vadd.f32 %v4514_v12, %v8274_v27  ;;  %vm4588_vm3 = vcmp.ge.f32.partialorder %v4511_v21, 0.0 }
 0x4b4   : > { %vm4589_vm4 = vcmp.ge.f32.partialorder %v4513_v16, 0.0  ;;  %v4629_v35 = vmul.f32 %v8277_v34, %v4513_v16  ;;  %v4659_v61 = vsel %vm4587_vm2, %v4509_v14, %v4627_v3 }
 0x4b5   : > { %vm4590_vm5 = vcmp.ge.f32.partialorder %v4515_v8, 0.0  ;;  %v4630_v33 = vmul.f32 %v8280_v63, %v4515_v8  ;;  %v4660_v11 = vsel %vm4588_vm3, %v4511_v21, %v4628_v4 }
 0x4b6   : > { %v4661_v6 = vsel %vm4589_vm4, %v4513_v16, %v4629_v35 }
 0x4b7   : > { %v4691_v56 = vpack.c.bf16 %v4661_v6, %v4659_v61  ;;  %v4518_v24 = vpop.f32.mrb[228].mxu0  ;;  %v4662_v46 = vsel %vm4590_vm5, %v4515_v8, %v4630_v33 }
 0x4b8   : > { %v4519_v43 = vadd.f32 %v4518_v24, %v8271_v42  ;;  %v4520_v60 = vpop.f32.mrb[229].mxu0  ;;  %v4692_v23 = vpack.c.bf16 %v4662_v46, %v4660_v11 }
 0x4b9   : > { %v4521_v59 = vadd.f32 %v4520_v60, %v8274_v27  ;;  %v4522_v52 = vpop.f32.mrb[230].mxu0 }
 0x4ba   : > { %v4631_v29 = vmul.f32 %v8277_v34, %v4519_v43  ;;  %v4523_v62 = vadd.f32 %v4522_v52, %v8271_v42  ;;  %v4524_v44 = vpop.f32.mrb[231].mxu0  ;;  %4939 = vmatprep.mubr.bf16.mxu0 %v4692_v23  ;;  %vm4591_vm6 = vcmp.ge.f32.partialorder %v4519_v43, 0.0 }
 0x4bb   : > { %v4632_v58 = vmul.f32 %v8280_v63, %v4521_v59  ;;  %v4525_v31 = vadd.f32 %v4524_v44, %v8274_v27  ;;  %4940 = vmatmul.mubr.bf16.vlgmr.msra.gmra.mrb[0].mxu0 %v4691_v56  ;;  %vm4592_vm7 = vcmp.ge.f32.partialorder %v4521_v59, 0.0 }
 0x4bc   : > { %vm4593_vm8 = vcmp.ge.f32.partialorder %v4523_v62, 0.0  ;;  %v4633_v37 = vmul.f32 %v8277_v34, %v4523_v62  ;;  %v4663_v49 = vsel %vm4591_vm6, %v4519_v43, %v4631_v29 }
 0x4bd   : > { %vm4594_vm9 = vcmp.ge.f32.partialorder %v4525_v31, 0.0  ;;  %v4634_v13 = vmul.f32 %v8280_v63, %v4525_v31  ;;  %v4664_v53 = vsel %vm4592_vm7, %v4521_v59, %v4632_v58 }
 0x4be   : > { %v4665_v22 = vsel %vm4593_vm8, %v4523_v62, %v4633_v37 }
 0x4bf   : > { %v4693_v9 = vpack.c.bf16 %v4665_v22, %v4663_v49  ;;  %v4528_v40 = vpop.f32.mrb[232].mxu0  ;;  %v4666_v15 = vsel %vm4594_vm9, %v4525_v31, %v4634_v13 }
 0x4c0   : > { %v4529_v17 = vadd.f32 %v4528_v40, %v8271_v42  ;;  %v4530_v55 = vpop.f32.mrb[233].mxu0  ;;  %v4694_v0 = vpack.c.bf16 %v4666_v15, %v4664_v53 }
 0x4c1   : > { %v4531_v54 = vadd.f32 %v4530_v55, %v8274_v27  ;;  %v4532_v20 = vpop.f32.mrb[234].mxu0 }
 0x4c2   : > { %v4635_v32 = vmul.f32 %v8277_v34, %v4529_v17  ;;  %v4533_v2 = vadd.f32 %v4532_v20, %v8271_v42  ;;  %v4534_v1 = vpop.f32.mrb[235].mxu0  ;;  %4949 = vmatprep.mubr.bf16.mxu0 %v4694_v0  ;;  %vm4595_vm10 = vcmp.ge.f32.partialorder %v4529_v17, 0.0 }
 0x4c3   : > { %v4636_v18 = vmul.f32 %v8280_v63, %v4531_v54  ;;  %v4535_v45 = vadd.f32 %v4534_v1, %v8274_v27  ;;  %4950 = vmatmul.mubr.bf16.gmra.mrb[4].mxu0 %v4693_v9  ;;  %vm4596_vm11 = vcmp.ge.f32.partialorder %v4531_v54, 0.0 }
 0x4c4   : > { %vm4597_vm12 = vcmp.ge.f32.partialorder %v4533_v2, 0.0  ;;  %v4637_v7 = vmul.f32 %v8277_v34, %v4533_v2  ;;  %v4667_v26 = vsel %vm4595_vm10, %v4529_v17, %v4635_v32 }
 0x4c5   : > { %vm4598_vm13 = vcmp.ge.f32.partialorder %v4535_v45, 0.0  ;;  %v4638_v36 = vmul.f32 %v8280_v63, %v4535_v45  ;;  %v4668_v25 = vsel %vm4596_vm11, %v4531_v54, %v4636_v18 }
 0x4c6   : > { %v4669_v38 = vsel %vm4597_vm12, %v4533_v2, %v4637_v7 }
 0x4c7   : > { %v4695_v48 = vpack.c.bf16 %v4669_v38, %v4667_v26  ;;  %v4538_v28 = vpop.f32.mrb[236].mxu0  ;;  %v4670_v39 = vsel %vm4598_vm13, %v4535_v45, %v4638_v36 }
 0x4c8   : > { %v4539_v57 = vadd.f32 %v4538_v28, %v8271_v42  ;;  %v4540_v41 = vpop.f32.mrb[237].mxu0  ;;  %v4696_v30 = vpack.c.bf16 %v4670_v39, %v4668_v25 }
 0x4c9   : > { %v4541_v47 = vadd.f32 %v4540_v41, %v8274_v27  ;;  %v4542_v14 = vpop.f32.mrb[238].mxu0 }
 0x4ca   : > { %v4639_v5 = vmul.f32 %v8277_v34, %v4539_v57  ;;  %v4543_v21 = vadd.f32 %v4542_v14, %v8271_v42  ;;  %v4544_v19 = vpop.f32.mrb[239].mxu0  ;;  %4959 = vmatprep.mubr.bf16.mxu0 %v4696_v30  ;;  %vm4599_vm14 = vcmp.ge.f32.partialorder %v4539_v57, 0.0 }
 0x4cb   : > { %v4640_v3 = vmul.f32 %v8280_v63, %v4541_v47  ;;  %v4545_v16 = vadd.f32 %v4544_v19, %v8274_v27  ;;  %4960 = vmatmul.mubr.bf16.gmra.mrb[8].mxu0 %v4695_v48  ;;  %vm4600_vm15 = vcmp.ge.f32.partialorder %v4541_v47, 0.0 }
 0x4cc   : > { %vm4601_vm0 = vcmp.ge.f32.partialorder %v4543_v21, 0.0  ;;  %v4641_v12 = vmul.f32 %v8277_v34, %v4543_v21  ;;  %v4671_v8 = vsel %vm4599_vm14, %v4539_v57, %v4639_v5 }
 0x4cd   : > { %vm4602_vm1 = vcmp.ge.f32.partialorder %v4545_v16, 0.0  ;;  %v4642_v4 = vmul.f32 %v8280_v63, %v4545_v16  ;;  %v4672_v6 = vsel %vm4600_vm15, %v4541_v47, %v4640_v3 }
 0x4ce   : > { %v4673_v35 = vsel %vm4601_vm0, %v4543_v21, %v4641_v12 }
 0x4cf   : > { %v4697_v33 = vpack.c.bf16 %v4673_v35, %v4671_v8  ;;  %v4548_v61 = vpop.f32.mrb[240].mxu0  ;;  %v4674_v56 = vsel %vm4602_vm1, %v4545_v16, %v4642_v4 }
 0x4d0   : > { %v4549_v24 = vadd.f32 %v4548_v61, %v8271_v42  ;;  %v4550_v11 = vpop.f32.mrb[241].mxu0  ;;  %v4698_v46 = vpack.c.bf16 %v4674_v56, %v4672_v6 }
 0x4d1   : > { %v4551_v43 = vadd.f32 %v4550_v11, %v8274_v27  ;;  %v4552_v60 = vpop.f32.mrb[242].mxu0 }
 0x4d2   : > { %v4643_v23 = vmul.f32 %v8277_v34, %v4549_v24  ;;  %v4553_v59 = vadd.f32 %v4552_v60, %v8271_v42  ;;  %v4554_v52 = vpop.f32.mrb[243].mxu0  ;;  %4969 = vmatprep.mubr.bf16.mxu1 %v4698_v46  ;;  %vm4603_vm2 = vcmp.ge.f32.partialorder %v4549_v24, 0.0 }
 0x4d3   : > { %v4644_v29 = vmul.f32 %v8280_v63, %v4551_v43  ;;  %v4555_v62 = vadd.f32 %v4554_v52, %v8274_v27  ;;  %4970 = vmatmul.mubr.bf16.vlgmr.msra.gmra.mrb[32].mxu1 %v4697_v33  ;;  %vm4604_vm3 = vcmp.ge.f32.partialorder %v4551_v43, 0.0 }
 0x4d4   : > { %vm4605_vm4 = vcmp.ge.f32.partialorder %v4553_v59, 0.0  ;;  %v4645_v44 = vmul.f32 %v8277_v34, %v4553_v59  ;;  %v4675_v31 = vsel %vm4603_vm2, %v4549_v24, %v4643_v23 }
 0x4d5   : > { %vm4606_vm5 = vcmp.ge.f32.partialorder %v4555_v62, 0.0  ;;  %v4646_v58 = vmul.f32 %v8280_v63, %v4555_v62  ;;  %v4676_v49 = vsel %vm4604_vm3, %v4551_v43, %v4644_v29 }
 0x4d6   : > { %v4677_v37 = vsel %vm4605_vm4, %v4553_v59, %v4645_v44 }
 0x4d7   : > { %v4558_v13 = vpop.f32.mrb[244].mxu0  ;;  %v4678_v22 = vsel %vm4606_vm5, %v4555_v62, %v4646_v58  ;;  %v4699_v9 = vpack.c.bf16 %v4677_v37, %v4675_v31 }
 0x4d8   : > { %v4559_v40 = vadd.f32 %v4558_v13, %v8271_v42  ;;  %v4560_v53 = vpop.f32.mrb[245].mxu0  ;;  %v4700_v15 = vpack.c.bf16 %v4678_v22, %v4676_v49  ;;  %v4741_v13 = vsub.s32 2, %v8156_v10 }
 0x4d9   : > { %v4561_v17 = vadd.f32 %v4560_v53, %v8274_v27  ;;  %v4562_v55 = vpop.f32.mrb[246].mxu0 }
 0x4da   : > { %v4647_v0 = vmul.f32 %v8277_v34, %v4559_v40  ;;  %v4563_v54 = vadd.f32 %v4562_v55, %v8271_v42  ;;  %v4564_v20 = vpop.f32.mrb[247].mxu0  ;;  %4979 = vmatprep.mubr.bf16.mxu1 %v4700_v15  ;;  %vm4607_vm6 = vcmp.ge.f32.partialorder %v4559_v40, 0.0  ;;  %v8349_v49 = vrot.slane %v8162_v50, %v4741_v13 }
 0x4db   : > { %v4648_v32 = vmul.f32 %v8280_v63, %v4561_v17  ;;  %v4565_v2 = vadd.f32 %v4564_v20, %v8274_v27  ;;  %4980 = vmatmul.mubr.bf16.gmra.mrb[36].mxu1 %v4699_v9  ;;  %vm4608_vm7 = vcmp.ge.f32.partialorder %v4561_v17, 0.0 }
 0x4dc   : > { %vm4609_vm8 = vcmp.ge.f32.partialorder %v4563_v54, 0.0  ;;  %v4649_v1 = vmul.f32 %v8277_v34, %v4563_v54  ;;  %v4679_v45 = vsel %vm4607_vm6, %v4559_v40, %v4647_v0 }
 0x4dd   : > { %vm4610_vm9 = vcmp.ge.f32.partialorder %v4565_v2, 0.0  ;;  %v4650_v18 = vmul.f32 %v8280_v63, %v4565_v2  ;;  %v4680_v26 = vsel %vm4608_vm7, %v4561_v17, %v4648_v32 }
 0x4de   : > { %v4681_v7 = vsel %vm4609_vm8, %v4563_v54, %v4649_v1 }
 0x4df   : > { %v4568_v36 = vpop.f32.mrb[248].mxu0  ;;  %v4682_v38 = vsel %vm4610_vm9, %v4565_v2, %v4650_v18  ;;  %v4701_v48 = vpack.c.bf16 %v4681_v7, %v4679_v45 }
 0x4e0   : > { %v4569_v28 = vadd.f32 %v4568_v36, %v8271_v42  ;;  %v4570_v25 = vpop.f32.mrb[249].mxu0  ;;  %v4702_v39 = vpack.c.bf16 %v4682_v38, %v4680_v26 }
 0x4e1   : > { %v4571_v57 = vadd.f32 %v4570_v25, %v8274_v27  ;;  %v4572_v41 = vpop.f32.mrb[250].mxu0 }
 0x4e2   : > { %v4651_v30 = vmul.f32 %v8277_v34, %v4569_v28  ;;  %v4573_v47 = vadd.f32 %v4572_v41, %v8271_v42  ;;  %v4574_v14 = vpop.f32.mrb[251].mxu0  ;;  %4989 = vmatprep.mubr.bf16.mxu1 %v4702_v39  ;;  %vm4611_vm10 = vcmp.ge.f32.partialorder %v4569_v28, 0.0 }
 0x4e3   : > { %v4652_v5 = vmul.f32 %v8280_v63, %v4571_v57  ;;  %v4575_v21 = vadd.f32 %v4574_v14, %v8274_v27  ;;  %4990 = vmatmul.mubr.bf16.gmra.mrb[40].mxu1 %v4701_v48  ;;  %vm4612_vm11 = vcmp.ge.f32.partialorder %v4571_v57, 0.0 }
 0x4e4   : > { %vm4613_vm12 = vcmp.ge.f32.partialorder %v4573_v47, 0.0  ;;  %v4653_v19 = vmul.f32 %v8277_v34, %v4573_v47  ;;  %v4683_v16 = vsel %vm4611_vm10, %v4569_v28, %v4651_v30 }
 0x4e5   : > { %vm4614_vm13 = vcmp.ge.f32.partialorder %v4575_v21, 0.0  ;;  %v4654_v3 = vmul.f32 %v8280_v63, %v4575_v21  ;;  %v4684_v8 = vsel %vm4612_vm11, %v4571_v57, %v4652_v5 }
 0x4e6   : > { %v4685_v12 = vsel %vm4613_vm12, %v4573_v47, %v4653_v19 }
 0x4e7   : > { %v4578_v4 = vpop.f32.mrb[252].mxu0  ;;  %v4686_v35 = vsel %vm4614_vm13, %v4575_v21, %v4654_v3  ;;  %v4703_v33 = vpack.c.bf16 %v4685_v12, %v4683_v16 }
 0x4e8   : > { %v4579_v61 = vadd.f32 %v4578_v4, %v8271_v42  ;;  %v4580_v6 = vpop.f32.mrb[253].mxu0  ;;  %v4704_v56 = vpack.c.bf16 %v4686_v35, %v4684_v8 }
 0x4e9   : > { %v4581_v24 = vadd.f32 %v4580_v6, %v8274_v27  ;;  %v4582_v11 = vpop.f32.mrb[254].mxu0 }
 0x4ea   : > { %v4655_v46 = vmul.f32 %v8277_v34, %v4579_v61  ;;  %v4583_v43 = vadd.f32 %v4582_v11, %v8271_v42  ;;  %v4584_v60 = vpop.f32.mrb[255].mxu0  ;;  %4999 = vmatprep.mubr.bf16.mxu1 %v4704_v56  ;;  %vm4615_vm14 = vcmp.ge.f32.partialorder %v4579_v61, 0.0 }
 0x4eb   : > { %v4656_v23 = vmul.f32 %v8280_v63, %v4581_v24  ;;  %v4585_v59 = vadd.f32 %v4584_v60, %v8274_v27  ;;  %5000 = vmatmul.mubr.bf16.gmra.mrb[44].mxu1 %v4703_v33  ;;  %vm4616_vm15 = vcmp.ge.f32.partialorder %v4581_v24, 0.0  ;;  %v5054_v27 = vsub.s32 5, %v8156_v10 }
 0x4ec   : > { %vm4617_vm0 = vcmp.ge.f32.partialorder %v4583_v43, 0.0  ;;  %v4657_v52 = vmul.f32 %v8277_v34, %v4583_v43  ;;  %v4687_v62 = vsel %vm4615_vm14, %v4579_v61, %v4655_v46  ;;  %v8352_v34 = vrot.slane %v8165_v51, %v4741_v13 }
 0x4ed   : > { %vm4618_vm1 = vcmp.ge.f32.partialorder %v4585_v59, 0.0  ;;  %v4658_v29 = vmul.f32 %v8280_v63, %v4585_v59  ;;  %v4688_v58 = vsel %vm4616_vm15, %v4581_v24, %v4656_v23  ;;  %v5126_v63 = vsub.s32 7, %v8156_v10 }
 0x4ee   : > { %v4689_v44 = vsel %vm4617_vm0, %v4583_v43, %v4657_v52  ;;  %v8356_v22 = vrot.slane %v8162_v50, %v5054_v27  ;;  %v8359_v40 = vrot.slane %v8165_v51, %v5054_v27 }
 0x4ef   : > { %v4690_v31 = vsel %vm4618_vm1, %v4585_v59, %v4658_v29  ;;  %v4705_v42 = vpack.c.bf16 %v4689_v44, %v4687_v62  ;;  %v8364_v0 = vrot.slane %v8162_v50, %v5126_v63  ;;  %v8369_v2 = vrot.slane %v8165_v51, %v5126_v63 }
 0x4f0   : > { %v4706_v37 = vpack.c.bf16 %v4690_v31, %v4688_v58 }
 0x4f2   : > { %5009 = vmatprep.mubr.bf16.mxu1 %v4706_v37 }
 0x4f3   : > { %5010 = vmatmul.mubr.bf16.gmra.mrb[48].mxu1 %v4705_v42 }
 0x58e   : > { %v4941_v9 = vpop.f32.mrb[0].mxu0 }
 0x58f   : > { %v4942_v53 = vadd.f32 %v4941_v9, %v8349_v49  ;;  %v4943_v15 = vpop.f32.mrb[1].mxu0 }
 0x590   : > { %v4944_v17 = vadd.f32 %v4943_v15, %v8352_v34  ;;  %v4945_v55 = vpop.f32.mrb[2].mxu0 }
 0x591   : > { %vm5020_vm2 = vcmp.ge.f32.partialorder %v4942_v53, 0.0  ;;  %v5060_v54 = vmul.f32 %v8356_v22, %v4942_v53  ;;  %v4946_v20 = vadd.f32 %v4945_v55, %v8349_v49  ;;  %v4947_v32 = vpop.f32.mrb[3].mxu0 }
 0x592   : > { %vm5021_vm3 = vcmp.ge.f32.partialorder %v4944_v17, 0.0  ;;  %v5061_v1 = vmul.f32 %v8359_v40, %v4944_v17  ;;  %v4948_v18 = vadd.f32 %v4947_v32, %v8352_v34 }
 0x593   : > { %vm5022_vm4 = vcmp.ge.f32.partialorder %v4946_v20, 0.0  ;;  %v5062_v45 = vmul.f32 %v8356_v22, %v4946_v20  ;;  %v5092_v7 = vsel %vm5020_vm2, %v4942_v53, %v5060_v54 }
 0x594   : > { %vm5023_vm5 = vcmp.ge.f32.partialorder %v4948_v18, 0.0  ;;  %v5063_v50 = vmul.f32 %v8359_v40, %v4948_v18  ;;  %v5093_v36 = vsel %vm5021_vm3, %v4944_v17, %v5061_v1  ;;  %v5132_v26 = vmul.f32 %v8364_v0, %v5092_v7 }
 0x595   : > { %v5133_v38 = vmul.f32 %v8369_v2, %v5093_v36  ;;  %v5094_v48 = vsel %vm5022_vm4, %v4946_v20, %v5062_v45 }
 0x596   : > { %v4951_v51 = vpop.f32.mrb[4].mxu0  ;;  %v5095_v28 = vsel %vm5023_vm5, %v4948_v18, %v5063_v50  ;;  %v5134_v25 = vmul.f32 %v8364_v0, %v5094_v48 }
 0x597   : > { %v4952_v39 = vadd.f32 %v4951_v51, %v8349_v49  ;;  %v4953_v57 = vpop.f32.mrb[5].mxu0  ;;  %v5164_v41 = vadd.f32 %v5133_v38, %v5132_v26  ;;  %v5135_v30 = vmul.f32 %v8369_v2, %v5095_v28 }
 0x598   : > { %v4954_v47 = vadd.f32 %v4953_v57, %v8352_v34  ;;  %v4955_v14 = vpop.f32.mrb[6].mxu0 }
 0x599   : > { %vm5024_vm6 = vcmp.ge.f32.partialorder %v4952_v39, 0.0  ;;  %v5064_v5 = vmul.f32 %v8356_v22, %v4952_v39  ;;  %v4956_v21 = vadd.f32 %v4955_v14, %v8349_v49  ;;  %v4957_v19 = vpop.f32.mrb[7].mxu0  ;;  %5165 = vadd.xlane.f32.xlu0 %v5164_v41  ;;  %v5167_v3 = vadd.f32 %v5135_v30, %v5134_v25 }
 0x59a   : > { %vm5025_vm7 = vcmp.ge.f32.partialorder %v4954_v47, 0.0  ;;  %v5065_v16 = vmul.f32 %v8359_v40, %v4954_v47  ;;  %v4958_v12 = vadd.f32 %v4957_v19, %v8352_v34 }
 0x59b   : > { %vm5026_vm8 = vcmp.ge.f32.partialorder %v4956_v21, 0.0  ;;  %v5066_v4 = vmul.f32 %v8356_v22, %v4956_v21  ;;  %v5096_v8 = vsel %vm5024_vm6, %v4952_v39, %v5064_v5 }
 0x59c   : > { %vm5027_vm9 = vcmp.ge.f32.partialorder %v4958_v12, 0.0  ;;  %v5067_v35 = vmul.f32 %v8359_v40, %v4958_v12  ;;  %v5097_v33 = vsel %vm5025_vm7, %v4954_v47, %v5065_v16  ;;  %v5136_v61 = vmul.f32 %v8364_v0, %v5096_v8 }
 0x59d   : > { %5168 = vadd.xlane.f32.xlu0 %v5167_v3  ;;  %v5137_v6 = vmul.f32 %v8369_v2, %v5097_v33  ;;  %v5098_v56 = vsel %vm5026_vm8, %v4956_v21, %v5066_v4 }
 0x59e   : > { %v4961_v24 = vpop.f32.mrb[8].mxu0  ;;  %v5099_v11 = vsel %vm5027_vm9, %v4958_v12, %v5067_v35  ;;  %v5138_v46 = vmul.f32 %v8364_v0, %v5098_v56 }
 0x59f   : > { %v4962_v43 = vadd.f32 %v4961_v24, %v8349_v49  ;;  %v4963_v60 = vpop.f32.mrb[9].mxu0  ;;  %v5170_v23 = vadd.f32 %v5137_v6, %v5136_v61  ;;  %v5139_v59 = vmul.f32 %v8369_v2, %v5099_v11 }
 0x5a0   : > { %v4964_v52 = vadd.f32 %v4963_v60, %v8352_v34  ;;  %v4965_v29 = vpop.f32.mrb[10].mxu0 }
 0x5a1   : > { %vm5028_vm10 = vcmp.ge.f32.partialorder %v4962_v43, 0.0  ;;  %v5068_v62 = vmul.f32 %v8356_v22, %v4962_v43  ;;  %v4966_v44 = vadd.f32 %v4965_v29, %v8349_v49  ;;  %v4967_v58 = vpop.f32.mrb[11].mxu0  ;;  %5171 = vadd.xlane.f32.xlu1 %v5170_v23  ;;  %v5173_v31 = vadd.f32 %v5139_v59, %v5138_v46 }
 0x5a2   : > { %vm5029_vm11 = vcmp.ge.f32.partialorder %v4964_v52, 0.0  ;;  %v5069_v42 = vmul.f32 %v8359_v40, %v4964_v52  ;;  %v4968_v37 = vadd.f32 %v4967_v58, %v8352_v34 }
 0x5a3   : > { %vm5030_vm12 = vcmp.ge.f32.partialorder %v4966_v44, 0.0  ;;  %v5070_v13 = vmul.f32 %v8356_v22, %v4966_v44  ;;  %v5100_v27 = vsel %vm5028_vm10, %v4962_v43, %v5068_v62 }
 0x5a4   : > { %vm5031_vm13 = vcmp.ge.f32.partialorder %v4968_v37, 0.0  ;;  %v5071_v63 = vmul.f32 %v8359_v40, %v4968_v37  ;;  %v5101_v9 = vsel %vm5029_vm11, %v4964_v52, %v5069_v42  ;;  %v5140_v53 = vmul.f32 %v8364_v0, %v5100_v27 }
 0x5a5   : > { %5174 = vadd.xlane.f32.xlu1 %v5173_v31  ;;  %v5141_v15 = vmul.f32 %v8369_v2, %v5101_v9  ;;  %v5102_v17 = vsel %vm5030_vm12, %v4966_v44, %v5070_v13 }
 0x5a6   : > { %v4971_v55 = vpop.f32.mrb[32].mxu1  ;;  %v5103_v54 = vsel %vm5031_vm13, %v4968_v37, %v5071_v63  ;;  %v5142_v20 = vmul.f32 %v8364_v0, %v5102_v17 }
 0x5a7   : > { %v4972_v32 = vadd.f32 %v4971_v55, %v8349_v49  ;;  %v4973_v1 = vpop.f32.mrb[33].mxu1  ;;  %v5176_v18 = vadd.f32 %v5141_v15, %v5140_v53  ;;  %v5143_v45 = vmul.f32 %v8369_v2, %v5103_v54 }
 0x5a8   : > { %v4974_v7 = vadd.f32 %v4973_v1, %v8352_v34  ;;  %v4975_v50 = vpop.f32.mrb[34].mxu1 }
 0x5a9   : > { %vm5032_vm14 = vcmp.ge.f32.partialorder %v4972_v32, 0.0  ;;  %v5072_v36 = vmul.f32 %v8356_v22, %v4972_v32  ;;  %v4976_v26 = vadd.f32 %v4975_v50, %v8349_v49  ;;  %v4977_v38 = vpop.f32.mrb[35].mxu1  ;;  %5177 = vadd.xlane.f32.xlu0 %v5176_v18  ;;  %v5179_v48 = vadd.f32 %v5143_v45, %v5142_v20 }
 0x5aa   : > { %vm5033_vm15 = vcmp.ge.f32.partialorder %v4974_v7, 0.0  ;;  %v5073_v51 = vmul.f32 %v8359_v40, %v4974_v7  ;;  %v4978_v28 = vadd.f32 %v4977_v38, %v8352_v34 }
 0x5ab   : > { %vm5034_vm0 = vcmp.ge.f32.partialorder %v4976_v26, 0.0  ;;  %v5074_v25 = vmul.f32 %v8356_v22, %v4976_v26  ;;  %5180 = vadd.xlane.f32.xlu1 %v5179_v48  ;;  %v5104_v39 = vsel %vm5032_vm14, %v4972_v32, %v5072_v36 }
 0x5ac   : > { %vm5035_vm1 = vcmp.ge.f32.partialorder %v4978_v28, 0.0  ;;  %v5075_v57 = vmul.f32 %v8359_v40, %v4978_v28  ;;  %v5105_v41 = vsel %vm5033_vm15, %v4974_v7, %v5073_v51  ;;  %v5144_v30 = vmul.f32 %v8364_v0, %v5104_v39 }
 0x5ad   : > { %v5145_v47 = vmul.f32 %v8369_v2, %v5105_v41  ;;  %v5106_v14 = vsel %vm5034_vm0, %v4976_v26, %v5074_v25 }
 0x5ae   : > { %v4981_v5 = vpop.f32.mrb[36].mxu1  ;;  %v5107_v21 = vsel %vm5035_vm1, %v4978_v28, %v5075_v57  ;;  %v5146_v19 = vmul.f32 %v8364_v0, %v5106_v14 }
 0x5af   : > { %v4982_v3 = vadd.f32 %v4981_v5, %v8349_v49  ;;  %v4983_v16 = vpop.f32.mrb[37].mxu1  ;;  %v5182_v12 = vadd.f32 %v5145_v47, %v5144_v30  ;;  %v5147_v4 = vmul.f32 %v8369_v2, %v5107_v21 }
 0x5b0   : > { %v4984_v8 = vadd.f32 %v4983_v16, %v8352_v34  ;;  %v4985_v35 = vpop.f32.mrb[38].mxu1 }
 0x5b1   : > { %vm5036_vm2 = vcmp.ge.f32.partialorder %v4982_v3, 0.0  ;;  %v5076_v33 = vmul.f32 %v8356_v22, %v4982_v3  ;;  %v4986_v61 = vadd.f32 %v4985_v35, %v8349_v49  ;;  %v4987_v6 = vpop.f32.mrb[39].mxu1  ;;  %5183 = vadd.xlane.f32.xlu0 %v5182_v12  ;;  %v5185_v56 = vadd.f32 %v5147_v4, %v5146_v19 }
 0x5b2   : > { %vm5037_vm3 = vcmp.ge.f32.partialorder %v4984_v8, 0.0  ;;  %v5077_v24 = vmul.f32 %v8359_v40, %v4984_v8  ;;  %v4988_v11 = vadd.f32 %v4987_v6, %v8352_v34 }
 0x5b3   : > { %vm5038_vm4 = vcmp.ge.f32.partialorder %v4986_v61, 0.0  ;;  %v5078_v46 = vmul.f32 %v8356_v22, %v4986_v61  ;;  %5186 = vadd.xlane.f32.xlu1 %v5185_v56  ;;  %v5108_v43 = vsel %vm5036_vm2, %v4982_v3, %v5076_v33  ;;  %vm5232_vm2 = vcmask 7168  }
 0x5b4   : > { %vm5039_vm5 = vcmp.ge.f32.partialorder %v4988_v11, 0.0  ;;  %v5079_v60 = vmul.f32 %v8359_v40, %v4988_v11  ;;  %v5109_v23 = vsel %vm5037_vm3, %v4984_v8, %v5077_v24  ;;  %v5148_v59 = vmul.f32 %v8364_v0, %v5108_v43 }
 0x5b5   : > { %v5149_v52 = vmul.f32 %v8369_v2, %v5109_v23  ;;  %v5110_v29 = vsel %vm5038_vm4, %v4986_v61, %v5078_v46 }
 0x5b6   : > { %v4991_v62 = vpop.f32.mrb[40].mxu1  ;;  %v5111_v44 = vsel %vm5039_vm5, %v4988_v11, %v5079_v60  ;;  %v5150_v58 = vmul.f32 %v8364_v0, %v5110_v29 }
 0x5b7   : > { %v4992_v31 = vadd.f32 %v4991_v62, %v8349_v49  ;;  %v4993_v42 = vpop.f32.mrb[41].mxu1  ;;  %v5188_v37 = vadd.f32 %v5149_v52, %v5148_v59  ;;  %v5151_v13 = vmul.f32 %v8369_v2, %v5111_v44 }
 0x5b8   : > { %v4994_v27 = vadd.f32 %v4993_v42, %v8352_v34  ;;  %v4995_v63 = vpop.f32.mrb[42].mxu1 }
 0x5b9   : > { %vm5040_vm6 = vcmp.ge.f32.partialorder %v4992_v31, 0.0  ;;  %v5080_v9 = vmul.f32 %v8356_v22, %v4992_v31  ;;  %v4996_v53 = vadd.f32 %v4995_v63, %v8349_v49  ;;  %v4997_v15 = vpop.f32.mrb[43].mxu1  ;;  %5189 = vadd.xlane.f32.xlu0 %v5188_v37  ;;  %v5191_v17 = vadd.f32 %v5151_v13, %v5150_v58 }
 0x5ba   : > { %vm5041_vm7 = vcmp.ge.f32.partialorder %v4994_v27, 0.0  ;;  %v5081_v55 = vmul.f32 %v8359_v40, %v4994_v27  ;;  %v4998_v54 = vadd.f32 %v4997_v15, %v8352_v34  ;;  %v6709_v15 = vld [vmem:[#allocation6] sm:$0xff] }
 0x5bb   : > { %vm5042_vm8 = vcmp.ge.f32.partialorder %v4996_v53, 0.0  ;;  %v5082_v20 = vmul.f32 %v8356_v22, %v4996_v53  ;;  %5192 = vadd.xlane.f32.xlu1 %v5191_v17  ;;  %v5112_v32 = vsel %vm5040_vm6, %v4992_v31, %v5080_v9 }
 0x5bc   : > { %vm5043_vm9 = vcmp.ge.f32.partialorder %v4998_v54, 0.0  ;;  %v5083_v1 = vmul.f32 %v8359_v40, %v4998_v54  ;;  %v5113_v18 = vsel %vm5041_vm7, %v4994_v27, %v5081_v55  ;;  %v5152_v45 = vmul.f32 %v8364_v0, %v5112_v32 }
 0x5bd   : > { %v5153_v7 = vmul.f32 %v8369_v2, %v5113_v18  ;;  %v5114_v50 = vsel %vm5042_vm8, %v4996_v53, %v5082_v20 }
 0x5be   : > { %v5001_v36 = vpop.f32.mrb[44].mxu1  ;;  %v5115_v26 = vsel %vm5043_vm9, %v4998_v54, %v5083_v1  ;;  %v5154_v38 = vmul.f32 %v8364_v0, %v5114_v50 }
 0x5bf   : > { %v5002_v48 = vadd.f32 %v5001_v36, %v8349_v49  ;;  %v5003_v51 = vpop.f32.mrb[45].mxu1  ;;  %v5194_v28 = vadd.f32 %v5153_v7, %v5152_v45  ;;  %v5155_v25 = vmul.f32 %v8369_v2, %v5115_v26 }
 0x5c0   : > { %v5004_v39 = vadd.f32 %v5003_v51, %v8352_v34  ;;  %v5005_v57 = vpop.f32.mrb[46].mxu1 }
 0x5c1   : > { %vm5044_vm10 = vcmp.ge.f32.partialorder %v5002_v48, 0.0  ;;  %v5084_v41 = vmul.f32 %v8356_v22, %v5002_v48  ;;  %v5006_v30 = vadd.f32 %v5005_v57, %v8349_v49  ;;  %v5007_v47 = vpop.f32.mrb[47].mxu1  ;;  %5195 = vadd.xlane.f32.xlu0 %v5194_v28  ;;  %v5197_v14 = vadd.f32 %v5155_v25, %v5154_v38 }
 0x5c2   : > { %vm5045_vm11 = vcmp.ge.f32.partialorder %v5004_v39, 0.0  ;;  %v5085_v5 = vmul.f32 %v8359_v40, %v5004_v39  ;;  %v5008_v21 = vadd.f32 %v5007_v47, %v8352_v34 }
 0x5c3   : > { %vm5046_vm12 = vcmp.ge.f32.partialorder %v5006_v30, 0.0  ;;  %v5086_v19 = vmul.f32 %v8356_v22, %v5006_v30  ;;  %5198 = vadd.xlane.f32.xlu1 %v5197_v14  ;;  %v5116_v3 = vsel %vm5044_vm10, %v5002_v48, %v5084_v41 }
 0x5c4   : > { %vm5047_vm13 = vcmp.ge.f32.partialorder %v5008_v21, 0.0  ;;  %v5087_v16 = vmul.f32 %v8359_v40, %v5008_v21  ;;  %v5117_v12 = vsel %vm5045_vm11, %v5004_v39, %v5085_v5  ;;  %v5156_v4 = vmul.f32 %v8364_v0, %v5116_v3 }
 0x5c5   : > { %v5157_v8 = vmul.f32 %v8369_v2, %v5117_v12  ;;  %v5118_v35 = vsel %vm5046_vm12, %v5006_v30, %v5086_v19 }
 0x5c6   : > { %v5011_v33 = vpop.f32.mrb[48].mxu1  ;;  %v5119_v61 = vsel %vm5047_vm13, %v5008_v21, %v5087_v16  ;;  %v5158_v6 = vmul.f32 %v8364_v0, %v5118_v35 }
 0x5c7   : > { %v5012_v56 = vadd.f32 %v5011_v33, %v8349_v49  ;;  %v5013_v24 = vpop.f32.mrb[49].mxu1  ;;  %v5200_v11 = vadd.f32 %v5157_v8, %v5156_v4  ;;  %v5159_v46 = vmul.f32 %v8369_v2, %v5119_v61 }
 0x5c8   : > { %v5014_v43 = vadd.f32 %v5013_v24, %v8352_v34  ;;  %v5015_v60 = vpop.f32.mrb[50].mxu1 }
 0x5c9   : > { %vm5048_vm14 = vcmp.ge.f32.partialorder %v5012_v56, 0.0  ;;  %v5088_v23 = vmul.f32 %v8356_v22, %v5012_v56  ;;  %v5016_v59 = vadd.f32 %v5015_v60, %v8349_v49  ;;  %v5017_v52 = vpop.f32.mrb[51].mxu1  ;;  %5201 = vadd.xlane.f32.xlu0 %v5200_v11  ;;  %v5203_v29 = vadd.f32 %v5159_v46, %v5158_v6 }
 0x5ca   : > { %vm5049_vm15 = vcmp.ge.f32.partialorder %v5014_v43, 0.0  ;;  %v5089_v62 = vmul.f32 %v8359_v40, %v5014_v43  ;;  %v5018_v44 = vadd.f32 %v5017_v52, %v8352_v34 }
 0x5cb   : > { %vm5050_vm0 = vcmp.ge.f32.partialorder %v5016_v59, 0.0  ;;  %v5090_v58 = vmul.f32 %v8356_v22, %v5016_v59  ;;  %5204 = vadd.xlane.f32.xlu1 %v5203_v29  ;;  %v5120_v31 = vsel %vm5048_vm14, %v5012_v56, %v5088_v23 }
 0x5cc   : > { %vm5051_vm1 = vcmp.ge.f32.partialorder %v5018_v44, 0.0  ;;  %v5091_v42 = vmul.f32 %v8359_v40, %v5018_v44  ;;  %v5121_v37 = vsel %vm5049_vm15, %v5014_v43, %v5089_v62  ;;  %v5160_v49 = vmul.f32 %v8364_v0, %v5120_v31 }
 0x5cd   : > { %v5161_v13 = vmul.f32 %v8369_v2, %v5121_v37  ;;  %v5122_v27 = vsel %vm5050_vm0, %v5016_v59, %v5090_v58  ;;  %v5214_v40 = vsub.s32 6, %v8156_v10 }
 0x5ce   : > { %v5123_v63 = vsel %vm5051_vm1, %v5018_v44, %v5091_v42  ;;  %v5162_v9 = vmul.f32 %v8364_v0, %v5122_v27 }
 0x5cf   : > { %v5206_v53 = vadd.f32 %v5161_v13, %v5160_v49  ;;  %v5163_v34 = vmul.f32 %v8369_v2, %v5123_v63  ;;  %v5215_v17 = vrot.slane %v6709_v15, %v5214_v40 }
 0x5d1   : > { %5207 = vadd.xlane.f32.xlu0 %v5206_v53  ;;  %v5209_v22 = vadd.f32 %v5163_v34, %v5162_v9 }
 0x5d3   : > { %5210 = vadd.xlane.f32.xlu1 %v5209_v22 }
 0x626   : > { %v5166_v0 = vpop.xlane.xlu0 %5165 }
 0x627   : > { %v5216_v2 = vadd.f32 %v5215_v17, %v5166_v0 }
 0x629   : > { %5233 = vst.msk [vmem:[%s8468_s11] sm:$0xff] %vm5232_vm2, %v5216_v2 }
 0x62a   : > { %v5169_v10 = vpop.xlane.xlu0 %5168 }
 0x62b   : > { %v5217_v55 = vadd.f32 %v5215_v17, %v5169_v10 }
 0x62d   : > { %5234 = vst.msk [vmem:[%s8468_s11 + $0x8] sm:$0xff] %vm5232_vm2, %v5217_v55 }
 0x62e   : > { %v5172_v54 = vpop.xlane.xlu1 %5171 }
 0x62f   : > { %v5218_v20 = vadd.f32 %v5215_v17, %v5172_v54 }
 0x631   : > { %5235 = vst.msk [vmem:[%s8468_s11 + $0x10] sm:$0xff] %vm5232_vm2, %v5218_v20 }
 0x632   : > { %v5175_v32 = vpop.xlane.xlu1 %5174 }
 0x633   : > { %v5219_v1 = vadd.f32 %v5215_v17, %v5175_v32 }
 0x635   : > { %5236 = vst.msk [vmem:[%s8468_s11 + $0x18] sm:$0xff] %vm5232_vm2, %v5219_v1 }
 0x636   : > { %v5178_v18 = vpop.xlane.xlu0 %5177 }
 0x637   : > { %v5220_v45 = vadd.f32 %v5215_v17, %v5178_v18 }
 0x638   : > { %v5181_v7 = vpop.xlane.xlu1 %5180 }
 0x639   : > { %5237 = vst.msk [vmem:[%s8468_s11 + $0x20] sm:$0xff] %vm5232_vm2, %v5220_v45  ;;  %v5221_v50 = vadd.f32 %v5215_v17, %v5181_v7 }
 0x63b   : > { %5238 = vst.msk [vmem:[%s8468_s11 + $0x28] sm:$0xff] %vm5232_vm2, %v5221_v50 }
 0x63e   : > { %v5184_v36 = vpop.xlane.xlu0 %5183 }
 0x63f   : > { %v5222_v26 = vadd.f32 %v5215_v17, %v5184_v36 }
 0x640   : > { %v5187_v38 = vpop.xlane.xlu1 %5186 }
 0x641   : > { %5239 = vst.msk [vmem:[%s8468_s11 + $0x30] sm:$0xff] %vm5232_vm2, %v5222_v26  ;;  %v5223_v48 = vadd.f32 %v5215_v17, %v5187_v38 }
 0x643   : > { %5240 = vst.msk [vmem:[%s8468_s11 + $0x38] sm:$0xff] %vm5232_vm2, %v5223_v48 }
 0x646   : > { %v5190_v51 = vpop.xlane.xlu0 %5189 }
 0x647   : > { %v5224_v28 = vadd.f32 %v5215_v17, %v5190_v51 }
 0x648   : > { %v5193_v25 = vpop.xlane.xlu1 %5192 }
 0x649   : > { %5241 = vst.msk [vmem:[%s8468_s11 + $0x40] sm:$0xff] %vm5232_vm2, %v5224_v28  ;;  %v5225_v39 = vadd.f32 %v5215_v17, %v5193_v25 }
 0x64b   : > { %5242 = vst.msk [vmem:[%s8468_s11 + $0x48] sm:$0xff] %vm5232_vm2, %v5225_v39 }
 0x64e   : > { %v5196_v57 = vpop.xlane.xlu0 %5195 }
 0x64f   : > { %v5226_v41 = vadd.f32 %v5215_v17, %v5196_v57 }
 0x650   : > { %v5199_v30 = vpop.xlane.xlu1 %5198 }
 0x651   : > { %5243 = vst.msk [vmem:[%s8468_s11 + $0x50] sm:$0xff] %vm5232_vm2, %v5226_v41  ;;  %v5227_v47 = vadd.f32 %v5215_v17, %v5199_v30 }
 0x653   : > { %5244 = vst.msk [vmem:[%s8468_s11 + $0x58] sm:$0xff] %vm5232_vm2, %v5227_v47 }
 0x656   : > { %v5202_v14 = vpop.xlane.xlu0 %5201 }
 0x657   : > { %v5228_v5 = vadd.f32 %v5215_v17, %v5202_v14 }
 0x658   : > { %v5205_v21 = vpop.xlane.xlu1 %5204 }
 0x659   : > { %5245 = vst.msk [vmem:[%s8468_s11 + $0x60] sm:$0xff] %vm5232_vm2, %v5228_v5  ;;  %v5229_v19 = vadd.f32 %v5215_v17, %v5205_v21 }
 0x65b   : > { %5246 = vst.msk [vmem:[%s8468_s11 + $0x68] sm:$0xff] %vm5232_vm2, %v5229_v19 }
 0x65e   : > { %v5208_v3 = vpop.xlane.xlu0 %5207 }
 0x65f   : > { %v5230_v16 = vadd.f32 %v5215_v17, %v5208_v3 }
 0x660   : > { %v5211_v12 = vpop.xlane.xlu1 %5210 }
 0x661   : > { %5247 = vst.msk [vmem:[%s8468_s11 + $0x70] sm:$0xff] %vm5232_vm2, %v5230_v16  ;;  %v5231_v4 = vadd.f32 %v5215_v17, %v5211_v12 }
 0x663   : > { %5248 = vst.msk [vmem:[%s8468_s11 + $0x78] sm:$0xff] %vm5232_vm2, %v5231_v4 }
 0x664 PF: > { %s18_s21 = sadd.s32 1, %s6808_s21  }
 0x665   : > { %p15_p10 = scmp.ge.s32.totalorder %s18_s21, 4  }
 0x667   :  { %17 = sbr.rel (!%p15_p10) target bundleno = 2 (0x2), region = 93 }
 0x66e   :  { %5271 = vsyncpa [#allocation3], 1 }
 0x66f   :  { %5273 = vsyncpa [#allocation3 + $0x1], 1 }
 0x670   :  { %5274 = vsyncpa [#allocation5], 1 }

</bundles_post_ra>
